<compile_context>
chip_gen: v7x
topology: tpu7x:2x2x1
jax: 0.10.0
libtpu: 0.0.40
codegen_flags: <defaults>
</compile_context>

<pallas_src>
import functools

import jax
import jax.numpy as jnp
from jax.experimental import pallas as pl
from jax.experimental.pallas import tpu as pltpu

# ----------------------------- model configuration -----------------------------
T_ENCODE = 4                       # Tencode
STRIDES = [2, 2, 2, 1, 1]          # conv_stride_list
CONV_CH = [16, 32, 32, 32, 16]     # small synthetic channel counts
FC6_OUT = 64
NUM_CLASSES = 10
VTHR = [1.0] * 7                   # vthr_list
REPLACE_IDX = 0                    # conv1 is the hybrid (spiking) layer
BN_EPS = 1e-5

_MAX_BLOCK_ROWS = 2048             # single block below this; ~a few 100 KB VMEM


def _round_up(x, m):
    return ((x + m - 1) // m) * m


def _choose_rows_tile(m):
    """Largest-possible row tile: per-step launch overhead dominates at these
    sizes, so run in a single grid step whenever it fits (it always does here)."""
    if m <= _MAX_BLOCK_ROWS:
        return m, m
    tm = _MAX_BLOCK_ROWS
    return tm, _round_up(m, tm)


# ------------------------------- Pallas kernels --------------------------------
def _conv1_hybrid_kernel(x_ref, w_ref, b_ref, ann_ref, spk_ref, *, T, vthr):
    """conv1 matmul + folded-BN bias, ANN ReLU output, and fused IF spikes.

    ZeroExpandInput => synaptic current is (rows @ w + b) at t=0 and just b for
    every t>0, so the whole T-step spike train needs exactly one matmul.
    """
    b = b_ref[...]                                                # (1, N) f32
    cur0 = jnp.dot(x_ref[...], w_ref[...],
                   preferred_element_type=jnp.float32) + b        # (TM, N) f32
    ann_ref[...] = jnp.maximum(cur0, 0.0).astype(ann_ref.dtype)   # ANN path

    # Integrate-and-fire (subtractive reset), T static -> unrolled VPU filler.
    v = jnp.zeros_like(cur0)
    for t in range(T):
        v = v + (cur0 if t == 0 else b)          # t>0 current == folded bias
        s = (v >= vthr).astype(jnp.float32)
        spk_ref[t] = s
        v = v - s * vthr


def _mm_bias_relu_kernel(x_ref, w_ref, b_ref, o_ref):
    acc = jnp.dot(x_ref[...], w_ref[...], preferred_element_type=jnp.float32)
    acc = acc + b_ref[...]
    o_ref[...] = jnp.maximum(acc, 0.0).astype(o_ref.dtype)


def _fc_tail_kernel(x_ref, w6_ref, b6_ref, w7_ref, b7_ref, o_ref):
    """Fused fc6 (ReLU(BN(Linear))) + fc7 (Linear) + log_softmax."""
    h = jnp.dot(x_ref[...], w6_ref[...],
                preferred_element_type=jnp.float32) + b6_ref[...]
    h = jnp.maximum(h, 0.0)
    logits = jnp.dot(h.astype(w7_ref.dtype), w7_ref[...],
                     preferred_element_type=jnp.float32) + b7_ref[...]
    m = jnp.max(logits, axis=-1, keepdims=True)
    s = logits - m
    o_ref[...] = s - jnp.log(jnp.sum(jnp.exp(s), axis=-1, keepdims=True))


# ------------------------------ pallas_call wrappers ----------------------------
def conv1_hybrid(rows, w, b, *, T, vthr):
    """rows:(M,K) bf16, w:(K,N) bf16, b:(1,N) f32 -> (ann (M,N) bf16, spikes (T,M,N) f32)."""
    M, K = rows.shape
    N = w.shape[1]
    TM, Mp = _choose_rows_tile(M)
    rows_p = rows if Mp == M else jnp.pad(rows, ((0, Mp - M), (0, 0)))
    ann, spikes = pl.pallas_call(
        functools.partial(_conv1_hybrid_kernel, T=T, vthr=vthr),
        out_shape=(jax.ShapeDtypeStruct((Mp, N), jnp.bfloat16),
                   jax.ShapeDtypeStruct((T, Mp, N), jnp.float32)),
        grid=(Mp // TM,),
        in_specs=[pl.BlockSpec((TM, K), lambda i: (i, 0)),
                  pl.BlockSpec((K, N), lambda i: (0, 0)),
                  pl.BlockSpec((1, N), lambda i: (0, 0))],
        out_specs=(pl.BlockSpec((TM, N), lambda i: (i, 0)),
                   pl.BlockSpec((T, TM, N), lambda i: (0, i, 0))),
        compiler_params=pltpu.CompilerParams(dimension_semantics=("arbitrary",)),
    )(rows_p, w, b)
    if Mp != M:
        ann, spikes = ann[:M], spikes[:, :M]
    return ann, spikes


def conv_mm_relu(rows, w, b):
    """relu(rows @ w + b); rows:(M,K) bf16, w:(K,N) bf16, b:(1,N) f32 -> (M,N) bf16."""
    M, K = rows.shape
    N = w.shape[1]
    TM, Mp = _choose_rows_tile(M)
    rows_p = rows if Mp == M else jnp.pad(rows, ((0, Mp - M), (0, 0)))
    out = pl.pallas_call(
        _mm_bias_relu_kernel,
        out_shape=jax.ShapeDtypeStruct((Mp, N), jnp.bfloat16),
        grid=(Mp // TM,),
        in_specs=[pl.BlockSpec((TM, K), lambda i: (i, 0)),
                  pl.BlockSpec((K, N), lambda i: (0, 0)),
                  pl.BlockSpec((1, N), lambda i: (0, 0))],
        out_specs=pl.BlockSpec((TM, N), lambda i: (i, 0)),
        compiler_params=pltpu.CompilerParams(dimension_semantics=("arbitrary",)),
    )(rows_p, w, b)
    return out if Mp == M else out[:M]


def fc_tail(x, w6, b6, w7, b7):
    """Fused fc6+ReLU+fc7+log_softmax; x:(B,K) bf16 -> (B, NUM_CLASSES) f32."""
    B, K6 = x.shape
    N6 = w6.shape[1]
    N7 = w7.shape[1]
    return pl.pallas_call(
        _fc_tail_kernel,
        out_shape=jax.ShapeDtypeStruct((B, N7), jnp.float32),
        grid=(1,),
        in_specs=[pl.BlockSpec((B, K6), lambda i: (0, 0)),
                  pl.BlockSpec((K6, N6), lambda i: (0, 0)),
                  pl.BlockSpec((1, N6), lambda i: (0, 0)),
                  pl.BlockSpec((N6, N7), lambda i: (0, 0)),
                  pl.BlockSpec((1, N7), lambda i: (0, 0))],
        out_specs=pl.BlockSpec((B, N7), lambda i: (0, 0)),
    )(x, w6, b6, w7, b7)


# ------------------------------- conv via im2col -------------------------------
def im2col_nhwc(x, stride):
    """3x3, padding=1 patches of an NHWC tensor.

    Returns rows (B*OH*OW, C*9); the feature axis is (C, KH, KW)-ordered
    (channel-major), matching a PyTorch OIHW weight flattened as
    weight.reshape(Cout, Cin*3*3).
    """
    patches = jax.lax.conv_general_dilated_patches(
        x, filter_shape=(3, 3), window_strides=(stride, stride),
        padding=((1, 1), (1, 1)),
        dimension_numbers=("NHWC", "HWIO", "NHWC"))
    B, OH, OW, K = patches.shape
    return patches.reshape(B * OH * OW, K), (B, OH, OW)


# ------------------------------- parameter setup --------------------------------
def init_params(key):
    keys = jax.random.split(key, 40)
    ki = 0
    params = {}

    def nrm(shape):
        nonlocal ki
        v = 0.1 * jax.random.normal(keys[ki], shape, jnp.float32)
        ki += 1
        return v

    def bn_fold(w, b, cout):
        nonlocal ki
        gamma = 1.0 + 0.1 * jax.random.normal(keys[ki], (cout,), jnp.float32); ki += 1
        beta = 0.1 * jax.random.normal(keys[ki], (cout,), jnp.float32); ki += 1
        mean = 0.1 * jax.random.normal(keys[ki], (cout,), jnp.float32); ki += 1
        var = jnp.abs(jax.random.normal(keys[ki], (cout,), jnp.float32)) + 0.5; ki += 1
        scale = gamma / jnp.sqrt(var + BN_EPS)
        return w * scale[:, None], beta + (b - mean) * scale

    cin = 3
    for li, cout in enumerate(CONV_CH):
        w = nrm((cout, cin, 3, 3))
        b = nrm((cout,))
        wf, bf = bn_fold(w.reshape(cout, cin * 9), b, cout)
        params[f"conv{li + 1}"] = (wf.T.astype(jnp.bfloat16),              # (K, N) bf16
                                   bf.reshape(1, cout).astype(jnp.float32))  # (1, N) f32
        cin = cout

    # fc6 (LinearBN1d folded).  PyTorch flattens conv5's output C-major (C,H,W);
    # the forward pass keeps NHWC activations, so permute fc6's input columns to
    # (H,W,C) order once here instead of transposing the activation every call.
    C, Hf, Wf = CONV_CH[-1], 4, 4
    fc6_in = C * Hf * Wf
    w = nrm((FC6_OUT, fc6_in))
    b = nrm((FC6_OUT,))
    wf, bf = bn_fold(w, b, FC6_OUT)
    wf = (wf.reshape(FC6_OUT, C, Hf, Wf).transpose(0, 2, 3, 1)
            .reshape(FC6_OUT, fc6_in))
    params["fc6"] = (wf.T.astype(jnp.bfloat16),
                     bf.reshape(1, FC6_OUT).astype(jnp.float32))

    # fc7: plain Linear (no BN, no ReLU); log_softmax follows inside the kernel.
    w = nrm((NUM_CLASSES, FC6_OUT))
    b = nrm((NUM_CLASSES,))
    params["fc7"] = (w.T.astype(jnp.bfloat16),
                     b.reshape(1, NUM_CLASSES).astype(jnp.float32))
    return params


# --------------------------------- forward pass ---------------------------------
def salexnet_forward(params, x):
    """x: (B, 3, 32, 32) NCHW float32 -> (log_probs (B,10) f32, conv1 spikes)."""
    B = x.shape[0]
    # One layout fix for the whole net: NCHW -> NHWC (bf16 matmul operands).
    x = x.astype(jnp.bfloat16).transpose(0, 2, 3, 1)

    # ---- conv1: hybrid ConvBN2d (replace_idx == 0) ----
    # ZeroExpandInput (image at t=0, zeros after) is folded into the kernel, so
    # the (B, T, 3, 32, 32) spike tensor is never materialised.
    w1, b1 = params["conv1"]
    rows, (_, OH, OW) = im2col_nhwc(x, STRIDES[0])
    ann_rows, spike_rows = conv1_hybrid(rows, w1, b1,
                                        T=T_ENCODE, vthr=VTHR[REPLACE_IDX])
    C1 = w1.shape[1]
    h = ann_rows.reshape(B, OH, OW, C1)                            # NHWC ANN path
    x_spike_out = (spike_rows.reshape(T_ENCODE, B, OH, OW, C1)
                   .transpose(1, 0, 4, 2, 3))                      # (B,T,C,OH,OW)

    # ---- conv2..conv5: ANN layers, x = relu(BN(conv(x))), BN folded ----
    for li in range(1, 5):
        w, b = params[f"conv{li + 1}"]
        rows, (_, OH, OW) = im2col_nhwc(h, STRIDES[li])
        h = conv_mm_relu(rows, w, b).reshape(B, OH, OW, w.shape[1])

    # ---- fc6 -> relu -> fc7 -> log_softmax, fused in one Pallas kernel ----
    # fc6 weight columns were permuted at init to the NHWC flatten order, so the
    # PyTorch x.view(B, -1) C-major flatten is matched without a transpose.
    feats = h.reshape(B, -1)
    w6, b6 = params["fc6"]
    w7, b7 = params["fc7"]
    log_probs = fc_tail(feats, w6, b6, w7, b7)
    return log_probs, x_spike_out


if __name__ == "__main__":
    key = jax.random.PRNGKey(0)
    k_in, k_par = jax.random.split(key)
    B = 2
    x = jax.random.normal(k_in, (B, 3, 32, 32), jnp.float32)
    params = init_params(k_par)

    fwd = jax.jit(salexnet_forward)
    log_probs, conv1_spikes = fwd(params, x)
    jax.block_until_ready((log_probs, conv1_spikes))

    assert log_probs.shape == (B, NUM_CLASSES)
    assert conv1_spikes.shape == (B, T_ENCODE, CONV_CH[0], 16, 16)
    assert bool(jnp.isfinite(log_probs).all())
    print("KERNEL_OK")
</pallas_src>

<mosaic_0001>
module attributes {stable_mosaic.version = 11 : i64} {
  func.func @_conv1_hybrid_kernel(%arg0: i32, %arg1: memref<512x27xbf16, #tpu.memory_space<vmem>>, %arg2: memref<27x16xbf16, #tpu.memory_space<vmem>>, %arg3: memref<1x16xf32, #tpu.memory_space<vmem>>, %arg4: memref<512x16xbf16, #tpu.memory_space<vmem>>, %arg5: memref<4x512x16xf32, #tpu.memory_space<vmem>>) attributes {dimension_semantics = [#tpu.dimension_semantics<arbitrary>], iteration_bounds = array<i64: 1>, scalar_prefetch = 0 : i64, scratch_operands = 0 : i64, tpu.core_type = #tpu.core_type<tc>, window_params = [{transform_indices = @transform_0, window_bounds = array<i64: 512, 27>}, {pipeline_mode = #tpu.pipeline_mode<synchronous>, transform_indices = @transform_1, window_bounds = array<i64: 27, 16>}, {pipeline_mode = #tpu.pipeline_mode<synchronous>, transform_indices = @transform_2, window_bounds = array<i64: 1, 16>}, {transform_indices = @transform_3, window_bounds = array<i64: 512, 16>}, {transform_indices = @transform_4, window_bounds = array<i64: 4, 512, 16>}]} {
    %c0 = arith.constant 0 : index
    %c0_0 = arith.constant 0 : index
    %0 = vector.load %arg3[%c0, %c0_0] : memref<1x16xf32, #tpu.memory_space<vmem>>, vector<1x16xf32>
    %c0_1 = arith.constant 0 : index
    %c0_2 = arith.constant 0 : index
    %1 = vector.load %arg1[%c0_1, %c0_2] : memref<512x27xbf16, #tpu.memory_space<vmem>>, vector<512x27xbf16>
    %c0_3 = arith.constant 0 : index
    %c0_4 = arith.constant 0 : index
    %2 = vector.load %arg2[%c0_3, %c0_4] : memref<27x16xbf16, #tpu.memory_space<vmem>>, vector<27x16xbf16>
    %cst = arith.constant dense<0.000000e+00> : vector<512x16xf32>
    %3 = tpu.matmul %1, %2, %cst {dimension_numbers = #tpu.dot_dimension_numbers<[1], [0], [0], [1], [0, 0, 1, 1], [], []>} : vector<512x27xbf16>, vector<27x16xbf16>, vector<512x16xf32> -> vector<512x16xf32>
    %4 = vector.broadcast %0 : vector<1x16xf32> to vector<512x16xf32>
    %5 = arith.addf %3, %4 : vector<512x16xf32>
    %cst_5 = arith.constant 0.000000e+00 : f32
    %6 = vector.broadcast %cst_5 : f32 to vector<512x16xf32>
    %7 = arith.maximumf %5, %6 : vector<512x16xf32>
    %8 = arith.truncf %7 : vector<512x16xf32> to vector<512x16xbf16>
    %c0_6 = arith.constant 0 : index
    %c0_7 = arith.constant 0 : index
    %9 = vector.load %arg4[%c0_6, %c0_7] : memref<512x16xbf16, #tpu.memory_space<vmem>>, vector<512x16xbf16>
    tpu.vector_store %arg4[%c0_6, %c0_7], %8 {strides = array<i32>} : memref<512x16xbf16, #tpu.memory_space<vmem>>, vector<512x16xbf16>,
    %cst_8 = arith.constant 0.000000e+00 : f32
    %10 = vector.broadcast %cst_8 : f32 to vector<512x16xf32>
    %11 = arith.addf %10, %5 : vector<512x16xf32>
    %cst_9 = arith.constant 1.000000e+00 : f32
    %12 = vector.broadcast %cst_9 : f32 to vector<512x16xf32>
    %13 = arith.cmpf oge, %11, %12 : vector<512x16xf32>
    %14 = arith.extui %13 : vector<512x16xi1> to vector<512x16xi32>
    %15 = arith.sitofp %14 : vector<512x16xi32> to vector<512x16xf32>
    %c0_10 = arith.constant 0 : index
    %c0_11 = arith.constant 0 : index
    %c0_12 = arith.constant 0 : index
    %16 = vector.load %arg5[%c0_10, %c0_11, %c0_12] : memref<4x512x16xf32, #tpu.memory_space<vmem>>, vector<1x512x16xf32>
    %17 = vector.shape_cast %16 : vector<1x512x16xf32> to vector<512x16xf32>
    %18 = vector.shape_cast %15 : vector<512x16xf32> to vector<1x512x16xf32>
    tpu.vector_store %arg5[%c0_10, %c0_11, %c0_12], %18 {strides = array<i32>} : memref<4x512x16xf32, #tpu.memory_space<vmem>>, vector<1x512x16xf32>,
    %cst_13 = arith.constant 1.000000e+00 : f32
    %19 = vector.broadcast %cst_13 : f32 to vector<512x16xf32>
    %20 = arith.mulf %15, %19 : vector<512x16xf32>
    %21 = arith.subf %11, %20 : vector<512x16xf32>
    %22 = vector.broadcast %0 : vector<1x16xf32> to vector<512x16xf32>
    %23 = arith.addf %21, %22 : vector<512x16xf32>
    %cst_14 = arith.constant 1.000000e+00 : f32
    %24 = vector.broadcast %cst_14 : f32 to vector<512x16xf32>
    %25 = arith.cmpf oge, %23, %24 : vector<512x16xf32>
    %26 = arith.extui %25 : vector<512x16xi1> to vector<512x16xi32>
    %27 = arith.sitofp %26 : vector<512x16xi32> to vector<512x16xf32>
    %c1 = arith.constant 1 : index
    %c0_15 = arith.constant 0 : index
    %c0_16 = arith.constant 0 : index
    %28 = vector.load %arg5[%c1, %c0_15, %c0_16] : memref<4x512x16xf32, #tpu.memory_space<vmem>>, vector<1x512x16xf32>
    %29 = vector.shape_cast %28 : vector<1x512x16xf32> to vector<512x16xf32>
    %30 = vector.shape_cast %27 : vector<512x16xf32> to vector<1x512x16xf32>
    tpu.vector_store %arg5[%c1, %c0_15, %c0_16], %30 {strides = array<i32>} : memref<4x512x16xf32, #tpu.memory_space<vmem>>, vector<1x512x16xf32>,
    %cst_17 = arith.constant 1.000000e+00 : f32
    %31 = vector.broadcast %cst_17 : f32 to vector<512x16xf32>
    %32 = arith.mulf %27, %31 : vector<512x16xf32>
    %33 = arith.subf %23, %32 : vector<512x16xf32>
    %34 = vector.broadcast %0 : vector<1x16xf32> to vector<512x16xf32>
    %35 = arith.addf %33, %34 : vector<512x16xf32>
    %cst_18 = arith.constant 1.000000e+00 : f32
    %36 = vector.broadcast %cst_18 : f32 to vector<512x16xf32>
    %37 = arith.cmpf oge, %35, %36 : vector<512x16xf32>
    %38 = arith.extui %37 : vector<512x16xi1> to vector<512x16xi32>
    %39 = arith.sitofp %38 : vector<512x16xi32> to vector<512x16xf32>
    %c2 = arith.constant 2 : index
    %c0_19 = arith.constant 0 : index
    %c0_20 = arith.constant 0 : index
    %40 = vector.load %arg5[%c2, %c0_19, %c0_20] : memref<4x512x16xf32, #tpu.memory_space<vmem>>, vector<1x512x16xf32>
    %41 = vector.shape_cast %40 : vector<1x512x16xf32> to vector<512x16xf32>
    %42 = vector.shape_cast %39 : vector<512x16xf32> to vector<1x512x16xf32>
    tpu.vector_store %arg5[%c2, %c0_19, %c0_20], %42 {strides = array<i32>} : memref<4x512x16xf32, #tpu.memory_space<vmem>>, vector<1x512x16xf32>,
    %cst_21 = arith.constant 1.000000e+00 : f32
    %43 = vector.broadcast %cst_21 : f32 to vector<512x16xf32>
    %44 = arith.mulf %39, %43 : vector<512x16xf32>
    %45 = arith.subf %35, %44 : vector<512x16xf32>
    %46 = vector.broadcast %0 : vector<1x16xf32> to vector<512x16xf32>
    %47 = arith.addf %45, %46 : vector<512x16xf32>
    %cst_22 = arith.constant 1.000000e+00 : f32
    %48 = vector.broadcast %cst_22 : f32 to vector<512x16xf32>
    %49 = arith.cmpf oge, %47, %48 : vector<512x16xf32>
    %50 = arith.extui %49 : vector<512x16xi1> to vector<512x16xi32>
    %51 = arith.sitofp %50 : vector<512x16xi32> to vector<512x16xf32>
    %c3 = arith.constant 3 : index
    %c0_23 = arith.constant 0 : index
    %c0_24 = arith.constant 0 : index
    %52 = vector.load %arg5[%c3, %c0_23, %c0_24] : memref<4x512x16xf32, #tpu.memory_space<vmem>>, vector<1x512x16xf32>
    %53 = vector.shape_cast %52 : vector<1x512x16xf32> to vector<512x16xf32>
    %54 = vector.shape_cast %51 : vector<512x16xf32> to vector<1x512x16xf32>
    tpu.vector_store %arg5[%c3, %c0_23, %c0_24], %54 {strides = array<i32>} : memref<4x512x16xf32, #tpu.memory_space<vmem>>, vector<1x512x16xf32>,
    return
  }
  func.func @transform_0(%arg0: i32) -> (i32, i32) {
    %c0_i32 = arith.constant 0 : i32
    %c0_i32_0 = arith.constant 0 : i32
    return %arg0, %c0_i32 : i32, i32
  }
  func.func @transform_1(%arg0: i32) -> (i32, i32) {
    %c0_i32 = arith.constant 0 : i32
    %c0_i32_0 = arith.constant 0 : i32
    %c0_i32_1 = arith.constant 0 : i32
    return %c0_i32, %c0_i32_0 : i32, i32
  }
  func.func @transform_2(%arg0: i32) -> (i32, i32) {
    %c0_i32 = arith.constant 0 : i32
    %c0_i32_0 = arith.constant 0 : i32
    %c0_i32_1 = arith.constant 0 : i32
    return %c0_i32, %c0_i32_0 : i32, i32
  }
  func.func @transform_3(%arg0: i32) -> (i32, i32) {
    %c0_i32 = arith.constant 0 : i32
    %c0_i32_0 = arith.constant 0 : i32
    return %arg0, %c0_i32 : i32, i32
  }
  func.func @transform_4(%arg0: i32) -> (i32, i32, i32) {
    %c0_i32 = arith.constant 0 : i32
    %c0_i32_0 = arith.constant 0 : i32
    %c0_i32_1 = arith.constant 0 : i32
    return %c0_i32, %arg0, %c0_i32_0 : i32, i32, i32
  }
}

module attributes {stable_mosaic.version = 11 : i64} {
  func.func @_mm_bias_relu_kernel(%arg0: i32, %arg1: memref<128x144xbf16, #tpu.memory_space<vmem>>, %arg2: memref<144x32xbf16, #tpu.memory_space<vmem>>, %arg3: memref<1x32xf32, #tpu.memory_space<vmem>>, %arg4: memref<128x32xbf16, #tpu.memory_space<vmem>>) attributes {dimension_semantics = [#tpu.dimension_semantics<arbitrary>], iteration_bounds = array<i64: 1>, scalar_prefetch = 0 : i64, scratch_operands = 0 : i64, tpu.core_type = #tpu.core_type<tc>, window_params = [{transform_indices = @transform_0, window_bounds = array<i64: 128, 144>}, {pipeline_mode = #tpu.pipeline_mode<synchronous>, transform_indices = @transform_1, window_bounds = array<i64: 144, 32>}, {pipeline_mode = #tpu.pipeline_mode<synchronous>, transform_indices = @transform_2, window_bounds = array<i64: 1, 32>}, {transform_indices = @transform_3, window_bounds = array<i64: 128, 32>}]} {
    %c0 = arith.constant 0 : index
    %c0_0 = arith.constant 0 : index
    %0 = vector.load %arg1[%c0, %c0_0] : memref<128x144xbf16, #tpu.memory_space<vmem>>, vector<128x144xbf16>
    %c0_1 = arith.constant 0 : index
    %c0_2 = arith.constant 0 : index
    %1 = vector.load %arg2[%c0_1, %c0_2] : memref<144x32xbf16, #tpu.memory_space<vmem>>, vector<144x32xbf16>
    %cst = arith.constant dense<0.000000e+00> : vector<128x32xf32>
    %2 = tpu.matmul %0, %1, %cst {dimension_numbers = #tpu.dot_dimension_numbers<[1], [0], [0], [1], [0, 0, 1, 1], [], []>} : vector<128x144xbf16>, vector<144x32xbf16>, vector<128x32xf32> -> vector<128x32xf32>
    %c0_3 = arith.constant 0 : index
    %c0_4 = arith.constant 0 : index
    %3 = vector.load %arg3[%c0_3, %c0_4] : memref<1x32xf32, #tpu.memory_space<vmem>>, vector<1x32xf32>
    %4 = vector.broadcast %3 : vector<1x32xf32> to vector<128x32xf32>
    %5 = arith.addf %2, %4 : vector<128x32xf32>
    %cst_5 = arith.constant 0.000000e+00 : f32
    %6 = vector.broadcast %cst_5 : f32 to vector<128x32xf32>
    %7 = arith.maximumf %5, %6 : vector<128x32xf32>
    %8 = arith.truncf %7 : vector<128x32xf32> to vector<128x32xbf16>
    %c0_6 = arith.constant 0 : index
    %c0_7 = arith.constant 0 : index
    %9 = vector.load %arg4[%c0_6, %c0_7] : memref<128x32xbf16, #tpu.memory_space<vmem>>, vector<128x32xbf16>
    tpu.vector_store %arg4[%c0_6, %c0_7], %8 {strides = array<i32>} : memref<128x32xbf16, #tpu.memory_space<vmem>>, vector<128x32xbf16>,
    return
  }
  func.func @transform_0(%arg0: i32) -> (i32, i32) {
    %c0_i32 = arith.constant 0 : i32
    %c0_i32_0 = arith.constant 0 : i32
    return %arg0, %c0_i32 : i32, i32
  }
  func.func @transform_1(%arg0: i32) -> (i32, i32) {
    %c0_i32 = arith.constant 0 : i32
    %c0_i32_0 = arith.constant 0 : i32
    %c0_i32_1 = arith.constant 0 : i32
    return %c0_i32, %c0_i32_0 : i32, i32
  }
  func.func @transform_2(%arg0: i32) -> (i32, i32) {
    %c0_i32 = arith.constant 0 : i32
    %c0_i32_0 = arith.constant 0 : i32
    %c0_i32_1 = arith.constant 0 : i32
    return %c0_i32, %c0_i32_0 : i32, i32
  }
  func.func @transform_3(%arg0: i32) -> (i32, i32) {
    %c0_i32 = arith.constant 0 : i32
    %c0_i32_0 = arith.constant 0 : i32
    return %arg0, %c0_i32 : i32, i32
  }
}

module attributes {stable_mosaic.version = 11 : i64} {
  func.func @_mm_bias_relu_kernel(%arg0: i32, %arg1: memref<32x288xbf16, #tpu.memory_space<vmem>>, %arg2: memref<288x32xbf16, #tpu.memory_space<vmem>>, %arg3: memref<1x32xf32, #tpu.memory_space<vmem>>, %arg4: memref<32x32xbf16, #tpu.memory_space<vmem>>) attributes {dimension_semantics = [#tpu.dimension_semantics<arbitrary>], iteration_bounds = array<i64: 1>, scalar_prefetch = 0 : i64, scratch_operands = 0 : i64, tpu.core_type = #tpu.core_type<tc>, window_params = [{transform_indices = @transform_0, window_bounds = array<i64: 32, 288>}, {pipeline_mode = #tpu.pipeline_mode<synchronous>, transform_indices = @transform_1, window_bounds = array<i64: 288, 32>}, {pipeline_mode = #tpu.pipeline_mode<synchronous>, transform_indices = @transform_2, window_bounds = array<i64: 1, 32>}, {transform_indices = @transform_3, window_bounds = array<i64: 32, 32>}]} {
    %c0 = arith.constant 0 : index
    %c0_0 = arith.constant 0 : index
    %0 = vector.load %arg1[%c0, %c0_0] : memref<32x288xbf16, #tpu.memory_space<vmem>>, vector<32x288xbf16>
    %c0_1 = arith.constant 0 : index
    %c0_2 = arith.constant 0 : index
    %1 = vector.load %arg2[%c0_1, %c0_2] : memref<288x32xbf16, #tpu.memory_space<vmem>>, vector<288x32xbf16>
    %cst = arith.constant dense<0.000000e+00> : vector<32x32xf32>
    %2 = tpu.matmul %0, %1, %cst {dimension_numbers = #tpu.dot_dimension_numbers<[1], [0], [0], [1], [0, 0, 1, 1], [], []>} : vector<32x288xbf16>, vector<288x32xbf16>, vector<32x32xf32> -> vector<32x32xf32>
    %c0_3 = arith.constant 0 : index
    %c0_4 = arith.constant 0 : index
    %3 = vector.load %arg3[%c0_3, %c0_4] : memref<1x32xf32, #tpu.memory_space<vmem>>, vector<1x32xf32>
    %4 = vector.broadcast %3 : vector<1x32xf32> to vector<32x32xf32>
    %5 = arith.addf %2, %4 : vector<32x32xf32>
    %cst_5 = arith.constant 0.000000e+00 : f32
    %6 = vector.broadcast %cst_5 : f32 to vector<32x32xf32>
    %7 = arith.maximumf %5, %6 : vector<32x32xf32>
    %8 = arith.truncf %7 : vector<32x32xf32> to vector<32x32xbf16>
    %c0_6 = arith.constant 0 : index
    %c0_7 = arith.constant 0 : index
    %9 = vector.load %arg4[%c0_6, %c0_7] : memref<32x32xbf16, #tpu.memory_space<vmem>>, vector<32x32xbf16>
    tpu.vector_store %arg4[%c0_6, %c0_7], %8 {strides = array<i32>} : memref<32x32xbf16, #tpu.memory_space<vmem>>, vector<32x32xbf16>,
    return
  }
  func.func @transform_0(%arg0: i32) -> (i32, i32) {
    %c0_i32 = arith.constant 0 : i32
    %c0_i32_0 = arith.constant 0 : i32
    return %arg0, %c0_i32 : i32, i32
  }
  func.func @transform_1(%arg0: i32) -> (i32, i32) {
    %c0_i32 = arith.constant 0 : i32
    %c0_i32_0 = arith.constant 0 : i32
    %c0_i32_1 = arith.constant 0 : i32
    return %c0_i32, %c0_i32_0 : i32, i32
  }
  func.func @transform_2(%arg0: i32) -> (i32, i32) {
    %c0_i32 = arith.constant 0 : i32
    %c0_i32_0 = arith.constant 0 : i32
    %c0_i32_1 = arith.constant 0 : i32
    return %c0_i32, %c0_i32_0 : i32, i32
  }
  func.func @transform_3(%arg0: i32) -> (i32, i32) {
    %c0_i32 = arith.constant 0 : i32
    %c0_i32_0 = arith.constant 0 : i32
    return %arg0, %c0_i32 : i32, i32
  }
}

module attributes {stable_mosaic.version = 11 : i64} {
  func.func @_mm_bias_relu_kernel(%arg0: i32, %arg1: memref<32x288xbf16, #tpu.memory_space<vmem>>, %arg2: memref<288x16xbf16, #tpu.memory_space<vmem>>, %arg3: memref<1x16xf32, #tpu.memory_space<vmem>>, %arg4: memref<32x16xbf16, #tpu.memory_space<vmem>>) attributes {dimension_semantics = [#tpu.dimension_semantics<arbitrary>], iteration_bounds = array<i64: 1>, scalar_prefetch = 0 : i64, scratch_operands = 0 : i64, tpu.core_type = #tpu.core_type<tc>, window_params = [{transform_indices = @transform_0, window_bounds = array<i64: 32, 288>}, {pipeline_mode = #tpu.pipeline_mode<synchronous>, transform_indices = @transform_1, window_bounds = array<i64: 288, 16>}, {pipeline_mode = #tpu.pipeline_mode<synchronous>, transform_indices = @transform_2, window_bounds = array<i64: 1, 16>}, {transform_indices = @transform_3, window_bounds = array<i64: 32, 16>}]} {
    %c0 = arith.constant 0 : index
    %c0_0 = arith.constant 0 : index
    %0 = vector.load %arg1[%c0, %c0_0] : memref<32x288xbf16, #tpu.memory_space<vmem>>, vector<32x288xbf16>
    %c0_1 = arith.constant 0 : index
    %c0_2 = arith.constant 0 : index
    %1 = vector.load %arg2[%c0_1, %c0_2] : memref<288x16xbf16, #tpu.memory_space<vmem>>, vector<288x16xbf16>
    %cst = arith.constant dense<0.000000e+00> : vector<32x16xf32>
    %2 = tpu.matmul %0, %1, %cst {dimension_numbers = #tpu.dot_dimension_numbers<[1], [0], [0], [1], [0, 0, 1, 1], [], []>} : vector<32x288xbf16>, vector<288x16xbf16>, vector<32x16xf32> -> vector<32x16xf32>
    %c0_3 = arith.constant 0 : index
    %c0_4 = arith.constant 0 : index
    %3 = vector.load %arg3[%c0_3, %c0_4] : memref<1x16xf32, #tpu.memory_space<vmem>>, vector<1x16xf32>
    %4 = vector.broadcast %3 : vector<1x16xf32> to vector<32x16xf32>
    %5 = arith.addf %2, %4 : vector<32x16xf32>
    %cst_5 = arith.constant 0.000000e+00 : f32
    %6 = vector.broadcast %cst_5 : f32 to vector<32x16xf32>
    %7 = arith.maximumf %5, %6 : vector<32x16xf32>
    %8 = arith.truncf %7 : vector<32x16xf32> to vector<32x16xbf16>
    %c0_6 = arith.constant 0 : index
    %c0_7 = arith.constant 0 : index
    %9 = vector.load %arg4[%c0_6, %c0_7] : memref<32x16xbf16, #tpu.memory_space<vmem>>, vector<32x16xbf16>
    tpu.vector_store %arg4[%c0_6, %c0_7], %8 {strides = array<i32>} : memref<32x16xbf16, #tpu.memory_space<vmem>>, vector<32x16xbf16>,
    return
  }
  func.func @transform_0(%arg0: i32) -> (i32, i32) {
    %c0_i32 = arith.constant 0 : i32
    %c0_i32_0 = arith.constant 0 : i32
    return %arg0, %c0_i32 : i32, i32
  }
  func.func @transform_1(%arg0: i32) -> (i32, i32) {
    %c0_i32 = arith.constant 0 : i32
    %c0_i32_0 = arith.constant 0 : i32
    %c0_i32_1 = arith.constant 0 : i32
    return %c0_i32, %c0_i32_0 : i32, i32
  }
  func.func @transform_2(%arg0: i32) -> (i32, i32) {
    %c0_i32 = arith.constant 0 : i32
    %c0_i32_0 = arith.constant 0 : i32
    %c0_i32_1 = arith.constant 0 : i32
    return %c0_i32, %c0_i32_0 : i32, i32
  }
  func.func @transform_3(%arg0: i32) -> (i32, i32) {
    %c0_i32 = arith.constant 0 : i32
    %c0_i32_0 = arith.constant 0 : i32
    return %arg0, %c0_i32 : i32, i32
  }
}

module attributes {stable_mosaic.version = 11 : i64} {
  func.func @_fc_tail_kernel(%arg0: i32, %arg1: memref<2x256xbf16, #tpu.memory_space<vmem>>, %arg2: memref<256x64xbf16, #tpu.memory_space<vmem>>, %arg3: memref<1x64xf32, #tpu.memory_space<vmem>>, %arg4: memref<64x10xbf16, #tpu.memory_space<vmem>>, %arg5: memref<1x10xf32, #tpu.memory_space<vmem>>, %arg6: memref<2x10xf32, #tpu.memory_space<vmem>>) attributes {dimension_semantics = [#tpu.dimension_semantics<arbitrary>], iteration_bounds = array<i64: 1>, scalar_prefetch = 0 : i64, scratch_operands = 0 : i64, tpu.core_type = #tpu.core_type<tc>, window_params = [{pipeline_mode = #tpu.pipeline_mode<synchronous>, transform_indices = @transform_0, window_bounds = array<i64: 2, 256>}, {pipeline_mode = #tpu.pipeline_mode<synchronous>, transform_indices = @transform_1, window_bounds = array<i64: 256, 64>}, {pipeline_mode = #tpu.pipeline_mode<synchronous>, transform_indices = @transform_2, window_bounds = array<i64: 1, 64>}, {pipeline_mode = #tpu.pipeline_mode<synchronous>, transform_indices = @transform_3, window_bounds = array<i64: 64, 10>}, {pipeline_mode = #tpu.pipeline_mode<synchronous>, transform_indices = @transform_4, window_bounds = array<i64: 1, 10>}, {pipeline_mode = #tpu.pipeline_mode<synchronous>, transform_indices = @transform_5, window_bounds = array<i64: 2, 10>}]} {
    %c0 = arith.constant 0 : index
    %c0_0 = arith.constant 0 : index
    %0 = vector.load %arg1[%c0, %c0_0] : memref<2x256xbf16, #tpu.memory_space<vmem>>, vector<2x256xbf16>
    %c0_1 = arith.constant 0 : index
    %c0_2 = arith.constant 0 : index
    %1 = vector.load %arg2[%c0_1, %c0_2] : memref<256x64xbf16, #tpu.memory_space<vmem>>, vector<256x64xbf16>
    %cst = arith.constant dense<0.000000e+00> : vector<2x64xf32>
    %2 = tpu.matmul %0, %1, %cst {dimension_numbers = #tpu.dot_dimension_numbers<[1], [0], [0], [1], [0, 0, 1, 1], [], []>} : vector<2x256xbf16>, vector<256x64xbf16>, vector<2x64xf32> -> vector<2x64xf32>
    %c0_3 = arith.constant 0 : index
    %c0_4 = arith.constant 0 : index
    %3 = vector.load %arg3[%c0_3, %c0_4] : memref<1x64xf32, #tpu.memory_space<vmem>>, vector<1x64xf32>
    %4 = vector.broadcast %3 : vector<1x64xf32> to vector<2x64xf32>
    %5 = arith.addf %2, %4 : vector<2x64xf32>
    %cst_5 = arith.constant 0.000000e+00 : f32
    %6 = vector.broadcast %cst_5 : f32 to vector<2x64xf32>
    %7 = arith.maximumf %5, %6 : vector<2x64xf32>
    %8 = arith.truncf %7 : vector<2x64xf32> to vector<2x64xbf16>
    %c0_6 = arith.constant 0 : index
    %c0_7 = arith.constant 0 : index
    %9 = vector.load %arg4[%c0_6, %c0_7] : memref<64x10xbf16, #tpu.memory_space<vmem>>, vector<64x10xbf16>
    %cst_8 = arith.constant dense<0.000000e+00> : vector<2x10xf32>
    %10 = tpu.matmul %8, %9, %cst_8 {dimension_numbers = #tpu.dot_dimension_numbers<[1], [0], [0], [1], [0, 0, 1, 1], [], []>} : vector<2x64xbf16>, vector<64x10xbf16>, vector<2x10xf32> -> vector<2x10xf32>
    %c0_9 = arith.constant 0 : index
    %c0_10 = arith.constant 0 : index
    %11 = vector.load %arg5[%c0_9, %c0_10] : memref<1x10xf32, #tpu.memory_space<vmem>>, vector<1x10xf32>
    %12 = vector.broadcast %11 : vector<1x10xf32> to vector<2x10xf32>
    %13 = arith.addf %10, %12 : vector<2x10xf32>
    %cst_11 = arith.constant dense<0xFF800000> : vector<2xf32>
    %14 = vector.multi_reduction <maximumf>, %13, %cst_11 [1] : vector<2x10xf32> to vector<2xf32>
    %15 = vector.shape_cast %14 : vector<2xf32> to vector<2x1xf32>
    %16 = vector.broadcast %15 : vector<2x1xf32> to vector<2x10xf32>
    %17 = arith.subf %13, %16 : vector<2x10xf32>
    %18 = math.exp %17 : vector<2x10xf32>
    %cst_12 = arith.constant dense<0.000000e+00> : vector<2xf32>
    %19 = vector.multi_reduction <add>, %18, %cst_12 [1] : vector<2x10xf32> to vector<2xf32>
    %20 = vector.shape_cast %19 : vector<2xf32> to vector<2x1xf32>
    %21 = math.log %20 : vector<2x1xf32>
    %22 = vector.broadcast %21 : vector<2x1xf32> to vector<2x10xf32>
    %23 = arith.subf %17, %22 : vector<2x10xf32>
    %c0_13 = arith.constant 0 : index
    %c0_14 = arith.constant 0 : index
    %24 = vector.load %arg6[%c0_13, %c0_14] : memref<2x10xf32, #tpu.memory_space<vmem>>, vector<2x10xf32>
    tpu.vector_store %arg6[%c0_13, %c0_14], %23 {strides = array<i32>} : memref<2x10xf32, #tpu.memory_space<vmem>>, vector<2x10xf32>,
    return
  }
  func.func @transform_0(%arg0: i32) -> (i32, i32) {
    %c0_i32 = arith.constant 0 : i32
    %c0_i32_0 = arith.constant 0 : i32
    %c0_i32_1 = arith.constant 0 : i32
    return %c0_i32, %c0_i32_0 : i32, i32
  }
  func.func @transform_1(%arg0: i32) -> (i32, i32) {
    %c0_i32 = arith.constant 0 : i32
    %c0_i32_0 = arith.constant 0 : i32
    %c0_i32_1 = arith.constant 0 : i32
    return %c0_i32, %c0_i32_0 : i32, i32
  }
  func.func @transform_2(%arg0: i32) -> (i32, i32) {
    %c0_i32 = arith.constant 0 : i32
    %c0_i32_0 = arith.constant 0 : i32
    %c0_i32_1 = arith.constant 0 : i32
    return %c0_i32, %c0_i32_0 : i32, i32
  }
  func.func @transform_3(%arg0: i32) -> (i32, i32) {
    %c0_i32 = arith.constant 0 : i32
    %c0_i32_0 = arith.constant 0 : i32
    %c0_i32_1 = arith.constant 0 : i32
    return %c0_i32, %c0_i32_0 : i32, i32
  }
  func.func @transform_4(%arg0: i32) -> (i32, i32) {
    %c0_i32 = arith.constant 0 : i32
    %c0_i32_0 = arith.constant 0 : i32
    %c0_i32_1 = arith.constant 0 : i32
    return %c0_i32, %c0_i32_0 : i32, i32
  }
  func.func @transform_5(%arg0: i32) -> (i32, i32) {
    %c0_i32 = arith.constant 0 : i32
    %c0_i32_0 = arith.constant 0 : i32
    %c0_i32_1 = arith.constant 0 : i32
    return %c0_i32, %c0_i32_0 : i32, i32
  }
}

</mosaic_0001>

<bundles_post_ra>
// kernel: salexnet_forward.7
= control target key start
LH: loop header
LB: loop body
LE: loop exit
PB: predicated region body
PF: predicated region fallthrough
CT: control target
= control target key end

     0   :  { %v523_v0 = vmov 0   ;;  %vm182_vm0 = vcmask 130048   ;;  %vm384_vm1 = vcmask 257024   ;;  %s712_s1 = inlined_call_operand.vmem [shape: bf16[144,32], index: 1, kind: input, shape index: {}]   ;;  %s713_s0 = inlined_call_operand.vmem [shape: bf16[128,144], index: 0, kind: input, shape index: {}]   ;;  %s714_s2 = inlined_call_operand.vmem [shape: f32[1,32], index: 2, kind: input, shape index: {}]   ;;  %s715_s3 = inlined_call_operand.vmem [shape: bf16[128,32], index: 3, kind: output, shape index: {}]  }
   0x1   :  { %207 = vmatprep.subr.bf16.mxu0 %v523_v0  ;;  %471 = vmatprep.subr.bf16.mxu1 %v523_v0  ;;  %v490_v1 = vld [vmem:[%s712_s1] sm:$0xff]   ;;  %v491_v2 = vld [vmem:[%s712_s1 + $0x8] sm:$0xff]   ;;  %v492_v3 = vld [vmem:[%s712_s1 + $0x10] sm:$0xff]  }
   0x2   :  { %208 = vmatpush1.bf16.msra.mxu0 %v490_v1  ;;  %480 = vmatpush1.bf16.msra.mxu1 %v490_v1  ;;  %v493_v4 = vld [vmem:[%s712_s1 + $0x18] sm:$0xff]   ;;  %v501_v5 = vld [vmem:[%s713_s0 + $0x4] ss:$8 sps:$4 sm:$0xff]   ;;  %v496_v9 = vld [vmem:[%s712_s1 + $0x30] sm:$0xff]  }
   0x3   :  { %209 = vmatprep.subr.bf16.mxu0 %v523_v0  ;;  %472 = vmatprep.subr.bf16.mxu1 %v523_v0  ;;  %v504_v6 = vld [vmem:[%s713_s0 + $0x44] ss:$8 sps:$4 sm:$0xff]   ;;  %v497_v10 = vld [vmem:[%s712_s1 + $0x38] sm:$0xff]   ;;  %v499_v12 = vld [vmem:[%s713_s0] ss:$8 sps:$4 sm:$0xff]  }
   0x4   :  { %431 = vmatprep.mubr.msk.bf16.mxu0 %vm182_vm0, %v501_v5  ;;  %435 = vmatprep.mubr.msk.bf16.mxu1 %vm182_vm0, %v504_v6  ;;  %v494_v7 = vld [vmem:[%s712_s1 + $0x20] sm:$0xff]   ;;  %v495_v8 = vld [vmem:[%s712_s1 + $0x28] sm:$0xff]   ;;  %v505_v14 = vld [vmem:[%s713_s0 + $0x14] ss:$8 sps:$4 sm:$0xff]  }
   0x5   :  { %v498_v11 = vld [vmem:[%s712_s1 + $0x40] sm:$0xff]   ;;  %v507_v15 = vld [vmem:[%s713_s0 + $0x54] ss:$8 sps:$4 sm:$0xff]   ;;  %v509_v16 = vld [vmem:[%s713_s0 + $0x10] ss:$8 sps:$4 sm:$0xff]  }
   0x6   :  { %210 = vmatpush1.bf16.msra.mxu0 %v491_v2  ;;  %481 = vmatpush1.bf16.msra.mxu1 %v491_v2  ;;  %v502_v13 = vld [vmem:[%s713_s0 + $0x40] ss:$8 sps:$4 sm:$0xff]   ;;  %v510_v17 = vld [vmem:[%s713_s0 + $0x50] ss:$8 sps:$4 sm:$0xff]   ;;  %v511_v18 = vld [vmem:[%s713_s0 + $0x24] ss:$8 sps:$4 sm:$0xff]  }
   0x7   :  { %211 = vmatprep.subr.bf16.mxu0 %v523_v0  ;;  %473 = vmatprep.subr.bf16.mxu1 %v523_v0  ;;  %v513_v19 = vld [vmem:[%s713_s0 + $0x64] ss:$8 sps:$4 sm:$0xff]   ;;  %v515_v20 = vld [vmem:[%s713_s0 + $0x20] ss:$8 sps:$4 sm:$0xff]   ;;  %v517_v22 = vld [vmem:[%s713_s0 + $0x34] ss:$8 sps:$4 sm:$0xff]  }
   0x8   :  { %v516_v21 = vld [vmem:[%s713_s0 + $0x60] ss:$8 sps:$4 sm:$0xff]   ;;  %v519_v23 = vld [vmem:[%s713_s0 + $0x74] ss:$8 sps:$4 sm:$0xff]   ;;  %v521_v24 = vld [vmem:[%s713_s0 + $0x30] ss:$8 sps:$4 sm:$0xff]  }
   0x9   :  { %v522_v25 = vld [vmem:[%s713_s0 + $0x70] ss:$8 sps:$4 sm:$0xff]   ;;  %v630_v26 = vld [vmem:[%s714_s2] ss:$0 sm:$0xff] }
   0xa   :  { %212 = vmatpush1.bf16.msra.mxu0 %v492_v3  ;;  %482 = vmatpush1.bf16.msra.mxu1 %v492_v3 }
   0xb   :  { %213 = vmatprep.subr.bf16.mxu0 %v523_v0  ;;  %474 = vmatprep.subr.bf16.mxu1 %v523_v0 }
   0xe   :  { %214 = vmatpush1.bf16.msra.mxu0 %v493_v4  ;;  %483 = vmatpush1.bf16.msra.mxu1 %v493_v4 }
   0xf   :  { %215 = vmatprep.subr.bf16.mxu0 %v523_v0  ;;  %475 = vmatprep.subr.bf16.mxu1 %v523_v0 }
  0x12   :  { %216 = vmatpush1.bf16.msra.mxu0 %v494_v7  ;;  %484 = vmatpush1.bf16.msra.mxu1 %v494_v7 }
  0x13   :  { %217 = vmatprep.subr.bf16.mxu0 %v523_v0  ;;  %476 = vmatprep.subr.bf16.mxu1 %v523_v0 }
  0x16   :  { %218 = vmatpush1.bf16.msra.mxu0 %v495_v8  ;;  %485 = vmatpush1.bf16.msra.mxu1 %v495_v8 }
  0x17   :  { %219 = vmatprep.subr.bf16.mxu0 %v523_v0  ;;  %477 = vmatprep.subr.bf16.mxu1 %v523_v0 }
  0x1a   :  { %220 = vmatpush1.bf16.msra.mxu0 %v496_v9  ;;  %486 = vmatpush1.bf16.msra.mxu1 %v496_v9 }
  0x1b   :  { %221 = vmatprep.subr.bf16.mxu0 %v523_v0  ;;  %478 = vmatprep.subr.bf16.mxu1 %v523_v0 }
  0x1e   :  { %222 = vmatpush1.bf16.msra.mxu0 %v497_v10  ;;  %487 = vmatpush1.bf16.msra.mxu1 %v497_v10 }
  0x1f   :  { %223 = vmatprep.subr.bf16.mxu0 %v523_v0  ;;  %479 = vmatprep.subr.bf16.mxu1 %v523_v0 }
  0x22   :  { %224 = vmatpush1.bf16.msra.mxu0 %v498_v11  ;;  %488 = vmatpush1.bf16.msra.mxu1 %v498_v11 }
  0x25   :  { %240 = vmatmul.mubr.bf16.vlgmr.msra.gmra.mrb[0].mxu0 %v499_v12  ;;  %272 = vmatmul.mubr.bf16.vlgmr.msra.gmra.mrb[0].mxu1 %v502_v13 }
  0x26   :  { %432 = vmatprep.mubr.msk.bf16.mxu0 %vm182_vm0, %v505_v14  ;;  %436 = vmatprep.mubr.msk.bf16.mxu1 %vm182_vm0, %v507_v15 }
  0x2d   :  { %248 = vmatmul.mubr.bf16.gmra.mrb[4].mxu0 %v509_v16  ;;  %280 = vmatmul.mubr.bf16.gmra.mrb[4].mxu1 %v510_v17 }
  0x2e   :  { %433 = vmatprep.mubr.msk.bf16.mxu0 %vm182_vm0, %v511_v18  ;;  %437 = vmatprep.mubr.msk.bf16.mxu1 %vm182_vm0, %v513_v19 }
  0x35   :  { %256 = vmatmul.mubr.bf16.gmra.mrb[8].mxu0 %v515_v20  ;;  %288 = vmatmul.mubr.bf16.gmra.mrb[8].mxu1 %v516_v21 }
  0x36   :  { %434 = vmatprep.mubr.msk.bf16.mxu0 %vm182_vm0, %v517_v22  ;;  %438 = vmatprep.mubr.msk.bf16.mxu1 %vm182_vm0, %v519_v23 }
  0x3d   :  { %264 = vmatmul.mubr.bf16.gmra.mrb[12].mxu0 %v521_v24  ;;  %296 = vmatmul.mubr.bf16.gmra.mrb[12].mxu1 %v522_v25 }
  0xf8   :  { %v241_v27 = vpop.f32.mrb[0].mxu0  ;;  %v273_v28 = vpop.f32.mrb[0].mxu1 }
  0xf9   :  { %v242_v29 = vadd.f32 %v630_v26, %v241_v27  ;;  %v274_v30 = vadd.f32 %v630_v26, %v273_v28  ;;  %v243_v31 = vpop.f32.mrb[1].mxu0  ;;  %v275_v32 = vpop.f32.mrb[1].mxu1 }
  0xfa   :  { %v244_v33 = vpop.f32.mrb[2].mxu0  ;;  %v276_v34 = vpop.f32.mrb[2].mxu1 }
  0xfb   :  { %v304_v35 = vmax.f32 %v242_v29, 0.0  ;;  %v312_v36 = vmax.f32 %v274_v30, 0.0  ;;  %v245_v37 = vadd.f32 %v630_v26, %v244_v33  ;;  %v277_v38 = vadd.f32 %v630_v26, %v276_v34  ;;  %v246_v39 = vpop.f32.mrb[3].mxu0  ;;  %v278_v40 = vpop.f32.mrb[3].mxu1 }
  0xfd   :  { %v455_v41 = vpack.c.bf16 %v304_v35, %v304_v35  ;;  %v463_v42 = vpack.c.bf16 %v312_v36, %v312_v36  ;;  %v305_v43 = vmax.f32 %v245_v37, 0.0  ;;  %v313_v44 = vmax.f32 %v277_v38, 0.0 }
  0xff   :  { %385 = vst.msk [vmem:[%s715_s3] sm:$0xf] %vm384_vm1, %v455_v41  ;;  %393 = vst.msk [vmem:[%s715_s3 + $0x20] sm:$0xf] %vm384_vm1, %v463_v42  ;;  %v456_v45 = vpack.c.bf16 %v305_v43, %v305_v43  ;;  %v464_v46 = vpack.c.bf16 %v313_v44, %v313_v44 }
 0x100   :  { %v249_v47 = vpop.f32.mrb[4].mxu0  ;;  %v281_v48 = vpop.f32.mrb[4].mxu1 }
 0x101   :  { %386 = vst.msk [vmem:[%s715_s3 + $0x4] sm:$0xf] %vm384_vm1, %v456_v45  ;;  %394 = vst.msk [vmem:[%s715_s3 + $0x24] sm:$0xf] %vm384_vm1, %v464_v46  ;;  %v250_v49 = vadd.f32 %v630_v26, %v249_v47  ;;  %v282_v50 = vadd.f32 %v630_v26, %v281_v48  ;;  %v251_v51 = vpop.f32.mrb[5].mxu0  ;;  %v283_v52 = vpop.f32.mrb[5].mxu1 }
 0x102   :  { %v252_v53 = vpop.f32.mrb[6].mxu0  ;;  %v284_v54 = vpop.f32.mrb[6].mxu1 }
 0x103   :  { %v306_v55 = vmax.f32 %v250_v49, 0.0  ;;  %v314_v56 = vmax.f32 %v282_v50, 0.0  ;;  %v253_v57 = vadd.f32 %v630_v26, %v252_v53  ;;  %v285_v58 = vadd.f32 %v630_v26, %v284_v54  ;;  %v254_v59 = vpop.f32.mrb[7].mxu0  ;;  %v286_v60 = vpop.f32.mrb[7].mxu1 }
 0x105   :  { %v457_v61 = vpack.c.bf16 %v306_v55, %v306_v55  ;;  %v465_v62 = vpack.c.bf16 %v314_v56, %v314_v56  ;;  %v307_v63 = vmax.f32 %v253_v57, 0.0  ;;  %v315_v0 = vmax.f32 %v285_v58, 0.0 }
 0x107   :  { %387 = vst.msk [vmem:[%s715_s3 + $0x8] sm:$0xf] %vm384_vm1, %v457_v61  ;;  %395 = vst.msk [vmem:[%s715_s3 + $0x28] sm:$0xf] %vm384_vm1, %v465_v62  ;;  %v458_v1 = vpack.c.bf16 %v307_v63, %v307_v63  ;;  %v466_v2 = vpack.c.bf16 %v315_v0, %v315_v0 }
 0x108   :  { %v257_v3 = vpop.f32.mrb[8].mxu0  ;;  %v289_v4 = vpop.f32.mrb[8].mxu1 }
 0x109   :  { %388 = vst.msk [vmem:[%s715_s3 + $0xc] sm:$0xf] %vm384_vm1, %v458_v1  ;;  %396 = vst.msk [vmem:[%s715_s3 + $0x2c] sm:$0xf] %vm384_vm1, %v466_v2  ;;  %v258_v5 = vadd.f32 %v630_v26, %v257_v3  ;;  %v290_v6 = vadd.f32 %v630_v26, %v289_v4  ;;  %v259_v7 = vpop.f32.mrb[9].mxu0  ;;  %v291_v8 = vpop.f32.mrb[9].mxu1 }
 0x10a   :  { %v260_v9 = vpop.f32.mrb[10].mxu0  ;;  %v292_v10 = vpop.f32.mrb[10].mxu1 }
 0x10b   :  { %v308_v11 = vmax.f32 %v258_v5, 0.0  ;;  %v316_v12 = vmax.f32 %v290_v6, 0.0  ;;  %v261_v13 = vadd.f32 %v630_v26, %v260_v9  ;;  %v293_v14 = vadd.f32 %v630_v26, %v292_v10  ;;  %v262_v15 = vpop.f32.mrb[11].mxu0  ;;  %v294_v16 = vpop.f32.mrb[11].mxu1 }
 0x10d   :  { %v459_v17 = vpack.c.bf16 %v308_v11, %v308_v11  ;;  %v467_v18 = vpack.c.bf16 %v316_v12, %v316_v12  ;;  %v309_v19 = vmax.f32 %v261_v13, 0.0  ;;  %v317_v20 = vmax.f32 %v293_v14, 0.0 }
 0x10f   :  { %389 = vst.msk [vmem:[%s715_s3 + $0x10] sm:$0xf] %vm384_vm1, %v459_v17  ;;  %397 = vst.msk [vmem:[%s715_s3 + $0x30] sm:$0xf] %vm384_vm1, %v467_v18  ;;  %v460_v21 = vpack.c.bf16 %v309_v19, %v309_v19  ;;  %v468_v22 = vpack.c.bf16 %v317_v20, %v317_v20 }
 0x110   :  { %v265_v23 = vpop.f32.mrb[12].mxu0  ;;  %v297_v24 = vpop.f32.mrb[12].mxu1 }
 0x111   :  { %390 = vst.msk [vmem:[%s715_s3 + $0x14] sm:$0xf] %vm384_vm1, %v460_v21  ;;  %398 = vst.msk [vmem:[%s715_s3 + $0x34] sm:$0xf] %vm384_vm1, %v468_v22  ;;  %v266_v25 = vadd.f32 %v630_v26, %v265_v23  ;;  %v298_v27 = vadd.f32 %v630_v26, %v297_v24  ;;  %v267_v28 = vpop.f32.mrb[13].mxu0  ;;  %v299_v29 = vpop.f32.mrb[13].mxu1 }
 0x112   :  { %v268_v30 = vpop.f32.mrb[14].mxu0  ;;  %v300_v31 = vpop.f32.mrb[14].mxu1 }
 0x113   :  { %v310_v32 = vmax.f32 %v266_v25, 0.0  ;;  %v318_v33 = vmax.f32 %v298_v27, 0.0  ;;  %v269_v34 = vadd.f32 %v630_v26, %v268_v30  ;;  %v301_v35 = vadd.f32 %v630_v26, %v300_v31  ;;  %v270_v36 = vpop.f32.mrb[15].mxu0  ;;  %v302_v37 = vpop.f32.mrb[15].mxu1 }
 0x115   :  { %v461_v38 = vpack.c.bf16 %v310_v32, %v310_v32  ;;  %v469_v39 = vpack.c.bf16 %v318_v33, %v318_v33  ;;  %v311_v40 = vmax.f32 %v269_v34, 0.0  ;;  %v319_v41 = vmax.f32 %v301_v35, 0.0 }
 0x117   :  { %391 = vst.msk [vmem:[%s715_s3 + $0x18] sm:$0xf] %vm384_vm1, %v461_v38  ;;  %399 = vst.msk [vmem:[%s715_s3 + $0x38] sm:$0xf] %vm384_vm1, %v469_v39  ;;  %v462_v42 = vpack.c.bf16 %v311_v40, %v311_v40  ;;  %v470_v43 = vpack.c.bf16 %v319_v41, %v319_v41 }
 0x119   :  { %392 = vst.msk [vmem:[%s715_s3 + $0x1c] sm:$0xf] %vm384_vm1, %v462_v42  ;;  %400 = vst.msk [vmem:[%s715_s3 + $0x3c] sm:$0xf] %vm384_vm1, %v470_v43 }

// kernel: salexnet_forward.6
= control target key start
LH: loop header
LB: loop body
LE: loop exit
PB: predicated region body
PF: predicated region fallthrough
CT: control target
= control target key end

     0   :  { %vm360_vm0 = vcmask 1044480   ;;  %vm361_vm1 = vcmask 1045504   ;;  %vm263_vm2 = vcmask 220160   ;;  %v3312_v1 = vmov 65535   ;;  %s5505_s1 = inlined_call_operand.vmem [shape: bf16[27,16], index: 1, kind: input, shape index: {}]   ;;  %s5506_s0 = inlined_call_operand.vmem [shape: bf16[512,27], index: 0, kind: input, shape index: {}]   ;;  %s5507_s2 = inlined_call_operand.vmem [shape: f32[1,16], index: 2, kind: input, shape index: {}]   ;;  %s5508_s4 = inlined_call_operand.vmem [shape: f32[4,512,16], index: 4, kind: output, shape index: {1}]   ;;  %s5509_s3 = inlined_call_operand.vmem [shape: bf16[512,16], index: 3, kind: output, shape index: {0}]  }
   0x1   :  { %v3276_v0 = vld [vmem:[%s5505_s1] sm:$0xff]   ;;  %v362_v2 = vsel %vm360_vm0, 4294967295, %v3312_v1  ;;  %v3277_v3 = vld [vmem:[%s5505_s1 + $0x8] sm:$0x3f]   ;;  %v3282_v10 = vld [vmem:[%s5506_s0 + $0x10] sm:$0xff]   ;;  %vm976_vm3 = vcmask 125952  }
   0x2   :  { %3202 = vmatprep.subr.bf16.mxu0 %v3276_v0  ;;  %3270 = vmatprep.subr.bf16.mxu1 %v3276_v0  ;;  %v363_v4 = vsel %vm361_vm1, %v362_v2, 0  ;;  %v3278_v5 = vld [vmem:[%s5506_s0] sm:$0xff]   ;;  %v3280_v8 = vld [vmem:[%s5506_s0 + $0x8] sm:$0xff]   ;;  %v3283_v11 = vld [vmem:[%s5506_s0 + $0x90] sm:$0xff]   ;;  %vm1297_vm4 = vcmask 130048   ;;  %v3313_v53 = vmov 0.0  }
   0x3   :  { %3203 = vmatpush3.bf16.msra.mxu0 %v3276_v0  ;;  %3272 = vmatpush3.bf16.msra.mxu1 %v3276_v0  ;;  %v365_v6 = vand.u32 %v3277_v3, %v363_v4  ;;  %v3279_v7 = vld [vmem:[%s5506_s0 + $0x80] sm:$0xff]   ;;  %v3281_v9 = vld [vmem:[%s5506_s0 + $0x88] sm:$0xff]   ;;  %v3284_v12 = vld [vmem:[%s5506_s0 + $0x18] sm:$0xff]  }
   0x4   :  { %3206 = vmatprep.mubr.msk.bf16.mxu0 %vm263_vm2, %v3278_v5  ;;  %3238 = vmatprep.mubr.msk.bf16.mxu1 %vm263_vm2, %v3279_v7  ;;  %v3285_v13 = vld [vmem:[%s5506_s0 + $0x98] sm:$0xff]   ;;  %v3286_v14 = vld [vmem:[%s5506_s0 + $0x20] sm:$0xff]   ;;  %v3288_v16 = vld [vmem:[%s5506_s0 + $0x28] sm:$0xff]  }
   0x5   :  { %3204 = vmatprep.subr.bf16.mxu0 %v365_v6  ;;  %3271 = vmatprep.subr.bf16.mxu1 %v365_v6  ;;  %v3287_v15 = vld [vmem:[%s5506_s0 + $0xa0] sm:$0xff]   ;;  %v3289_v17 = vld [vmem:[%s5506_s0 + $0xa8] sm:$0xff]   ;;  %v3290_v18 = vld [vmem:[%s5506_s0 + $0x30] sm:$0xff]  }
   0x6   :  { %v3291_v19 = vld [vmem:[%s5506_s0 + $0xb0] sm:$0xff]   ;;  %v3292_v20 = vld [vmem:[%s5506_s0 + $0x38] sm:$0xff]   ;;  %v3294_v22 = vld [vmem:[%s5506_s0 + $0x40] sm:$0xff]  }
   0x7   :  { %3205 = vmatpush3.bf16.msra.mxu0 %v365_v6  ;;  %3273 = vmatpush3.bf16.msra.mxu1 %v365_v6  ;;  %v3293_v21 = vld [vmem:[%s5506_s0 + $0xb8] sm:$0xff]   ;;  %v3295_v23 = vld [vmem:[%s5506_s0 + $0xc0] sm:$0xff]   ;;  %v3296_v24 = vld [vmem:[%s5506_s0 + $0x48] sm:$0xff]  }
   0x8   :  { %v3297_v25 = vld [vmem:[%s5506_s0 + $0xc8] sm:$0xff]   ;;  %v3298_v26 = vld [vmem:[%s5506_s0 + $0x50] sm:$0xff]   ;;  %v3300_v28 = vld [vmem:[%s5506_s0 + $0x58] sm:$0xff]  }
   0x9   :  { %v3299_v27 = vld [vmem:[%s5506_s0 + $0xd0] sm:$0xff]   ;;  %v3301_v29 = vld [vmem:[%s5506_s0 + $0xd8] sm:$0xff]   ;;  %v3302_v30 = vld [vmem:[%s5506_s0 + $0x60] sm:$0xff]  }
   0xa   :  { %3207 = vmatmul.mubr.msk.bf16.vlgmr.msra.gmra.mrb[0].mxu0 %vm263_vm2, %v3280_v8  ;;  %3239 = vmatmul.mubr.msk.bf16.vlgmr.msra.gmra.mrb[0].mxu1 %vm263_vm2, %v3281_v9  ;;  %v3303_v31 = vld [vmem:[%s5506_s0 + $0xe0] sm:$0xff]   ;;  %v3304_v32 = vld [vmem:[%s5506_s0 + $0x68] sm:$0xff]   ;;  %v3306_v34 = vld [vmem:[%s5506_s0 + $0x70] sm:$0xff]  }
   0xb   :  { %3210 = vmatprep.mubr.msk.bf16.mxu0 %vm263_vm2, %v3282_v10  ;;  %3242 = vmatprep.mubr.msk.bf16.mxu1 %vm263_vm2, %v3283_v11  ;;  %v3305_v33 = vld [vmem:[%s5506_s0 + $0xe8] sm:$0xff]   ;;  %v3307_v35 = vld [vmem:[%s5506_s0 + $0xf0] sm:$0xff]   ;;  %v3308_v36 = vld [vmem:[%s5506_s0 + $0x78] sm:$0xff]  }
   0xc   :  { %v3309_v37 = vld [vmem:[%s5506_s0 + $0xf8] sm:$0xff]   ;;  %v3476_v38 = vld [vmem:[%s5507_s2] ss:$0 sm:$0xff] }
  0x12   :  { %3211 = vmatmul.mubr.msk.bf16.gmra.mrb[4].mxu0 %vm263_vm2, %v3284_v12  ;;  %3243 = vmatmul.mubr.msk.bf16.gmra.mrb[4].mxu1 %vm263_vm2, %v3285_v13 }
  0x13   :  { %3214 = vmatprep.mubr.msk.bf16.mxu0 %vm263_vm2, %v3286_v14  ;;  %3246 = vmatprep.mubr.msk.bf16.mxu1 %vm263_vm2, %v3287_v15 }
  0x1a   :  { %3215 = vmatmul.mubr.msk.bf16.gmra.mrb[8].mxu0 %vm263_vm2, %v3288_v16  ;;  %3247 = vmatmul.mubr.msk.bf16.gmra.mrb[8].mxu1 %vm263_vm2, %v3289_v17 }
  0x1b   :  { %3218 = vmatprep.mubr.msk.bf16.mxu0 %vm263_vm2, %v3290_v18  ;;  %3250 = vmatprep.mubr.msk.bf16.mxu1 %vm263_vm2, %v3291_v19 }
  0x22   :  { %3219 = vmatmul.mubr.msk.bf16.gmra.mrb[12].mxu0 %vm263_vm2, %v3292_v20  ;;  %3251 = vmatmul.mubr.msk.bf16.gmra.mrb[12].mxu1 %vm263_vm2, %v3293_v21 }
  0x23   :  { %3222 = vmatprep.mubr.msk.bf16.mxu0 %vm263_vm2, %v3294_v22  ;;  %3254 = vmatprep.mubr.msk.bf16.mxu1 %vm263_vm2, %v3295_v23 }
  0x2a   :  { %3223 = vmatmul.mubr.msk.bf16.gmra.mrb[16].mxu0 %vm263_vm2, %v3296_v24  ;;  %3255 = vmatmul.mubr.msk.bf16.gmra.mrb[16].mxu1 %vm263_vm2, %v3297_v25 }
  0x2b   :  { %3226 = vmatprep.mubr.msk.bf16.mxu0 %vm263_vm2, %v3298_v26  ;;  %3258 = vmatprep.mubr.msk.bf16.mxu1 %vm263_vm2, %v3299_v27 }
  0x32   :  { %3227 = vmatmul.mubr.msk.bf16.gmra.mrb[20].mxu0 %vm263_vm2, %v3300_v28  ;;  %3259 = vmatmul.mubr.msk.bf16.gmra.mrb[20].mxu1 %vm263_vm2, %v3301_v29 }
  0x33   :  { %3230 = vmatprep.mubr.msk.bf16.mxu0 %vm263_vm2, %v3302_v30  ;;  %3262 = vmatprep.mubr.msk.bf16.mxu1 %vm263_vm2, %v3303_v31 }
  0x3a   :  { %3231 = vmatmul.mubr.msk.bf16.gmra.mrb[24].mxu0 %vm263_vm2, %v3304_v32  ;;  %3263 = vmatmul.mubr.msk.bf16.gmra.mrb[24].mxu1 %vm263_vm2, %v3305_v33 }
  0x3b   :  { %3234 = vmatprep.mubr.msk.bf16.mxu0 %vm263_vm2, %v3306_v34  ;;  %3266 = vmatprep.mubr.msk.bf16.mxu1 %vm263_vm2, %v3307_v35 }
  0x42   :  { %3235 = vmatmul.mubr.msk.bf16.gmra.mrb[28].mxu0 %vm263_vm2, %v3308_v36  ;;  %3267 = vmatmul.mubr.msk.bf16.gmra.mrb[28].mxu1 %vm263_vm2, %v3309_v37 }
  0xdd   :  { %v3208_v39 = vpop.f32.mrb[0].mxu0  ;;  %v3240_v40 = vpop.f32.mrb[0].mxu1 }
  0xde   :  { %v410_v41 = vadd.f32 %v3208_v39, %v3476_v38  ;;  %v538_v42 = vadd.f32 %v3240_v40, %v3476_v38  ;;  %v401_v43 = vpop.f32.mrb[1].mxu0  ;;  %v529_v44 = vpop.f32.mrb[1].mxu1 }
  0xdf   :  { %v402_v45 = vadd.f32 %v3476_v38, %v401_v43  ;;  %v530_v46 = vadd.f32 %v3476_v38, %v529_v44  ;;  %v3209_v47 = vpop.f32.mrb[2].mxu0  ;;  %v3241_v48 = vpop.f32.mrb[2].mxu1 }
  0xe0   :  { %v658_v49 = vmax.f32 %v410_v41, 0.0  ;;  %vm1107_vm5 = vcmp.ge.f32.partialorder %v410_v41, 1.0  ;;  %v690_v50 = vmax.f32 %v538_v42, 0.0  ;;  %vm1139_vm6 = vcmp.ge.f32.partialorder %v538_v42, 1.0  ;;  %v404_v51 = vpop.f32.mrb[3].mxu0  ;;  %v3482_v52 = vpop.f32.mrb[3].mxu1 }
  0xe1   :  { %v2658_v54 = vsel %vm1107_vm5, 1.0, %v3313_v53  ;;  %v2690_v55 = vsel %vm1139_vm6, 1.0, %v3313_v53  ;;  %v656_v56 = vmax.f32 %v402_v45, 0.0  ;;  %vm1105_vm7 = vcmp.ge.f32.partialorder %v402_v45, 1.0 }
  0xe2   :  { %v3106_v57 = vpack.c.bf16 %v658_v49, %v658_v49  ;;  %1300 = vst.msk [vmem:[%s5508_s4 + $0x10] sm:$0xff] %vm1297_vm4, %v2658_v54  ;;  %v1364_v58 = vsub.f32 %v410_v41, %v2658_v54  ;;  %v3138_v59 = vpack.c.bf16 %v690_v50, %v690_v50  ;;  %1332 = vst.msk [vmem:[%s5508_s4 + $0x110] sm:$0xff] %vm1297_vm4, %v2690_v55  ;;  %v2656_v62 = vsel %vm1105_vm7, 1.0, %v3313_v53 }
  0xe3   :  { %v1396_v60 = vsub.f32 %v538_v42, %v2690_v55  ;;  %v3104_v61 = vpack.c.bf16 %v656_v56, %v656_v56  ;;  %v688_v63 = vmax.f32 %v530_v46, 0.0  ;;  %vm1137_vm8 = vcmp.ge.f32.partialorder %v530_v46, 1.0  ;;  %1298 = vst.msk [vmem:[%s5508_s4] sm:$0xff] %vm1297_vm4, %v2656_v62 }
  0xe4   :  { %979 = vst.msk [vmem:[%s5509_s3 + $0x8] sm:$0xf] %vm976_vm3, %v3106_v57  ;;  %v1428_v0 = vadd.f32 %v3476_v38, %v1364_v58  ;;  %1011 = vst.msk [vmem:[%s5509_s3 + $0x88] sm:$0xf] %vm976_vm3, %v3138_v59  ;;  %v1362_v2 = vsub.f32 %v402_v45, %v2656_v62  ;;  %v2688_v3 = vsel %vm1137_vm8, 1.0, %v3313_v53  ;;  %v413_v6 = vadd.f32 %v3209_v47, %v3476_v38 }
  0xe5   :  { %v1460_v1 = vadd.f32 %v3476_v38, %v1396_v60  ;;  %977 = vst.msk [vmem:[%s5509_s3] sm:$0xf] %vm976_vm3, %v3104_v61  ;;  %v3136_v4 = vpack.c.bf16 %v688_v63, %v688_v63  ;;  %v1394_v5 = vsub.f32 %v530_v46, %v2688_v3  ;;  %v3520_v7 = vadd.f32 %v3241_v48, %v3476_v38  ;;  %v3522_v8 = vpop.f32.mrb[4].mxu0  ;;  %v3524_v9 = vpop.f32.mrb[4].mxu1 }
  0xe6   :  { %1330 = vst.msk [vmem:[%s5508_s4 + $0x100] sm:$0xff] %vm1297_vm4, %v2688_v3  ;;  %vm1492_vm9 = vcmp.ge.f32.partialorder %v1428_v0, 1.0  ;;  %v1426_v10 = vadd.f32 %v3476_v38, %v1362_v2  ;;  %v3528_v11 = vadd.f32 %v3476_v38, %v404_v51  ;;  %v3530_v12 = vpop.f32.mrb[5].mxu0  ;;  %v3532_v13 = vpop.f32.mrb[5].mxu1  ;;  %v659_v17 = vmax.f32 %v413_v6, 0.0 }
  0xe7   :  { %vm1524_vm10 = vcmp.ge.f32.partialorder %v1460_v1, 1.0  ;;  %v2722_v14 = vsel %vm1492_vm9, 1.0, %v3313_v53  ;;  %1009 = vst.msk [vmem:[%s5509_s3 + $0x80] sm:$0xf] %vm976_vm3, %v3136_v4  ;;  %v1458_v16 = vadd.f32 %v3476_v38, %v1394_v5  ;;  %v3541_v18 = vpop.f32.mrb[6].mxu0  ;;  %v3543_v19 = vpop.f32.mrb[6].mxu1 }
  0xe8   :  { %v2754_v15 = vsel %vm1524_vm10, 1.0, %v3313_v53  ;;  %2786 = vst.msk [vmem:[%s5508_s4 + $0x210] sm:$0xff] %vm1297_vm4, %v2722_v14  ;;  %v1749_v20 = vsub.f32 %v1428_v0, %v2722_v14  ;;  %vm1490_vm11 = vcmp.ge.f32.partialorder %v1426_v10, 1.0  ;;  %vm1108_vm12 = vcmp.ge.f32.partialorder %v413_v6, 1.0  ;;  %v3553_v22 = vpop.f32.mrb[7].mxu0  ;;  %v3555_v23 = vpop.f32.mrb[7].mxu1 }
  0xe9   :  { %2818 = vst.msk [vmem:[%s5508_s4 + $0x310] sm:$0xff] %vm1297_vm4, %v2754_v15  ;;  %v1781_v21 = vsub.f32 %v1460_v1, %v2754_v15  ;;  %v2720_v24 = vsel %vm1490_vm11, 1.0, %v3313_v53  ;;  %vm1522_vm13 = vcmp.ge.f32.partialorder %v1458_v16, 1.0  ;;  %v3107_v25 = vpack.c.bf16 %v659_v17, %v659_v17 }
  0xea   :  { %v2659_v26 = vsel %vm1108_vm12, 1.0, %v3313_v53  ;;  %v1813_v27 = vadd.f32 %v3476_v38, %v1749_v20  ;;  %2784 = vst.msk [vmem:[%s5508_s4 + $0x200] sm:$0xff] %vm1297_vm4, %v2720_v24  ;;  %v1747_v29 = vsub.f32 %v1426_v10, %v2720_v24  ;;  %v2752_v30 = vsel %vm1522_vm13, 1.0, %v3313_v53 }
  0xeb   :  { %v1845_v28 = vadd.f32 %v3476_v38, %v1781_v21  ;;  %1301 = vst.msk [vmem:[%s5508_s4 + $0x18] sm:$0xff] %vm1297_vm4, %v2659_v26  ;;  %2816 = vst.msk [vmem:[%s5508_s4 + $0x300] sm:$0xff] %vm1297_vm4, %v2752_v30  ;;  %v1779_v31 = vsub.f32 %v1458_v16, %v2752_v30  ;;  %v1365_v32 = vsub.f32 %v413_v6, %v2659_v26  ;;  %v691_v33 = vmax.f32 %v3520_v7, 0.0 }
  0xec   :  { %980 = vst.msk [vmem:[%s5509_s3 + $0xc] sm:$0xf] %vm976_vm3, %v3107_v25  ;;  %vm1140_vm14 = vcmp.ge.f32.partialorder %v3520_v7, 1.0  ;;  %vm1877_vm15 = vcmp.ge.f32.partialorder %v1813_v27, 1.0  ;;  %v1811_v34 = vadd.f32 %v3476_v38, %v1747_v29  ;;  %v657_v63 = vmax.f32 %v3528_v11, 0.0 }
  0xed   :  { %vm1909_vm0 = vcmp.ge.f32.partialorder %v1845_v28, 1.0  ;;  %v2691_v35 = vsel %vm1140_vm14, 1.0, %v3313_v53  ;;  %v2850_v36 = vsel %vm1877_vm15, 1.0, %v3313_v53  ;;  %v1843_v39 = vadd.f32 %v3476_v38, %v1779_v31  ;;  %v3590_v41 = vpop.f32.mrb[8].mxu0  ;;  %v3592_v42 = vpop.f32.mrb[8].mxu1 }
  0xee   :  { %v2882_v37 = vsel %vm1909_vm0, 1.0, %v3313_v53  ;;  %v1429_v40 = vadd.f32 %v3476_v38, %v1365_v32  ;;  %1333 = vst.msk [vmem:[%s5508_s4 + $0x118] sm:$0xff] %vm1297_vm4, %v2691_v35  ;;  %2914 = vst.msk [vmem:[%s5508_s4 + $0x410] sm:$0xff] %vm1297_vm4, %v2850_v36  ;;  %v2134_v43 = vsub.f32 %v1813_v27, %v2850_v36  ;;  %vm1875_vm1 = vcmp.ge.f32.partialorder %v1811_v34, 1.0  ;;  %v3602_v46 = vpop.f32.mrb[9].mxu0  ;;  %v3604_v47 = vpop.f32.mrb[9].mxu1 }
  0xef   :  { %2946 = vst.msk [vmem:[%s5508_s4 + $0x510] sm:$0xff] %vm1297_vm4, %v2882_v37  ;;  %v2166_v44 = vsub.f32 %v1845_v28, %v2882_v37  ;;  %v3139_v45 = vpack.c.bf16 %v691_v33, %v691_v33  ;;  %v2848_v48 = vsel %vm1875_vm1, 1.0, %v3313_v53  ;;  %vm1907_vm2 = vcmp.ge.f32.partialorder %v1843_v39, 1.0  ;;  %v3608_v50 = vpop.f32.mrb[10].mxu0  ;;  %v3610_v51 = vpop.f32.mrb[10].mxu1 }
  0xf0   :  { %vm1493_vm5 = vcmp.ge.f32.partialorder %v1429_v40, 1.0  ;;  %v1397_v49 = vsub.f32 %v3520_v7, %v2691_v35  ;;  %v2198_v54 = vadd.f32 %v3476_v38, %v2134_v43  ;;  %2912 = vst.msk [vmem:[%s5508_s4 + $0x400] sm:$0xff] %vm1297_vm4, %v2848_v48  ;;  %v2132_v56 = vsub.f32 %v1811_v34, %v2848_v48  ;;  %v3623_v58 = vpop.f32.mrb[11].mxu0  ;;  %v3625_v59 = vpop.f32.mrb[11].mxu1 }
  0xf1   :  { %v2230_v55 = vadd.f32 %v3476_v38, %v2166_v44  ;;  %v2880_v57 = vsel %vm1907_vm2, 1.0, %v3313_v53  ;;  %1012 = vst.msk [vmem:[%s5509_s3 + $0x8c] sm:$0xf] %vm976_vm3, %v3139_v45  ;;  %v2723_v61 = vsel %vm1493_vm5, 1.0, %v3313_v53  ;;  %v3105_v7 = vpack.c.bf16 %v657_v63, %v657_v63 }
  0xf2   :  { %2944 = vst.msk [vmem:[%s5508_s4 + $0x500] sm:$0xff] %vm1297_vm4, %v2880_v57  ;;  %v2164_v60 = vsub.f32 %v1843_v39, %v2880_v57  ;;  %v1461_v62 = vadd.f32 %v3476_v38, %v1397_v49  ;;  %vm2262_vm6 = vcmp.ge.f32.partialorder %v2198_v54, 1.0  ;;  %v2196_v0 = vadd.f32 %v3476_v38, %v2132_v56  ;;  %2787 = vst.msk [vmem:[%s5508_s4 + $0x218] sm:$0xff] %vm1297_vm4, %v2723_v61 }
  0xf3   :  { %vm2294_vm7 = vcmp.ge.f32.partialorder %v2230_v55, 1.0  ;;  %v1750_v1 = vsub.f32 %v1429_v40, %v2723_v61  ;;  %v2978_v2 = vsel %vm2262_vm6, 1.0, %v3313_v53  ;;  %vm1106_vm11 = vcmp.ge.f32.partialorder %v3528_v11, 1.0  ;;  %978 = vst.msk [vmem:[%s5509_s3 + $0x4] sm:$0xf] %vm976_vm3, %v3105_v7 }
  0xf4   :  { %v3010_v3 = vsel %vm2294_vm7, 1.0, %v3313_v53  ;;  %v2228_v4 = vadd.f32 %v3476_v38, %v2164_v60  ;;  %vm1525_vm8 = vcmp.ge.f32.partialorder %v1461_v62, 1.0  ;;  %3042 = vst.msk [vmem:[%s5508_s4 + $0x610] sm:$0xff] %vm1297_vm4, %v2978_v2  ;;  %vm2260_vm9 = vcmp.ge.f32.partialorder %v2196_v0, 1.0 }
  0xf5   :  { %3074 = vst.msk [vmem:[%s5508_s4 + $0x710] sm:$0xff] %vm1297_vm4, %v3010_v3  ;;  %v1814_v5 = vadd.f32 %v3476_v38, %v1750_v1  ;;  %v2755_v6 = vsel %vm1525_vm8, 1.0, %v3313_v53  ;;  %v2976_v10 = vsel %vm2260_vm9, 1.0, %v3313_v53  ;;  %v3658_v15 = vpop.f32.mrb[12].mxu0  ;;  %v3660_v16 = vpop.f32.mrb[12].mxu1  ;;  %v2657_v20 = vsel %vm1106_vm11, 1.0, %v3313_v53 }
  0xf6   :  { %vm2292_vm10 = vcmp.ge.f32.partialorder %v2228_v4, 1.0  ;;  %2819 = vst.msk [vmem:[%s5508_s4 + $0x318] sm:$0xff] %vm1297_vm4, %v2755_v6  ;;  %v1782_v14 = vsub.f32 %v1461_v62, %v2755_v6  ;;  %3040 = vst.msk [vmem:[%s5508_s4 + $0x600] sm:$0xff] %vm1297_vm4, %v2976_v10  ;;  %v533_v21 = vadd.f32 %v3476_v38, %v3482_v52  ;;  %v3674_v24 = vpop.f32.mrb[13].mxu0  ;;  %v3676_v25 = vpop.f32.mrb[13].mxu1  ;;  %v1363_v52 = vsub.f32 %v3528_v11, %v2657_v20 }
  0xf7   :  { %v3008_v17 = vsel %vm2292_vm10, 1.0, %v3313_v53  ;;  %vm1878_vm12 = vcmp.ge.f32.partialorder %v1814_v5, 1.0  ;;  %1299 = vst.msk [vmem:[%s5508_s4 + $0x8] sm:$0xff] %vm1297_vm4, %v2657_v20  ;;  %v426_v28 = vadd.f32 %v3522_v8, %v3476_v38  ;;  %v3691_v29 = vpop.f32.mrb[14].mxu0  ;;  %v3693_v30 = vpop.f32.mrb[14].mxu1  ;;  %v3701_v33 = vadd.f32 %v3524_v9, %v3476_v38 }
  0xf8   :  { %3072 = vst.msk [vmem:[%s5508_s4 + $0x700] sm:$0xff] %vm1297_vm4, %v3008_v17  ;;  %v2851_v26 = vsel %vm1878_vm12, 1.0, %v3313_v53  ;;  %v1846_v27 = vadd.f32 %v3476_v38, %v1782_v14  ;;  %v689_v32 = vmax.f32 %v533_v21, 0.0  ;;  %vm1138_vm13 = vcmp.ge.f32.partialorder %v533_v21, 1.0  ;;  %v3703_v11 = vpop.f32.mrb[15].mxu0  ;;  %v3705_v34 = vpop.f32.mrb[15].mxu1 }
  0xf9   :  { %2915 = vst.msk [vmem:[%s5508_s4 + $0x418] sm:$0xff] %vm1297_vm4, %v2851_v26  ;;  %v2135_v31 = vsub.f32 %v1814_v5, %v2851_v26  ;;  %v1427_v8 = vadd.f32 %v3476_v38, %v1363_v52  ;;  %v2689_v35 = vsel %vm1138_vm13, 1.0, %v3313_v53  ;;  %v662_v36 = vmax.f32 %v426_v28, 0.0 }
  0xfa   :  { %vm1910_vm14 = vcmp.ge.f32.partialorder %v1846_v27, 1.0  ;;  %v3137_v40 = vpack.c.bf16 %v689_v32, %v689_v32  ;;  %1331 = vst.msk [vmem:[%s5508_s4 + $0x108] sm:$0xff] %vm1297_vm4, %v2689_v35  ;;  %v1395_v9 = vsub.f32 %v533_v21, %v2689_v35  ;;  %vm1111_vm0 = vcmp.ge.f32.partialorder %v426_v28, 1.0 }
  0xfb   :  { %v2199_v37 = vadd.f32 %v3476_v38, %v2135_v31  ;;  %v2883_v39 = vsel %vm1910_vm14, 1.0, %v3313_v53  ;;  %vm1491_vm15 = vcmp.ge.f32.partialorder %v1427_v8, 1.0  ;;  %v3110_v44 = vpack.c.bf16 %v662_v36, %v662_v36 }
  0xfc   :  { %2947 = vst.msk [vmem:[%s5508_s4 + $0x518] sm:$0xff] %vm1297_vm4, %v2883_v39  ;;  %v2167_v43 = vsub.f32 %v1846_v27, %v2883_v39  ;;  %v2721_v45 = vsel %vm1491_vm15, 1.0, %v3313_v53  ;;  %v1459_v48 = vadd.f32 %v3476_v38, %v1395_v9  ;;  %v2662_v49 = vsel %vm1111_vm0, 1.0, %v3313_v53 }
  0xfd   :  { %vm2263_vm1 = vcmp.ge.f32.partialorder %v2199_v37, 1.0  ;;  %1010 = vst.msk [vmem:[%s5509_s3 + $0x84] sm:$0xf] %vm976_vm3, %v3137_v40  ;;  %v1748_v56 = vsub.f32 %v1427_v8, %v2721_v45  ;;  %983 = vst.msk [vmem:[%s5509_s3 + $0x18] sm:$0xf] %vm976_vm3, %v3110_v44  ;;  %v1368_v57 = vsub.f32 %v426_v28, %v2662_v49  ;;  %v3740_v60 = vpop.f32.mrb[16].mxu0  ;;  %v418_v63 = vadd.f32 %v3476_v38, %v3530_v12 }
  0xfe   :  { %v2979_v54 = vsel %vm2263_vm1, 1.0, %v3313_v53  ;;  %v2231_v55 = vadd.f32 %v3476_v38, %v2167_v43  ;;  %2785 = vst.msk [vmem:[%s5508_s4 + $0x208] sm:$0xff] %vm1297_vm4, %v2721_v45  ;;  %1304 = vst.msk [vmem:[%s5508_s4 + $0x30] sm:$0xff] %vm1297_vm4, %v2662_v49  ;;  %v3742_v61 = vpop.f32.mrb[16].mxu1  ;;  %vm1523_vm2 = vcmp.ge.f32.partialorder %v1459_v48, 1.0  ;;  %v694_v62 = vmax.f32 %v3701_v33, 0.0 }
  0xff   :  { %3043 = vst.msk [vmem:[%s5508_s4 + $0x618] sm:$0xff] %vm1297_vm4, %v2979_v54  ;;  %vm1143_vm5 = vcmp.ge.f32.partialorder %v3701_v33, 1.0  ;;  %v3752_v0 = vpop.f32.mrb[17].mxu0  ;;  %v3754_v1 = vpop.f32.mrb[17].mxu1  ;;  %v1812_v2 = vadd.f32 %v3476_v38, %v1748_v56  ;;  %v2753_v3 = vsel %vm1523_vm2, 1.0, %v3313_v53  ;;  %v1432_v4 = vadd.f32 %v3476_v38, %v1368_v57 }
 0x100   :  { %vm2295_vm6 = vcmp.ge.f32.partialorder %v2231_v55, 1.0  ;;  %v3759_v5 = vpop.f32.mrb[18].mxu0  ;;  %v3761_v6 = vpop.f32.mrb[18].mxu1  ;;  %2817 = vst.msk [vmem:[%s5508_s4 + $0x308] sm:$0xff] %vm1297_vm4, %v2753_v3  ;;  %v1780_v12 = vsub.f32 %v1459_v48, %v2753_v3  ;;  %v3142_v10 = vpack.c.bf16 %v694_v62, %v694_v62  ;;  %v2694_v14 = vsel %vm1143_vm5, 1.0, %v3313_v53 }
 0x101   :  { %v3011_v7 = vsel %vm2295_vm6, 1.0, %v3313_v53  ;;  %v3769_v17 = vpop.f32.mrb[19].mxu0  ;;  %v3771_v20 = vpop.f32.mrb[19].mxu1  ;;  %vm1876_vm7 = vcmp.ge.f32.partialorder %v1812_v2, 1.0  ;;  %vm1496_vm8 = vcmp.ge.f32.partialorder %v1432_v4, 1.0  ;;  %1336 = vst.msk [vmem:[%s5508_s4 + $0x130] sm:$0xff] %vm1297_vm4, %v2694_v14  ;;  %v1400_v21 = vsub.f32 %v3701_v33, %v2694_v14 }
 0x102   :  { %3075 = vst.msk [vmem:[%s5508_s4 + $0x718] sm:$0xff] %vm1297_vm4, %v3011_v7  ;;  %v660_v26 = vmax.f32 %v418_v63, 0.0  ;;  %v2849_v27 = vsel %vm1876_vm7, 1.0, %v3313_v53  ;;  %v1844_v52 = vadd.f32 %v3476_v38, %v1780_v12  ;;  %v2726_v28 = vsel %vm1496_vm8, 1.0, %v3313_v53 }
 0x103   :  { %1015 = vst.msk [vmem:[%s5509_s3 + $0x98] sm:$0xf] %vm976_vm3, %v3142_v10  ;;  %vm1109_vm9 = vcmp.ge.f32.partialorder %v418_v63, 1.0  ;;  %v2133_v31 = vsub.f32 %v1812_v2, %v2849_v27  ;;  %v1753_v32 = vsub.f32 %v1432_v4, %v2726_v28  ;;  %v1464_v33 = vadd.f32 %v3476_v38, %v1400_v21 }
 0x104   :  { %2913 = vst.msk [vmem:[%s5508_s4 + $0x408] sm:$0xff] %vm1297_vm4, %v2849_v27  ;;  %2790 = vst.msk [vmem:[%s5508_s4 + $0x230] sm:$0xff] %vm1297_vm4, %v2726_v28  ;;  %v3108_v8 = vpack.c.bf16 %v660_v26, %v660_v26  ;;  %vm1908_vm10 = vcmp.ge.f32.partialorder %v1844_v52, 1.0  ;;  %v2660_v35 = vsel %vm1109_vm9, 1.0, %v3313_v53  ;;  %v546_v36 = vadd.f32 %v3476_v38, %v3532_v13 }
 0x105   :  { %v3803_v37 = vadd.f32 %v3541_v18, %v3476_v38  ;;  %v2197_v39 = vadd.f32 %v3476_v38, %v2133_v31  ;;  %v2881_v40 = vsel %vm1908_vm10, 1.0, %v3313_v53  ;;  %v1817_v9 = vadd.f32 %v3476_v38, %v1753_v32  ;;  %1302 = vst.msk [vmem:[%s5508_s4 + $0x20] sm:$0xff] %vm1297_vm4, %v2660_v35  ;;  %v3816_v13 = vpop.f32.mrb[20].mxu0  ;;  %v3818_v18 = vpop.f32.mrb[20].mxu1 }
 0x106   :  { %vm1528_vm11 = vcmp.ge.f32.partialorder %v1464_v33, 1.0  ;;  %981 = vst.msk [vmem:[%s5509_s3 + $0x10] sm:$0xf] %vm976_vm3, %v3108_v8  ;;  %v2165_v43 = vsub.f32 %v1844_v52, %v2881_v40  ;;  %v1366_v45 = vsub.f32 %v418_v63, %v2660_v35  ;;  %v692_v48 = vmax.f32 %v546_v36, 0.0  ;;  %v3825_v49 = vpop.f32.mrb[21].mxu0  ;;  %v3845_v7 = vpop.f32.mrb[21].mxu1 }
 0x107   :  { %2945 = vst.msk [vmem:[%s5508_s4 + $0x508] sm:$0xff] %vm1297_vm4, %v2881_v40  ;;  %v2758_v44 = vsel %vm1528_vm11, 1.0, %v3313_v53  ;;  %vm2261_vm12 = vcmp.ge.f32.partialorder %v2197_v39, 1.0  ;;  %vm1881_vm13 = vcmp.ge.f32.partialorder %v1817_v9, 1.0  ;;  %vm1141_vm14 = vcmp.ge.f32.partialorder %v546_v36, 1.0  ;;  %v3883_v39 = vpop.f32.mrb[22].mxu0 }
 0x108   :  { %2822 = vst.msk [vmem:[%s5508_s4 + $0x330] sm:$0xff] %vm1297_vm4, %v2758_v44  ;;  %v1785_v54 = vsub.f32 %v1464_v33, %v2758_v44  ;;  %v2977_v55 = vsel %vm2261_vm12, 1.0, %v3313_v53  ;;  %v2229_v56 = vadd.f32 %v3476_v38, %v2165_v43  ;;  %v2854_v57 = vsel %vm1881_vm13, 1.0, %v3313_v53 }
 0x109   :  { %v1430_v62 = vadd.f32 %v3476_v38, %v1366_v45  ;;  %3041 = vst.msk [vmem:[%s5508_s4 + $0x608] sm:$0xff] %vm1297_vm4, %v2977_v55  ;;  %2918 = vst.msk [vmem:[%s5508_s4 + $0x430] sm:$0xff] %vm1297_vm4, %v2854_v57  ;;  %v2138_v63 = vsub.f32 %v1817_v9, %v2854_v57  ;;  %v3140_v3 = vpack.c.bf16 %v692_v48, %v692_v48  ;;  %v2692_v4 = vsel %vm1141_vm14, 1.0, %v3313_v53  ;;  %v3902_v48 = vpop.f32.mrb[22].mxu1 }
 0x10a   :  { %v1849_v2 = vadd.f32 %v3476_v38, %v1785_v54  ;;  %vm2293_vm15 = vcmp.ge.f32.partialorder %v2229_v56, 1.0  ;;  %1334 = vst.msk [vmem:[%s5508_s4 + $0x120] sm:$0xff] %vm1297_vm4, %v2692_v4  ;;  %v1398_v12 = vsub.f32 %v546_v36, %v2692_v4  ;;  %v663_v10 = vmax.f32 %v3803_v37, 0.0 }
 0x10b   :  { %vm1494_vm0 = vcmp.ge.f32.partialorder %v1430_v62, 1.0  ;;  %v3009_v14 = vsel %vm2293_vm15, 1.0, %v3313_v53  ;;  %v2202_v21 = vadd.f32 %v3476_v38, %v2138_v63  ;;  %1013 = vst.msk [vmem:[%s5509_s3 + $0x90] sm:$0xf] %vm976_vm3, %v3140_v3  ;;  %vm1112_vm5 = vcmp.ge.f32.partialorder %v3803_v37, 1.0 }
 0x10c   :  { %vm1913_vm1 = vcmp.ge.f32.partialorder %v1849_v2, 1.0  ;;  %v2724_v26 = vsel %vm1494_vm0, 1.0, %v3313_v53  ;;  %3073 = vst.msk [vmem:[%s5508_s4 + $0x708] sm:$0xff] %vm1297_vm4, %v3009_v14  ;;  %v1462_v28 = vadd.f32 %v3476_v38, %v1398_v12  ;;  %v3111_v31 = vpack.c.bf16 %v663_v10, %v663_v10 }
 0x10d   :  { %v2886_v27 = vsel %vm1913_vm1, 1.0, %v3313_v53  ;;  %2788 = vst.msk [vmem:[%s5508_s4 + $0x220] sm:$0xff] %vm1297_vm4, %v2724_v26  ;;  %v1751_v52 = vsub.f32 %v1430_v62, %v2724_v26  ;;  %vm2266_vm2 = vcmp.ge.f32.partialorder %v2202_v21, 1.0  ;;  %v557_v33 = vadd.f32 %v3543_v19, %v3476_v38 }
 0x10e   :  { %2950 = vst.msk [vmem:[%s5508_s4 + $0x530] sm:$0xff] %vm1297_vm4, %v2886_v27  ;;  %v2170_v32 = vsub.f32 %v1849_v2, %v2886_v27  ;;  %v2982_v8 = vsel %vm2266_vm2, 1.0, %v3313_v53  ;;  %vm1526_vm6 = vcmp.ge.f32.partialorder %v1462_v28, 1.0  ;;  %v2663_v36 = vsel %vm1112_vm5, 1.0, %v3313_v53 }
 0x10f   :  { %v1815_v35 = vadd.f32 %v3476_v38, %v1751_v52  ;;  %984 = vst.msk [vmem:[%s5509_s3 + $0x1c] sm:$0xf] %vm976_vm3, %v3111_v31  ;;  %v2756_v40 = vsel %vm1526_vm6, 1.0, %v3313_v53  ;;  %v1369_v9 = vsub.f32 %v3803_v37, %v2663_v36  ;;  %v695_v43 = vmax.f32 %v557_v33, 0.0 }
 0x110   :  { %3046 = vst.msk [vmem:[%s5508_s4 + $0x630] sm:$0xff] %vm1297_vm4, %v2982_v8  ;;  %v2234_v19 = vadd.f32 %v3476_v38, %v2170_v32  ;;  %1305 = vst.msk [vmem:[%s5508_s4 + $0x38] sm:$0xff] %vm1297_vm4, %v2663_v36  ;;  %v1783_v44 = vsub.f32 %v1462_v28, %v2756_v40  ;;  %vm1144_vm8 = vcmp.ge.f32.partialorder %v557_v33, 1.0  ;;  %v421_v45 = vadd.f32 %v3476_v38, %v3553_v22 }
 0x111   :  { %vm1879_vm7 = vcmp.ge.f32.partialorder %v1815_v35, 1.0  ;;  %2820 = vst.msk [vmem:[%s5508_s4 + $0x320] sm:$0xff] %vm1297_vm4, %v2756_v40  ;;  %v1433_v55 = vadd.f32 %v3476_v38, %v1369_v9  ;;  %v3143_v37 = vpack.c.bf16 %v695_v43, %v695_v43  ;;  %v2695_v22 = vsel %vm1144_vm8, 1.0, %v3313_v53 }
 0x112   :  { %vm2298_vm9 = vcmp.ge.f32.partialorder %v2234_v19, 1.0  ;;  %v2852_v54 = vsel %vm1879_vm7, 1.0, %v3313_v53  ;;  %v1847_v62 = vadd.f32 %v3476_v38, %v1783_v44  ;;  %1337 = vst.msk [vmem:[%s5508_s4 + $0x138] sm:$0xff] %vm1297_vm4, %v2695_v22  ;;  %v1401_v63 = vsub.f32 %v557_v33, %v2695_v22  ;;  %v3959_v19 = vpop.f32.mrb[23].mxu0 }
 0x113   :  { %v3014_v56 = vsel %vm2298_vm9, 1.0, %v3313_v53  ;;  %2916 = vst.msk [vmem:[%s5508_s4 + $0x420] sm:$0xff] %vm1297_vm4, %v2852_v54  ;;  %v2136_v57 = vsub.f32 %v1815_v35, %v2852_v54  ;;  %vm1497_vm10 = vcmp.ge.f32.partialorder %v1433_v55, 1.0  ;;  %v661_v2 = vmax.f32 %v421_v45, 0.0 }
 0x114   :  { %3078 = vst.msk [vmem:[%s5508_s4 + $0x730] sm:$0xff] %vm1297_vm4, %v3014_v56  ;;  %vm1110_vm11 = vcmp.ge.f32.partialorder %v421_v45, 1.0  ;;  %vm1911_vm12 = vcmp.ge.f32.partialorder %v1847_v62, 1.0  ;;  %v2727_v4 = vsel %vm1497_vm10, 1.0, %v3313_v53  ;;  %v1465_v21 = vadd.f32 %v3476_v38, %v1401_v63 }
 0x115   :  { %1016 = vst.msk [vmem:[%s5509_s3 + $0x9c] sm:$0xf] %vm976_vm3, %v3143_v37  ;;  %v2200_v3 = vadd.f32 %v3476_v38, %v2136_v57  ;;  %v2661_v12 = vsel %vm1110_vm11, 1.0, %v3313_v53  ;;  %v2884_v10 = vsel %vm1911_vm12, 1.0, %v3313_v53  ;;  %v1754_v14 = vsub.f32 %v1433_v55, %v2727_v4  ;;  %v3973_v37 = vpop.f32.mrb[23].mxu1 }
 0x116   :  { %2791 = vst.msk [vmem:[%s5508_s4 + $0x238] sm:$0xff] %vm1297_vm4, %v2727_v4  ;;  %v3109_v26 = vpack.c.bf16 %v661_v2, %v661_v2  ;;  %1303 = vst.msk [vmem:[%s5508_s4 + $0x28] sm:$0xff] %vm1297_vm4, %v2661_v12  ;;  %v2168_v27 = vsub.f32 %v1847_v62, %v2884_v10  ;;  %v1367_v52 = vsub.f32 %v421_v45, %v2661_v12  ;;  %vm1529_vm14 = vcmp.ge.f32.partialorder %v1465_v21, 1.0 }
 0x117   :  { %vm2264_vm13 = vcmp.ge.f32.partialorder %v2200_v3, 1.0  ;;  %2948 = vst.msk [vmem:[%s5508_s4 + $0x520] sm:$0xff] %vm1297_vm4, %v2884_v10  ;;  %v549_v28 = vadd.f32 %v3476_v38, %v3555_v23  ;;  %v1818_v32 = vadd.f32 %v3476_v38, %v1754_v14  ;;  %v442_v33 = vadd.f32 %v3590_v41, %v3476_v38 }
 0x118   :  { %v2980_v31 = vsel %vm2264_vm13, 1.0, %v3313_v53  ;;  %982 = vst.msk [vmem:[%s5509_s3 + $0x14] sm:$0xf] %vm976_vm3, %v3109_v26  ;;  %v2232_v23 = vadd.f32 %v3476_v38, %v2168_v27  ;;  %v2759_v8 = vsel %vm1529_vm14, 1.0, %v3313_v53  ;;  %v1431_v35 = vadd.f32 %v3476_v38, %v1367_v52 }
 0x119   :  { %3044 = vst.msk [vmem:[%s5508_s4 + $0x620] sm:$0xff] %vm1297_vm4, %v2980_v31  ;;  %v693_v36 = vmax.f32 %v549_v28, 0.0  ;;  %vm1882_vm15 = vcmp.ge.f32.partialorder %v1818_v32, 1.0  ;;  %2823 = vst.msk [vmem:[%s5508_s4 + $0x338] sm:$0xff] %vm1297_vm4, %v2759_v8  ;;  %v1786_v41 = vsub.f32 %v1465_v21, %v2759_v8  ;;  %vm1142_vm0 = vcmp.ge.f32.partialorder %v549_v28, 1.0 }
 0x11a   :  { %v666_v40 = vmax.f32 %v442_v33, 0.0  ;;  %vm2296_vm1 = vcmp.ge.f32.partialorder %v2232_v23, 1.0  ;;  %v2855_v9 = vsel %vm1882_vm15, 1.0, %v3313_v53  ;;  %vm1495_vm2 = vcmp.ge.f32.partialorder %v1431_v35, 1.0 }
 0x11b   :  { %v3141_v43 = vpack.c.bf16 %v693_v36, %v693_v36  ;;  %v3012_v44 = vsel %vm2296_vm1, 1.0, %v3313_v53  ;;  %2919 = vst.msk [vmem:[%s5508_s4 + $0x438] sm:$0xff] %vm1297_vm4, %v2855_v9  ;;  %v2139_v45 = vsub.f32 %v1818_v32, %v2855_v9  ;;  %v1850_v54 = vadd.f32 %v3476_v38, %v1786_v41  ;;  %v4033_v36 = vpop.f32.mrb[24].mxu0  ;;  %v4035_v41 = vpop.f32.mrb[24].mxu1 }
 0x11c   :  { %v2725_v55 = vsel %vm1495_vm2, 1.0, %v3313_v53  ;;  %3076 = vst.msk [vmem:[%s5508_s4 + $0x720] sm:$0xff] %vm1297_vm4, %v3012_v44  ;;  %v2693_v57 = vsel %vm1142_vm0, 1.0, %v3313_v53  ;;  %v3114_v62 = vpack.c.bf16 %v666_v40, %v666_v40  ;;  %vm1115_vm5 = vcmp.ge.f32.partialorder %v442_v33, 1.0 }
 0x11d   :  { %2789 = vst.msk [vmem:[%s5508_s4 + $0x228] sm:$0xff] %vm1297_vm4, %v2725_v55  ;;  %v1752_v56 = vsub.f32 %v1431_v35, %v2725_v55  ;;  %v2203_v22 = vadd.f32 %v3476_v38, %v2139_v45  ;;  %vm1914_vm6 = vcmp.ge.f32.partialorder %v1850_v54, 1.0  ;;  %1335 = vst.msk [vmem:[%s5508_s4 + $0x128] sm:$0xff] %vm1297_vm4, %v2693_v57  ;;  %v1399_v63 = vsub.f32 %v549_v28, %v2693_v57 }
 0x11e   :  { %1014 = vst.msk [vmem:[%s5509_s3 + $0x94] sm:$0xf] %vm976_vm3, %v3141_v43  ;;  %v2666_v2 = vsel %vm1115_vm5, 1.0, %v3313_v53  ;;  %v2887_v3 = vsel %vm1914_vm6, 1.0, %v3313_v53  ;;  %987 = vst.msk [vmem:[%s5509_s3 + $0x28] sm:$0xf] %vm976_vm3, %v3114_v62  ;;  %v570_v10 = vadd.f32 %v3592_v42, %v3476_v38  ;;  %v434_v26 = vadd.f32 %v3476_v38, %v3602_v46 }
 0x11f   :  { %v1816_v4 = vadd.f32 %v3476_v38, %v1752_v56  ;;  %1308 = vst.msk [vmem:[%s5508_s4 + $0x50] sm:$0xff] %vm1297_vm4, %v2666_v2  ;;  %v1372_v12 = vsub.f32 %v442_v33, %v2666_v2  ;;  %vm2267_vm7 = vcmp.ge.f32.partialorder %v2203_v22, 1.0  ;;  %2951 = vst.msk [vmem:[%s5508_s4 + $0x538] sm:$0xff] %vm1297_vm4, %v2887_v3  ;;  %v2171_v14 = vsub.f32 %v1850_v54, %v2887_v3  ;;  %v4061_v22 = vpop.f32.mrb[25].mxu0 }
 0x120   :  { %v1463_v21 = vadd.f32 %v3476_v38, %v1399_v63  ;;  %v2983_v27 = vsel %vm2267_vm7, 1.0, %v3313_v53  ;;  %v698_v28 = vmax.f32 %v570_v10, 0.0  ;;  %vm1147_vm10 = vcmp.ge.f32.partialorder %v570_v10, 1.0 }
 0x121   :  { %vm1880_vm8 = vcmp.ge.f32.partialorder %v1816_v4, 1.0  ;;  %v1436_v52 = vadd.f32 %v3476_v38, %v1372_v12  ;;  %3047 = vst.msk [vmem:[%s5508_s4 + $0x638] sm:$0xff] %vm1297_vm4, %v2983_v27  ;;  %v2235_v42 = vadd.f32 %v3476_v38, %v2171_v14  ;;  %v2698_v35 = vsel %vm1147_vm10, 1.0, %v3313_v53 }
 0x122   :  { %v2853_v31 = vsel %vm1880_vm8, 1.0, %v3313_v53  ;;  %vm1527_vm9 = vcmp.ge.f32.partialorder %v1463_v21, 1.0  ;;  %v3146_v33 = vpack.c.bf16 %v698_v28, %v698_v28  ;;  %1340 = vst.msk [vmem:[%s5508_s4 + $0x150] sm:$0xff] %vm1297_vm4, %v2698_v35  ;;  %v1404_v44 = vsub.f32 %v570_v10, %v2698_v35 }
 0x123   :  { %2917 = vst.msk [vmem:[%s5508_s4 + $0x428] sm:$0xff] %vm1297_vm4, %v2853_v31  ;;  %v2137_v46 = vsub.f32 %v1816_v4, %v2853_v31  ;;  %v2757_v32 = vsel %vm1527_vm9, 1.0, %v3313_v53  ;;  %vm1500_vm11 = vcmp.ge.f32.partialorder %v1436_v52, 1.0  ;;  %vm2299_vm12 = vcmp.ge.f32.partialorder %v2235_v42, 1.0 }
 0x124   :  { %2821 = vst.msk [vmem:[%s5508_s4 + $0x328] sm:$0xff] %vm1297_vm4, %v2757_v32  ;;  %v1784_v23 = vsub.f32 %v1463_v21, %v2757_v32  ;;  %v2730_v8 = vsel %vm1500_vm11, 1.0, %v3313_v53  ;;  %v3015_v40 = vsel %vm2299_vm12, 1.0, %v3313_v53  ;;  %v664_v54 = vmax.f32 %v434_v26, 0.0 }
 0x125   :  { %v2201_v9 = vadd.f32 %v3476_v38, %v2137_v46  ;;  %2794 = vst.msk [vmem:[%s5508_s4 + $0x250] sm:$0xff] %vm1297_vm4, %v2730_v8  ;;  %v1757_v43 = vsub.f32 %v1436_v52, %v2730_v8  ;;  %3079 = vst.msk [vmem:[%s5508_s4 + $0x738] sm:$0xff] %vm1297_vm4, %v3015_v40  ;;  %vm1113_vm13 = vcmp.ge.f32.partialorder %v434_v26, 1.0  ;;  %v562_v55 = vadd.f32 %v3476_v38, %v3604_v47  ;;  %v4107_v8 = vpop.f32.mrb[25].mxu1 }
 0x126   :  { %1019 = vst.msk [vmem:[%s5509_s3 + $0xa8] sm:$0xf] %vm976_vm3, %v3146_v33  ;;  %v1848_v45 = vadd.f32 %v3476_v38, %v1784_v23  ;;  %v1468_v57 = vadd.f32 %v3476_v38, %v1404_v44  ;;  %v2664_v62 = vsel %vm1113_vm13, 1.0, %v3313_v53  ;;  %v3112_v2 = vpack.c.bf16 %v664_v54, %v664_v54 }
 0x127   :  { %vm2265_vm14 = vcmp.ge.f32.partialorder %v2201_v9, 1.0  ;;  %v1821_v56 = vadd.f32 %v3476_v38, %v1757_v43  ;;  %1306 = vst.msk [vmem:[%s5508_s4 + $0x40] sm:$0xff] %vm1297_vm4, %v2664_v62  ;;  %v1370_v3 = vsub.f32 %v434_v26, %v2664_v62  ;;  %v696_v4 = vmax.f32 %v562_v55, 0.0  ;;  %v4133_v62 = vpop.f32.mrb[26].mxu0 }
 0x128   :  { %v2981_v63 = vsel %vm2265_vm14, 1.0, %v3313_v53  ;;  %vm1912_vm15 = vcmp.ge.f32.partialorder %v1848_v45, 1.0  ;;  %vm1532_vm1 = vcmp.ge.f32.partialorder %v1468_v57, 1.0  ;;  %985 = vst.msk [vmem:[%s5509_s3 + $0x20] sm:$0xf] %vm976_vm3, %v3112_v2  ;;  %vm1145_vm2 = vcmp.ge.f32.partialorder %v562_v55, 1.0 }
 0x129   :  { %3045 = vst.msk [vmem:[%s5508_s4 + $0x628] sm:$0xff] %vm1297_vm4, %v2981_v63  ;;  %v2885_v47 = vsel %vm1912_vm15, 1.0, %v3313_v53  ;;  %vm1885_vm0 = vcmp.ge.f32.partialorder %v1821_v56, 1.0  ;;  %v2762_v14 = vsel %vm1532_vm1, 1.0, %v3313_v53  ;;  %v1434_v21 = vadd.f32 %v3476_v38, %v1370_v3 }
 0x12a   :  { %2949 = vst.msk [vmem:[%s5508_s4 + $0x528] sm:$0xff] %vm1297_vm4, %v2885_v47  ;;  %v2169_v12 = vsub.f32 %v1848_v45, %v2885_v47  ;;  %v2858_v10 = vsel %vm1885_vm0, 1.0, %v3313_v53  ;;  %2826 = vst.msk [vmem:[%s5508_s4 + $0x350] sm:$0xff] %vm1297_vm4, %v2762_v14  ;;  %v1789_v27 = vsub.f32 %v1468_v57, %v2762_v14  ;;  %v3144_v52 = vpack.c.bf16 %v696_v4, %v696_v4 }
 0x12b   :  { %2922 = vst.msk [vmem:[%s5508_s4 + $0x450] sm:$0xff] %vm1297_vm4, %v2858_v10  ;;  %v2142_v26 = vsub.f32 %v1821_v56, %v2858_v10  ;;  %vm1498_vm5 = vcmp.ge.f32.partialorder %v1434_v21, 1.0  ;;  %v2696_v42 = vsel %vm1145_vm2, 1.0, %v3313_v53  ;;  %v445_v31 = vadd.f32 %v3608_v50, %v3476_v38 }
 0x12c   :  { %v2233_v28 = vadd.f32 %v3476_v38, %v2169_v12  ;;  %v1853_v32 = vadd.f32 %v3476_v38, %v1789_v27  ;;  %v2728_v33 = vsel %vm1498_vm5, 1.0, %v3313_v53  ;;  %1017 = vst.msk [vmem:[%s5509_s3 + $0xa0] sm:$0xf] %vm976_vm3, %v3144_v52  ;;  %v1402_v23 = vsub.f32 %v562_v55, %v2696_v42 }
 0x12d   :  { %v2206_v46 = vadd.f32 %v3476_v38, %v2142_v26  ;;  %1338 = vst.msk [vmem:[%s5508_s4 + $0x140] sm:$0xff] %vm1297_vm4, %v2696_v42  ;;  %2792 = vst.msk [vmem:[%s5508_s4 + $0x240] sm:$0xff] %vm1297_vm4, %v2728_v33  ;;  %v1755_v50 = vsub.f32 %v1434_v21, %v2728_v33  ;;  %v667_v35 = vmax.f32 %v445_v31, 0.0  ;;  %vm1116_vm7 = vcmp.ge.f32.partialorder %v445_v31, 1.0 }
 0x12e   :  { %vm2297_vm6 = vcmp.ge.f32.partialorder %v2233_v28, 1.0  ;;  %vm1917_vm9 = vcmp.ge.f32.partialorder %v1853_v32, 1.0  ;;  %v1466_v9 = vadd.f32 %v3476_v38, %v1402_v23  ;;  %v2667_v56 = vsel %vm1116_vm7, 1.0, %v3313_v53  ;;  %v4184_v23 = vld [vmem:[%s5507_s2] ss:$0 sm:$0xff] }
 0x12f   :  { %v3013_v40 = vsel %vm2297_vm6, 1.0, %v3313_v53  ;;  %vm2270_vm8 = vcmp.ge.f32.partialorder %v2206_v46, 1.0  ;;  %v2890_v44 = vsel %vm1917_vm9, 1.0, %v3313_v53  ;;  %v1819_v45 = vadd.f32 %v3476_v38, %v1755_v50  ;;  %1309 = vst.msk [vmem:[%s5508_s4 + $0x58] sm:$0xff] %vm1297_vm4, %v2667_v56 }
 0x130   :  { %3077 = vst.msk [vmem:[%s5508_s4 + $0x728] sm:$0xff] %vm1297_vm4, %v3013_v40  ;;  %v2986_v43 = vsel %vm2270_vm8, 1.0, %v3313_v53  ;;  %v3115_v54 = vpack.c.bf16 %v667_v35, %v667_v35  ;;  %2954 = vst.msk [vmem:[%s5508_s4 + $0x550] sm:$0xff] %vm1297_vm4, %v2890_v44  ;;  %v2174_v55 = vsub.f32 %v1853_v32, %v2890_v44  ;;  %vm1530_vm10 = vcmp.ge.f32.partialorder %v1466_v9, 1.0  ;;  %v4199_v44 = vpop.f32.mrb[27].mxu0 }
 0x131   :  { %3050 = vst.msk [vmem:[%s5508_s4 + $0x650] sm:$0xff] %vm1297_vm4, %v2986_v43  ;;  %v573_v57 = vadd.f32 %v3610_v51, %v3476_v38  ;;  %vm1883_vm11 = vcmp.ge.f32.partialorder %v1819_v45, 1.0  ;;  %v2760_v63 = vsel %vm1530_vm10, 1.0, %v3313_v53  ;;  %v1373_v2 = vsub.f32 %v445_v31, %v2667_v56  ;;  %v4165_v31 = vpop.f32.mrb[26].mxu1 }
 0x132   :  { %988 = vst.msk [vmem:[%s5509_s3 + $0x2c] sm:$0xf] %vm976_vm3, %v3115_v54  ;;  %v437_v3 = vadd.f32 %v3476_v38, %v3623_v58  ;;  %v2238_v51 = vadd.f32 %v3476_v38, %v2174_v55  ;;  %v2856_v47 = vsel %vm1883_vm11, 1.0, %v3313_v53  ;;  %v1787_v4 = vsub.f32 %v1466_v9, %v2760_v63 }
 0x133   :  { %2824 = vst.msk [vmem:[%s5508_s4 + $0x340] sm:$0xff] %vm1297_vm4, %v2760_v63  ;;  %v699_v12 = vmax.f32 %v573_v57, 0.0  ;;  %2920 = vst.msk [vmem:[%s5508_s4 + $0x440] sm:$0xff] %vm1297_vm4, %v2856_v47  ;;  %v2140_v10 = vsub.f32 %v1819_v45, %v2856_v47  ;;  %v1437_v14 = vadd.f32 %v3476_v38, %v1373_v2  ;;  %vm1148_vm12 = vcmp.ge.f32.partialorder %v573_v57, 1.0 }
 0x134   :  { %v665_v58 = vmax.f32 %v437_v3, 0.0  ;;  %vm2302_vm13 = vcmp.ge.f32.partialorder %v2238_v51, 1.0  ;;  %v1851_v21 = vadd.f32 %v3476_v38, %v1787_v4  ;;  %v2699_v27 = vsel %vm1148_vm12, 1.0, %v3313_v53  ;;  %v4225_v4 = vpop.f32.mrb[27].mxu1 }
 0x135   :  { %v3147_v26 = vpack.c.bf16 %v699_v12, %v699_v12  ;;  %v3018_v52 = vsel %vm2302_vm13, 1.0, %v3313_v53  ;;  %v2204_v28 = vadd.f32 %v3476_v38, %v2140_v10  ;;  %vm1501_vm14 = vcmp.ge.f32.partialorder %v1437_v14, 1.0  ;;  %1341 = vst.msk [vmem:[%s5508_s4 + $0x158] sm:$0xff] %vm1297_vm4, %v2699_v27 }
 0x136   :  { %v1405_v42 = vsub.f32 %v573_v57, %v2699_v27  ;;  %3082 = vst.msk [vmem:[%s5508_s4 + $0x750] sm:$0xff] %vm1297_vm4, %v3018_v52  ;;  %vm1915_vm15 = vcmp.ge.f32.partialorder %v1851_v21, 1.0  ;;  %v2731_v46 = vsel %vm1501_vm14, 1.0, %v3313_v53  ;;  %v3113_v38 = vpack.c.bf16 %v665_v58, %v665_v58 }
 0x137   :  { %1020 = vst.msk [vmem:[%s5509_s3 + $0xac] sm:$0xf] %vm976_vm3, %v3147_v26  ;;  %vm1114_vm0 = vcmp.ge.f32.partialorder %v437_v3, 1.0  ;;  %vm2268_vm1 = vcmp.ge.f32.partialorder %v2204_v28, 1.0  ;;  %v2888_v32 = vsel %vm1915_vm15, 1.0, %v3313_v53  ;;  %v1758_v33 = vsub.f32 %v1437_v14, %v2731_v46 }
 0x138   :  { %2795 = vst.msk [vmem:[%s5508_s4 + $0x258] sm:$0xff] %vm1297_vm4, %v2731_v46  ;;  %v1469_v50 = vadd.f32 %v4184_v23, %v1405_v42  ;;  %v2984_v35 = vsel %vm2268_vm1, 1.0, %v3313_v53  ;;  %2952 = vst.msk [vmem:[%s5508_s4 + $0x540] sm:$0xff] %vm1297_vm4, %v2888_v32  ;;  %v2172_v40 = vsub.f32 %v1851_v21, %v2888_v32  ;;  %v2665_v9 = vsel %vm1114_vm0, 1.0, %v3313_v53 }
 0x139   :  { %986 = vst.msk [vmem:[%s5509_s3 + $0x24] sm:$0xf] %vm976_vm3, %v3113_v38  ;;  %v565_v43 = vadd.f32 %v4184_v23, %v3625_v59  ;;  %v1822_v45 = vadd.f32 %v4184_v23, %v1758_v33  ;;  %v1371_v54 = vsub.f32 %v437_v3, %v2665_v9  ;;  %v458_v55 = vadd.f32 %v4184_v23, %v3658_v15 }
 0x13a   :  { %3048 = vst.msk [vmem:[%s5508_s4 + $0x640] sm:$0xff] %vm1297_vm4, %v2984_v35  ;;  %vm1533_vm2 = vcmp.ge.f32.partialorder %v1469_v50, 1.0  ;;  %1307 = vst.msk [vmem:[%s5508_s4 + $0x48] sm:$0xff] %vm1297_vm4, %v2665_v9  ;;  %v2236_v59 = vadd.f32 %v4184_v23, %v2172_v40 }
 0x13b   :  { %v2763_v56 = vsel %vm1533_vm2, 1.0, %v3313_v53  ;;  %v697_v57 = vmax.f32 %v565_v43, 0.0  ;;  %vm1146_vm5 = vcmp.ge.f32.partialorder %v565_v43, 1.0  ;;  %vm1886_vm6 = vcmp.ge.f32.partialorder %v1822_v45, 1.0 }
 0x13c   :  { %2827 = vst.msk [vmem:[%s5508_s4 + $0x358] sm:$0xff] %vm1297_vm4, %v2763_v56  ;;  %v1790_v63 = vsub.f32 %v1469_v50, %v2763_v56  ;;  %v1435_v2 = vadd.f32 %v4184_v23, %v1371_v54  ;;  %v2697_v3 = vsel %vm1146_vm5, 1.0, %v3313_v53  ;;  %vm2300_vm7 = vcmp.ge.f32.partialorder %v2236_v59, 1.0 }
 0x13d   :  { %v2859_v15 = vsel %vm1886_vm6, 1.0, %v3313_v53  ;;  %v3145_v51 = vpack.c.bf16 %v697_v57, %v697_v57  ;;  %1339 = vst.msk [vmem:[%s5508_s4 + $0x148] sm:$0xff] %vm1297_vm4, %v2697_v3  ;;  %v1403_v47 = vsub.f32 %v565_v43, %v2697_v3  ;;  %v3016_v12 = vsel %vm2300_vm7, 1.0, %v3313_v53  ;;  %v4285_v57 = vpop.f32.mrb[28].mxu0 }
 0x13e   :  { %2923 = vst.msk [vmem:[%s5508_s4 + $0x458] sm:$0xff] %vm1297_vm4, %v2859_v15  ;;  %v2143_v10 = vsub.f32 %v1822_v45, %v2859_v15  ;;  %v1854_v14 = vadd.f32 %v4184_v23, %v1790_v63  ;;  %vm1499_vm8 = vcmp.ge.f32.partialorder %v1435_v2, 1.0  ;;  %3080 = vst.msk [vmem:[%s5508_s4 + $0x740] sm:$0xff] %vm1297_vm4, %v3016_v12  ;;  %v670_v26 = vmax.f32 %v458_v55, 0.0  ;;  %v4287_v63 = vpop.f32.mrb[28].mxu1 }
 0x13f   :  { %v2729_v58 = vsel %vm1499_vm8, 1.0, %v3313_v53  ;;  %1018 = vst.msk [vmem:[%s5509_s3 + $0xa4] sm:$0xf] %vm976_vm3, %v3145_v51  ;;  %v1467_v21 = vadd.f32 %v4184_v23, %v1403_v47  ;;  %vm1119_vm9 = vcmp.ge.f32.partialorder %v458_v55, 1.0  ;;  %v586_v43 = vadd.f32 %v4184_v23, %v3660_v16 }
 0x140   :  { %v2207_v27 = vadd.f32 %v4184_v23, %v2143_v10  ;;  %vm1918_vm10 = vcmp.ge.f32.partialorder %v1854_v14, 1.0  ;;  %2793 = vst.msk [vmem:[%s5508_s4 + $0x248] sm:$0xff] %vm1297_vm4, %v2729_v58  ;;  %v1756_v52 = vsub.f32 %v1435_v2, %v2729_v58  ;;  %v2670_v28 = vsel %vm1119_vm9, 1.0, %v3313_v53 }
 0x141   :  { %v2891_v42 = vsel %vm1918_vm10, 1.0, %v3313_v53  ;;  %vm1531_vm11 = vcmp.ge.f32.partialorder %v1467_v21, 1.0  ;;  %v3118_v46 = vpack.c.bf16 %v670_v26, %v670_v26  ;;  %1312 = vst.msk [vmem:[%s5508_s4 + $0x70] sm:$0xff] %vm1297_vm4, %v2670_v28  ;;  %v1376_v38 = vsub.f32 %v458_v55, %v2670_v28 }
 0x142   :  { %vm2271_vm12 = vcmp.ge.f32.partialorder %v2207_v27, 1.0  ;;  %2955 = vst.msk [vmem:[%s5508_s4 + $0x558] sm:$0xff] %vm1297_vm4, %v2891_v42  ;;  %v2175_v32 = vsub.f32 %v1854_v14, %v2891_v42  ;;  %v1820_v33 = vadd.f32 %v4184_v23, %v1756_v52  ;;  %v2761_v50 = vsel %vm1531_vm11, 1.0, %v3313_v53 }
 0x143   :  { %v2987_v35 = vsel %vm2271_vm12, 1.0, %v3313_v53  ;;  %2825 = vst.msk [vmem:[%s5508_s4 + $0x348] sm:$0xff] %vm1297_vm4, %v2761_v50  ;;  %v1788_v40 = vsub.f32 %v1467_v21, %v2761_v50  ;;  %v1440_v9 = vadd.f32 %v4184_v23, %v1376_v38  ;;  %v450_v54 = vadd.f32 %v4184_v23, %v3674_v24  ;;  %v4338_v50 = vpop.f32.mrb[29].mxu0 }
 0x144   :  { %991 = vst.msk [vmem:[%s5509_s3 + $0x38] sm:$0xf] %vm976_vm3, %v3118_v46  ;;  %v2239_v45 = vadd.f32 %v4184_v23, %v2175_v32  ;;  %vm1884_vm13 = vcmp.ge.f32.partialorder %v1820_v33, 1.0  ;;  %v4281_v55 = vadd.f32 %v4184_v23, %v3676_v25  ;;  %v702_v16 = vmax.f32 %v586_v43, 0.0 }
 0x145   :  { %3051 = vst.msk [vmem:[%s5508_s4 + $0x658] sm:$0xff] %vm1297_vm4, %v2987_v35  ;;  %v2857_v59 = vsel %vm1884_vm13, 1.0, %v3313_v53  ;;  %v1852_v56 = vadd.f32 %v4184_v23, %v1788_v40  ;;  %vm1504_vm14 = vcmp.ge.f32.partialorder %v1440_v9, 1.0  ;;  %vm1151_vm0 = vcmp.ge.f32.partialorder %v586_v43, 1.0 }
 0x146   :  { %vm2303_vm15 = vcmp.ge.f32.partialorder %v2239_v45, 1.0  ;;  %2921 = vst.msk [vmem:[%s5508_s4 + $0x448] sm:$0xff] %vm1297_vm4, %v2857_v59  ;;  %v2141_v24 = vsub.f32 %v1820_v33, %v2857_v59  ;;  %v2734_v25 = vsel %vm1504_vm14, 1.0, %v3313_v53  ;;  %v3150_v15 = vpack.c.bf16 %v702_v16, %v702_v16  ;;  %v4357_v59 = vpop.f32.mrb[29].mxu1 }
 0x147   :  { %v3019_v2 = vsel %vm2303_vm15, 1.0, %v3313_v53  ;;  %vm1916_vm1 = vcmp.ge.f32.partialorder %v1852_v56, 1.0  ;;  %2798 = vst.msk [vmem:[%s5508_s4 + $0x270] sm:$0xff] %vm1297_vm4, %v2734_v25  ;;  %v1761_v3 = vsub.f32 %v1440_v9, %v2734_v25  ;;  %v2702_v12 = vsel %vm1151_vm0, 1.0, %v3313_v53 }
 0x148   :  { %3083 = vst.msk [vmem:[%s5508_s4 + $0x758] sm:$0xff] %vm1297_vm4, %v3019_v2  ;;  %v2205_v51 = vadd.f32 %v4184_v23, %v2141_v24  ;;  %v2889_v47 = vsel %vm1916_vm1, 1.0, %v3313_v53  ;;  %v668_v10 = vmax.f32 %v450_v54, 0.0  ;;  %1344 = vst.msk [vmem:[%s5508_s4 + $0x170] sm:$0xff] %vm1297_vm4, %v2702_v12  ;;  %v1408_v21 = vsub.f32 %v586_v43, %v2702_v12 }
 0x149   :  { %2953 = vst.msk [vmem:[%s5508_s4 + $0x548] sm:$0xff] %vm1297_vm4, %v2889_v47  ;;  %v2173_v14 = vsub.f32 %v1852_v56, %v2889_v47  ;;  %v1825_v58 = vadd.f32 %v4184_v23, %v1761_v3  ;;  %vm1117_vm2 = vcmp.ge.f32.partialorder %v450_v54, 1.0  ;;  %v700_v52 = vmax.f32 %v4281_v55, 0.0 }
 0x14a   :  { %1023 = vst.msk [vmem:[%s5509_s3 + $0xb8] sm:$0xf] %vm976_vm3, %v3150_v15  ;;  %vm2269_vm5 = vcmp.ge.f32.partialorder %v2205_v51, 1.0  ;;  %v3116_v26 = vpack.c.bf16 %v668_v10, %v668_v10  ;;  %v2668_v27 = vsel %vm1117_vm2, 1.0, %v3313_v53  ;;  %v1472_v46 = vadd.f32 %v4184_v23, %v1408_v21 }
 0x14b   :  { %v2985_v28 = vsel %vm2269_vm5, 1.0, %v3313_v53  ;;  %v2237_v42 = vadd.f32 %v4184_v23, %v2173_v14  ;;  %vm1889_vm6 = vcmp.ge.f32.partialorder %v1825_v58, 1.0  ;;  %1310 = vst.msk [vmem:[%s5508_s4 + $0x60] sm:$0xff] %vm1297_vm4, %v2668_v27  ;;  %v1374_v32 = vsub.f32 %v450_v54, %v2668_v27 }
 0x14c   :  { %3049 = vst.msk [vmem:[%s5508_s4 + $0x648] sm:$0xff] %vm1297_vm4, %v2985_v28  ;;  %v2862_v38 = vsel %vm1889_vm6, 1.0, %v3313_v53  ;;  %v3148_v33 = vpack.c.bf16 %v700_v52, %v700_v52  ;;  %vm1149_vm7 = vcmp.ge.f32.partialorder %v4281_v55, 1.0  ;;  %vm1536_vm9 = vcmp.ge.f32.partialorder %v1472_v46, 1.0 }
 0x14d   :  { %989 = vst.msk [vmem:[%s5509_s3 + $0x30] sm:$0xf] %vm976_vm3, %v3116_v26  ;;  %vm2301_vm8 = vcmp.ge.f32.partialorder %v2237_v42, 1.0  ;;  %v2146_v35 = vsub.f32 %v1825_v58, %v2862_v38  ;;  %v2700_v40 = vsel %vm1149_vm7, 1.0, %v3313_v53  ;;  %v2766_v43 = vsel %vm1536_vm9, 1.0, %v3313_v53  ;;  %v4404_v26 = vpop.f32.mrb[30].mxu0 }
 0x14e   :  { %2926 = vst.msk [vmem:[%s5508_s4 + $0x470] sm:$0xff] %vm1297_vm4, %v2862_v38  ;;  %v3017_v9 = vsel %vm2301_vm8, 1.0, %v3313_v53  ;;  %v1438_v45 = vadd.f32 %v4184_v23, %v1374_v32  ;;  %1342 = vst.msk [vmem:[%s5508_s4 + $0x160] sm:$0xff] %vm1297_vm4, %v2700_v40  ;;  %v1406_v54 = vsub.f32 %v4281_v55, %v2700_v40  ;;  %v1793_v16 = vsub.f32 %v1472_v46, %v2766_v43  ;;  %v4415_v42 = vpop.f32.mrb[30].mxu1 }
 0x14f   :  { %1021 = vst.msk [vmem:[%s5509_s3 + $0xb0] sm:$0xf] %vm976_vm3, %v3148_v33  ;;  %v2210_v56 = vadd.f32 %v4184_v23, %v2146_v35  ;;  %v461_v24 = vadd.f32 %v4184_v23, %v3691_v29  ;;  %v589_v55 = vadd.f32 %v4184_v23, %v3693_v30  ;;  %v4375_v2 = vadd.f32 %v4184_v23, %v3703_v11 }
 0x150   :  { %3081 = vst.msk [vmem:[%s5508_s4 + $0x748] sm:$0xff] %vm1297_vm4, %v3017_v9  ;;  %2830 = vst.msk [vmem:[%s5508_s4 + $0x370] sm:$0xff] %vm1297_vm4, %v2766_v43  ;;  %vm1502_vm10 = vcmp.ge.f32.partialorder %v1438_v45, 1.0  ;;  %v1470_v25 = vadd.f32 %v4184_v23, %v1406_v54  ;;  %v4379_v3 = vadd.f32 %v4184_v23, %v3705_v34  ;;  %v1857_v15 = vadd.f32 %v4184_v23, %v1793_v16 }
 0x151   :  { %vm2274_vm11 = vcmp.ge.f32.partialorder %v2210_v56, 1.0  ;;  %v2732_v51 = vsel %vm1502_vm10, 1.0, %v3313_v53  ;;  %v671_v29 = vmax.f32 %v461_v24, 0.0  ;;  %vm1120_vm13 = vcmp.ge.f32.partialorder %v461_v24, 1.0 }
 0x152   :  { %v2990_v47 = vsel %vm2274_vm11, 1.0, %v3313_v53  ;;  %2796 = vst.msk [vmem:[%s5508_s4 + $0x260] sm:$0xff] %vm1297_vm4, %v2732_v51  ;;  %v1759_v30 = vsub.f32 %v1438_v45, %v2732_v51  ;;  %vm1534_vm12 = vcmp.ge.f32.partialorder %v1470_v25, 1.0  ;;  %vm1921_vm14 = vcmp.ge.f32.partialorder %v1857_v15, 1.0 }
 0x153   :  { %3054 = vst.msk [vmem:[%s5508_s4 + $0x670] sm:$0xff] %vm1297_vm4, %v2990_v47  ;;  %v2764_v11 = vsel %vm1534_vm12, 1.0, %v3313_v53  ;;  %v3119_v34 = vpack.c.bf16 %v671_v29, %v671_v29  ;;  %v2671_v12 = vsel %vm1120_vm13, 1.0, %v3313_v53  ;;  %v2894_v10 = vsel %vm1921_vm14, 1.0, %v3313_v53  ;;  %v4458_v29 = vpop.f32.mrb[31].mxu0 }
 0x154   :  { %v1823_v14 = vadd.f32 %v4184_v23, %v1759_v30  ;;  %2828 = vst.msk [vmem:[%s5508_s4 + $0x360] sm:$0xff] %vm1297_vm4, %v2764_v11  ;;  %v1791_v58 = vsub.f32 %v1470_v25, %v2764_v11  ;;  %1313 = vst.msk [vmem:[%s5508_s4 + $0x78] sm:$0xff] %vm1297_vm4, %v2671_v12  ;;  %v1377_v21 = vsub.f32 %v461_v24, %v2671_v12  ;;  %v703_v52 = vmax.f32 %v589_v55, 0.0 }
 0x155   :  { %2958 = vst.msk [vmem:[%s5508_s4 + $0x570] sm:$0xff] %vm1297_vm4, %v2894_v10  ;;  %v2178_v27 = vsub.f32 %v1857_v15, %v2894_v10  ;;  %vm1152_vm15 = vcmp.ge.f32.partialorder %v589_v55, 1.0  ;;  %v669_v28 = vmax.f32 %v4375_v2, 0.0  ;;  %vm1118_vm7 = vcmp.ge.f32.partialorder %v4375_v2, 1.0 }
 0x156   :  { %992 = vst.msk [vmem:[%s5509_s3 + $0x3c] sm:$0xf] %vm976_vm3, %v3119_v34  ;;  %vm1887_vm0 = vcmp.ge.f32.partialorder %v1823_v14, 1.0  ;;  %v1855_v46 = vadd.f32 %v4184_v23, %v1791_v58  ;;  %v1441_v38 = vadd.f32 %v4184_v23, %v1377_v21  ;;  %v2703_v32 = vsel %vm1152_vm15, 1.0, %v3313_v53 }
 0x157   :  { %v2242_v33 = vadd.f32 %v4184_v23, %v2178_v27  ;;  %v2860_v35 = vsel %vm1887_vm0, 1.0, %v3313_v53  ;;  %v3151_v40 = vpack.c.bf16 %v703_v52, %v703_v52  ;;  %1345 = vst.msk [vmem:[%s5508_s4 + $0x178] sm:$0xff] %vm1297_vm4, %v2703_v32  ;;  %v1409_v9 = vsub.f32 %v589_v55, %v2703_v32 }
 0x158   :  { %2924 = vst.msk [vmem:[%s5508_s4 + $0x460] sm:$0xff] %vm1297_vm4, %v2860_v35  ;;  %v2144_v43 = vsub.f32 %v1823_v14, %v2860_v35  ;;  %vm1919_vm1 = vcmp.ge.f32.partialorder %v1855_v46, 1.0  ;;  %vm1505_vm2 = vcmp.ge.f32.partialorder %v1441_v38, 1.0  ;;  %v3117_v45 = vpack.c.bf16 %v669_v28, %v669_v28 }
 0x159   :  { %vm2306_vm5 = vcmp.ge.f32.partialorder %v2242_v33, 1.0  ;;  %v2892_v54 = vsel %vm1919_vm1, 1.0, %v3313_v53  ;;  %v2735_v56 = vsel %vm1505_vm2, 1.0, %v3313_v53  ;;  %1024 = vst.msk [vmem:[%s5509_s3 + $0xbc] sm:$0xf] %vm976_vm3, %v3151_v40  ;;  %v1473_v16 = vadd.f32 %v4184_v23, %v1409_v9  ;;  %v4515_v9 = vpop.f32.mrb[31].mxu1 }
 0x15a   :  { %v3022_v24 = vsel %vm2306_vm5, 1.0, %v3313_v53  ;;  %v2208_v55 = vadd.f32 %v4184_v23, %v2144_v43  ;;  %2956 = vst.msk [vmem:[%s5508_s4 + $0x560] sm:$0xff] %vm1297_vm4, %v2892_v54  ;;  %v2176_v25 = vsub.f32 %v1855_v46, %v2892_v54  ;;  %2799 = vst.msk [vmem:[%s5508_s4 + $0x278] sm:$0xff] %vm1297_vm4, %v2735_v56  ;;  %v1762_v15 = vsub.f32 %v1441_v38, %v2735_v56 }
 0x15b   :  { %990 = vst.msk [vmem:[%s5509_s3 + $0x34] sm:$0xf] %vm976_vm3, %v3117_v45  ;;  %vm1537_vm6 = vcmp.ge.f32.partialorder %v1473_v16, 1.0  ;;  %v701_v51 = vmax.f32 %v4379_v3, 0.0  ;;  %vm1150_vm8 = vcmp.ge.f32.partialorder %v4379_v3, 1.0  ;;  %v2669_v10 = vsel %vm1118_vm7, 1.0, %v3313_v53 }
 0x15c   :  { %3086 = vst.msk [vmem:[%s5508_s4 + $0x770] sm:$0xff] %vm1297_vm4, %v3022_v24  ;;  %vm2272_vm9 = vcmp.ge.f32.partialorder %v2208_v55, 1.0  ;;  %v2240_v47 = vadd.f32 %v4184_v23, %v2176_v25  ;;  %v1826_v30 = vadd.f32 %v4184_v23, %v1762_v15  ;;  %v2767_v11 = vsel %vm1537_vm6, 1.0, %v3313_v53  ;;  %1311 = vst.msk [vmem:[%s5508_s4 + $0x68] sm:$0xff] %vm1297_vm4, %v2669_v10 }
 0x15d   :  { %v2988_v34 = vsel %vm2272_vm9, 1.0, %v3313_v53  ;;  %2831 = vst.msk [vmem:[%s5508_s4 + $0x378] sm:$0xff] %vm1297_vm4, %v2767_v11  ;;  %v1794_v12 = vsub.f32 %v1473_v16, %v2767_v11  ;;  %v3149_v14 = vpack.c.bf16 %v701_v51, %v701_v51  ;;  %v1375_v58 = vsub.f32 %v4375_v2, %v2669_v10 }
 0x15e   :  { %3052 = vst.msk [vmem:[%s5508_s4 + $0x660] sm:$0xff] %vm1297_vm4, %v2988_v34  ;;  %vm2304_vm10 = vcmp.ge.f32.partialorder %v2240_v47, 1.0  ;;  %vm1890_vm11 = vcmp.ge.f32.partialorder %v1826_v30, 1.0  ;;  %v2701_v21 = vsel %vm1150_vm8, 1.0, %v3313_v53  ;;  %v474_v32 = vadd.f32 %v4184_v23, %v3740_v60 }
 0x15f   :  { %v3020_v27 = vsel %vm2304_vm10, 1.0, %v3313_v53  ;;  %v2863_v52 = vsel %vm1890_vm11, 1.0, %v3313_v53  ;;  %v1858_v28 = vadd.f32 %v4184_v23, %v1794_v12  ;;  %1022 = vst.msk [vmem:[%s5509_s3 + $0xb4] sm:$0xf] %vm976_vm3, %v3149_v14  ;;  %v1407_v2 = vsub.f32 %v4379_v3, %v2701_v21 }
 0x160   :  { %1343 = vst.msk [vmem:[%s5508_s4 + $0x168] sm:$0xff] %vm1297_vm4, %v2701_v21  ;;  %3084 = vst.msk [vmem:[%s5508_s4 + $0x760] sm:$0xff] %vm1297_vm4, %v3020_v27  ;;  %v2147_v46 = vsub.f32 %v1826_v30, %v2863_v52  ;;  %v1439_v38 = vadd.f32 %v4184_v23, %v1375_v58  ;;  %v602_v33 = vadd.f32 %v4184_v23, %v3742_v61  ;;  %v674_v45 = vmax.f32 %v474_v32, 0.0 }
 0x161   :  { %2927 = vst.msk [vmem:[%s5508_s4 + $0x478] sm:$0xff] %vm1297_vm4, %v2863_v52  ;;  %vm1922_vm12 = vcmp.ge.f32.partialorder %v1858_v28, 1.0  ;;  %v1471_v3 = vadd.f32 %v4184_v23, %v1407_v2  ;;  %v4509_v35 = vadd.f32 %v4184_v23, %v3752_v0  ;;  %v4513_v40 = vadd.f32 %v4184_v23, %v3754_v1 }
 0x162   :  { %v2211_v43 = vadd.f32 %v4184_v23, %v2147_v46  ;;  %v2895_v60 = vsel %vm1922_vm12, 1.0, %v3313_v53  ;;  %vm1503_vm13 = vcmp.ge.f32.partialorder %v1439_v38, 1.0  ;;  %vm1123_vm15 = vcmp.ge.f32.partialorder %v474_v32, 1.0 }
 0x163   :  { %2959 = vst.msk [vmem:[%s5508_s4 + $0x578] sm:$0xff] %vm1297_vm4, %v2895_v60  ;;  %v2179_v61 = vsub.f32 %v1858_v28, %v2895_v60  ;;  %v2733_v0 = vsel %vm1503_vm13, 1.0, %v3313_v53  ;;  %vm1535_vm14 = vcmp.ge.f32.partialorder %v1471_v3, 1.0  ;;  %v3122_v56 = vpack.c.bf16 %v674_v45, %v674_v45 }
 0x164   :  { %vm2275_vm0 = vcmp.ge.f32.partialorder %v2211_v43, 1.0  ;;  %2797 = vst.msk [vmem:[%s5508_s4 + $0x268] sm:$0xff] %vm1297_vm4, %v2733_v0  ;;  %v1760_v1 = vsub.f32 %v1439_v38, %v2733_v0  ;;  %v2765_v54 = vsel %vm1535_vm14, 1.0, %v3313_v53  ;;  %v2674_v25 = vsel %vm1123_vm15, 1.0, %v3313_v53 }
 0x165   :  { %v2991_v16 = vsel %vm2275_vm0, 1.0, %v3313_v53  ;;  %v2243_v24 = vadd.f32 %v4184_v23, %v2179_v61  ;;  %2829 = vst.msk [vmem:[%s5508_s4 + $0x368] sm:$0xff] %vm1297_vm4, %v2765_v54  ;;  %v1792_v55 = vsub.f32 %v1471_v3, %v2765_v54  ;;  %1316 = vst.msk [vmem:[%s5508_s4 + $0x90] sm:$0xff] %vm1297_vm4, %v2674_v25  ;;  %v1380_v51 = vsub.f32 %v474_v32, %v2674_v25 }
 0x166   :  { %3055 = vst.msk [vmem:[%s5508_s4 + $0x678] sm:$0xff] %vm1297_vm4, %v2991_v16  ;;  %v1824_v15 = vadd.f32 %v4184_v23, %v1760_v1  ;;  %v706_v47 = vmax.f32 %v602_v33, 0.0  ;;  %vm1155_vm1 = vcmp.ge.f32.partialorder %v602_v33, 1.0  ;;  %v672_v34 = vmax.f32 %v4509_v35, 0.0 }
 0x167   :  { %995 = vst.msk [vmem:[%s5509_s3 + $0x48] sm:$0xf] %vm976_vm3, %v3122_v56  ;;  %vm2307_vm2 = vcmp.ge.f32.partialorder %v2243_v24, 1.0  ;;  %v1856_v30 = vadd.f32 %v4184_v23, %v1792_v55  ;;  %v2706_v11 = vsel %vm1155_vm1, 1.0, %v3313_v53  ;;  %v1444_v10 = vadd.f32 %v4184_v23, %v1380_v51 }
 0x168   :  { %v3023_v12 = vsel %vm2307_vm2, 1.0, %v3313_v53  ;;  %vm1888_vm5 = vcmp.ge.f32.partialorder %v1824_v15, 1.0  ;;  %v3154_v14 = vpack.c.bf16 %v706_v47, %v706_v47  ;;  %1348 = vst.msk [vmem:[%s5508_s4 + $0x190] sm:$0xff] %vm1297_vm4, %v2706_v11  ;;  %v1412_v21 = vsub.f32 %v602_v33, %v2706_v11 }
 0x169   :  { %3087 = vst.msk [vmem:[%s5508_s4 + $0x778] sm:$0xff] %vm1297_vm4, %v3023_v12  ;;  %v2861_v58 = vsel %vm1888_vm5, 1.0, %v3313_v53  ;;  %vm1920_vm6 = vcmp.ge.f32.partialorder %v1856_v30, 1.0  ;;  %v3120_v27 = vpack.c.bf16 %v672_v34, %v672_v34  ;;  %vm1508_vm7 = vcmp.ge.f32.partialorder %v1444_v10, 1.0 }
 0x16a   :  { %2925 = vst.msk [vmem:[%s5508_s4 + $0x468] sm:$0xff] %vm1297_vm4, %v2861_v58  ;;  %v2145_v52 = vsub.f32 %v1824_v15, %v2861_v58  ;;  %v2893_v28 = vsel %vm1920_vm6, 1.0, %v3313_v53  ;;  %vm1121_vm8 = vcmp.ge.f32.partialorder %v4509_v35, 1.0  ;;  %v2738_v46 = vsel %vm1508_vm7, 1.0, %v3313_v53 }
 0x16b   :  { %1027 = vst.msk [vmem:[%s5509_s3 + $0xc8] sm:$0xf] %vm976_vm3, %v3154_v14  ;;  %v2177_v2 = vsub.f32 %v1856_v30, %v2893_v28  ;;  %v1476_v38 = vadd.f32 %v4184_v23, %v1412_v21  ;;  %993 = vst.msk [vmem:[%s5509_s3 + $0x40] sm:$0xf] %vm976_vm3, %v3120_v27  ;;  %v2672_v32 = vsel %vm1121_vm8, 1.0, %v3313_v53  ;;  %v1765_v3 = vsub.f32 %v1444_v10, %v2738_v46 }
 0x16c   :  { %2957 = vst.msk [vmem:[%s5508_s4 + $0x568] sm:$0xff] %vm1297_vm4, %v2893_v28  ;;  %v2209_v33 = vadd.f32 %v4184_v23, %v2145_v52  ;;  %2802 = vst.msk [vmem:[%s5508_s4 + $0x290] sm:$0xff] %vm1297_vm4, %v2738_v46  ;;  %v1378_v43 = vsub.f32 %v4509_v35, %v2672_v32  ;;  %v704_v60 = vmax.f32 %v4513_v40, 0.0  ;;  %vm1153_vm10 = vcmp.ge.f32.partialorder %v4513_v40, 1.0 }
 0x16d   :  { %1314 = vst.msk [vmem:[%s5508_s4 + $0x80] sm:$0xff] %vm1297_vm4, %v2672_v32  ;;  %v2241_v45 = vadd.f32 %v4184_v23, %v2177_v2  ;;  %vm1540_vm9 = vcmp.ge.f32.partialorder %v1476_v38, 1.0  ;;  %v477_v61 = vadd.f32 %v4184_v23, %v3759_v5  ;;  %v1829_v0 = vadd.f32 %v4184_v23, %v1765_v3 }
 0x16e   :  { %vm2273_vm11 = vcmp.ge.f32.partialorder %v2209_v33, 1.0  ;;  %v2770_v1 = vsel %vm1540_vm9, 1.0, %v3313_v53  ;;  %v1442_v54 = vadd.f32 %v4184_v23, %v1378_v43  ;;  %v3152_v16 = vpack.c.bf16 %v704_v60, %v704_v60 }
 0x16f   :  { %v2989_v56 = vsel %vm2273_vm11, 1.0, %v3313_v53  ;;  %vm2305_vm12 = vcmp.ge.f32.partialorder %v2241_v45, 1.0  ;;  %2834 = vst.msk [vmem:[%s5508_s4 + $0x390] sm:$0xff] %vm1297_vm4, %v2770_v1  ;;  %v1797_v35 = vsub.f32 %v1476_v38, %v2770_v1  ;;  %vm1893_vm13 = vcmp.ge.f32.partialorder %v1829_v0, 1.0 }
 0x170   :  { %3053 = vst.msk [vmem:[%s5508_s4 + $0x668] sm:$0xff] %vm1297_vm4, %v2989_v56  ;;  %v3021_v5 = vsel %vm2305_vm12, 1.0, %v3313_v53  ;;  %vm1506_vm14 = vcmp.ge.f32.partialorder %v1442_v54, 1.0  ;;  %v2704_v24 = vsel %vm1153_vm10, 1.0, %v3313_v53  ;;  %v2866_v55 = vsel %vm1893_vm13, 1.0, %v3313_v53 }
 0x171   :  { %3085 = vst.msk [vmem:[%s5508_s4 + $0x768] sm:$0xff] %vm1297_vm4, %v3021_v5  ;;  %v1861_v25 = vadd.f32 %v4184_v23, %v1797_v35  ;;  %v2736_v15 = vsel %vm1506_vm14, 1.0, %v3313_v53  ;;  %1346 = vst.msk [vmem:[%s5508_s4 + $0x180] sm:$0xff] %vm1297_vm4, %v2704_v24  ;;  %v1410_v51 = vsub.f32 %v4513_v40, %v2704_v24  ;;  %v2150_v47 = vsub.f32 %v1829_v0, %v2866_v55 }
 0x172   :  { %1025 = vst.msk [vmem:[%s5509_s3 + $0xc0] sm:$0xf] %vm976_vm3, %v3152_v16  ;;  %v1763_v30 = vsub.f32 %v1442_v54, %v2736_v15  ;;  %v675_v11 = vmax.f32 %v477_v61, 0.0  ;;  %vm1124_vm15 = vcmp.ge.f32.partialorder %v477_v61, 1.0  ;;  %v605_v40 = vadd.f32 %v4184_v23, %v3761_v6 }
 0x173   :  { %2930 = vst.msk [vmem:[%s5508_s4 + $0x490] sm:$0xff] %vm1297_vm4, %v2866_v55  ;;  %2800 = vst.msk [vmem:[%s5508_s4 + $0x280] sm:$0xff] %vm1297_vm4, %v2736_v15  ;;  %vm1925_vm0 = vcmp.ge.f32.partialorder %v1861_v25, 1.0  ;;  %v1474_v34 = vadd.f32 %v4184_v23, %v1410_v51  ;;  %v2675_v12 = vsel %vm1124_vm15, 1.0, %v3313_v53  ;;  %v2214_v10 = vadd.f32 %v4184_v23, %v2150_v47 }
 0x174   :  { %v2898_v14 = vsel %vm1925_vm0, 1.0, %v3313_v53  ;;  %v1827_v58 = vadd.f32 %v4184_v23, %v1763_v30  ;;  %v3123_v21 = vpack.c.bf16 %v675_v11, %v675_v11  ;;  %1317 = vst.msk [vmem:[%s5508_s4 + $0x98] sm:$0xff] %vm1297_vm4, %v2675_v12  ;;  %v1381_v6 = vsub.f32 %v477_v61, %v2675_v12 }
 0x175   :  { %2962 = vst.msk [vmem:[%s5508_s4 + $0x590] sm:$0xff] %vm1297_vm4, %v2898_v14  ;;  %v2182_v27 = vsub.f32 %v1861_v25, %v2898_v14  ;;  %vm1538_vm1 = vcmp.ge.f32.partialorder %v1474_v34, 1.0  ;;  %v707_v52 = vmax.f32 %v605_v40, 0.0  ;;  %vm2278_vm2 = vcmp.ge.f32.partialorder %v2214_v10, 1.0 }
 0x176   :  { %vm1891_vm5 = vcmp.ge.f32.partialorder %v1827_v58, 1.0  ;;  %v2768_v28 = vsel %vm1538_vm1, 1.0, %v3313_v53  ;;  %996 = vst.msk [vmem:[%s5509_s3 + $0x4c] sm:$0xf] %vm976_vm3, %v3123_v21  ;;  %vm1156_vm6 = vcmp.ge.f32.partialorder %v605_v40, 1.0  ;;  %v2994_v2 = vsel %vm2278_vm2, 1.0, %v3313_v53 }
 0x177   :  { %v2246_v46 = vadd.f32 %v4184_v23, %v2182_v27  ;;  %v2864_v38 = vsel %vm1891_vm5, 1.0, %v3313_v53  ;;  %2832 = vst.msk [vmem:[%s5508_s4 + $0x380] sm:$0xff] %vm1297_vm4, %v2768_v28  ;;  %v1795_v32 = vsub.f32 %v1474_v34, %v2768_v28  ;;  %3058 = vst.msk [vmem:[%s5508_s4 + $0x690] sm:$0xff] %vm1297_vm4, %v2994_v2  ;;  %v1445_v3 = vadd.f32 %v4184_v23, %v1381_v6 }
 0x178   :  { %2928 = vst.msk [vmem:[%s5508_s4 + $0x480] sm:$0xff] %vm1297_vm4, %v2864_v38  ;;  %v2148_v33 = vsub.f32 %v1827_v58, %v2864_v38  ;;  %v3155_v43 = vpack.c.bf16 %v707_v52, %v707_v52  ;;  %v2707_v60 = vsel %vm1156_vm6, 1.0, %v3313_v53  ;;  %v469_v0 = vadd.f32 %v4184_v23, %v3769_v17 }
 0x179   :  { %vm2310_vm7 = vcmp.ge.f32.partialorder %v2246_v46, 1.0  ;;  %v1859_v45 = vadd.f32 %v4184_v23, %v1795_v32  ;;  %1349 = vst.msk [vmem:[%s5508_s4 + $0x198] sm:$0xff] %vm1297_vm4, %v2707_v60  ;;  %v1413_v61 = vsub.f32 %v605_v40, %v2707_v60  ;;  %vm1509_vm8 = vcmp.ge.f32.partialorder %v1445_v3, 1.0 }
 0x17a   :  { %v3026_v1 = vsel %vm2310_vm7, 1.0, %v3313_v53  ;;  %v2212_v54 = vadd.f32 %v4184_v23, %v2148_v33  ;;  %1028 = vst.msk [vmem:[%s5509_s3 + $0xcc] sm:$0xf] %vm976_vm3, %v3155_v43  ;;  %v597_v56 = vadd.f32 %v4184_v23, %v3771_v20  ;;  %v2739_v17 = vsel %vm1509_vm8, 1.0, %v3313_v53 }
 0x17b   :  { %3090 = vst.msk [vmem:[%s5508_s4 + $0x790] sm:$0xff] %vm1297_vm4, %v3026_v1  ;;  %vm1923_vm9 = vcmp.ge.f32.partialorder %v1859_v45, 1.0  ;;  %v1477_v35 = vadd.f32 %v4184_v23, %v1413_v61  ;;  %v673_v16 = vmax.f32 %v469_v0, 0.0  ;;  %2803 = vst.msk [vmem:[%s5508_s4 + $0x298] sm:$0xff] %vm1297_vm4, %v2739_v17  ;;  %v1766_v20 = vsub.f32 %v1445_v3, %v2739_v17 }
 0x17c   :  { %vm2276_vm10 = vcmp.ge.f32.partialorder %v2212_v54, 1.0  ;;  %v2896_v5 = vsel %vm1923_vm9, 1.0, %v3313_v53  ;;  %vm1122_vm11 = vcmp.ge.f32.partialorder %v469_v0, 1.0  ;;  %v705_v30 = vmax.f32 %v597_v56, 0.0 }
 0x17d   :  { %v2992_v24 = vsel %vm2276_vm10, 1.0, %v3313_v53  ;;  %2960 = vst.msk [vmem:[%s5508_s4 + $0x580] sm:$0xff] %vm1297_vm4, %v2896_v5  ;;  %v2180_v55 = vsub.f32 %v1859_v45, %v2896_v5  ;;  %vm1541_vm12 = vcmp.ge.f32.partialorder %v1477_v35, 1.0  ;;  %v3121_v25 = vpack.c.bf16 %v673_v16, %v673_v16 }
 0x17e   :  { %3056 = vst.msk [vmem:[%s5508_s4 + $0x680] sm:$0xff] %vm1297_vm4, %v2992_v24  ;;  %v1830_v15 = vadd.f32 %v4184_v23, %v1766_v20  ;;  %v2771_v51 = vsel %vm1541_vm12, 1.0, %v3313_v53  ;;  %v2673_v47 = vsel %vm1122_vm11, 1.0, %v3313_v53  ;;  %vm1154_vm13 = vcmp.ge.f32.partialorder %v597_v56, 1.0 }
 0x17f   :  { %v2244_v11 = vadd.f32 %v4184_v23, %v2180_v55  ;;  %2835 = vst.msk [vmem:[%s5508_s4 + $0x398] sm:$0xff] %vm1297_vm4, %v2771_v51  ;;  %v1798_v34 = vsub.f32 %v1477_v35, %v2771_v51  ;;  %1315 = vst.msk [vmem:[%s5508_s4 + $0x88] sm:$0xff] %vm1297_vm4, %v2673_v47  ;;  %v1379_v12 = vsub.f32 %v469_v0, %v2673_v47  ;;  %v2705_v10 = vsel %vm1154_vm13, 1.0, %v3313_v53 }
 0x180   :  { %994 = vst.msk [vmem:[%s5509_s3 + $0x44] sm:$0xf] %vm976_vm3, %v3121_v25  ;;  %vm1894_vm14 = vcmp.ge.f32.partialorder %v1830_v15, 1.0  ;;  %v3153_v40 = vpack.c.bf16 %v705_v30, %v705_v30  ;;  %v490_v14 = vadd.f32 %v4184_v23, %v3816_v13  ;;  %v1411_v52 = vsub.f32 %v597_v56, %v2705_v10 }
 0x181   :  { %vm2308_vm15 = vcmp.ge.f32.partialorder %v2244_v11, 1.0  ;;  %v2867_v58 = vsel %vm1894_vm14, 1.0, %v3313_v53  ;;  %v1862_v21 = vadd.f32 %v4184_v23, %v1798_v34  ;;  %v1443_v27 = vadd.f32 %v4184_v23, %v1379_v12  ;;  %1347 = vst.msk [vmem:[%s5508_s4 + $0x188] sm:$0xff] %vm1297_vm4, %v2705_v10 }
 0x182   :  { %v3024_v6 = vsel %vm2308_vm15, 1.0, %v3313_v53  ;;  %2931 = vst.msk [vmem:[%s5508_s4 + $0x498] sm:$0xff] %vm1297_vm4, %v2867_v58  ;;  %v2151_v13 = vsub.f32 %v1830_v15, %v2867_v58  ;;  %v678_v28 = vmax.f32 %v490_v14, 0.0  ;;  %vm1127_vm2 = vcmp.ge.f32.partialorder %v490_v14, 1.0 }
 0x183   :  { %1026 = vst.msk [vmem:[%s5509_s3 + $0xc4] sm:$0xf] %vm976_vm3, %v3153_v40  ;;  %vm1926_vm0 = vcmp.ge.f32.partialorder %v1862_v21, 1.0  ;;  %vm1507_vm1 = vcmp.ge.f32.partialorder %v1443_v27, 1.0  ;;  %v618_v2 = vadd.f32 %v4184_v23, %v3818_v18  ;;  %v1475_v33 = vadd.f32 %v4184_v23, %v1411_v52 }
 0x184   :  { %3088 = vst.msk [vmem:[%s5508_s4 + $0x780] sm:$0xff] %vm1297_vm4, %v3024_v6  ;;  %v2215_v46 = vadd.f32 %v4184_v23, %v2151_v13  ;;  %v2899_v38 = vsel %vm1926_vm0, 1.0, %v3313_v53  ;;  %v2737_v32 = vsel %vm1507_vm1, 1.0, %v3313_v53  ;;  %v3126_v43 = vpack.c.bf16 %v678_v28, %v678_v28 }
 0x185   :  { %2963 = vst.msk [vmem:[%s5508_s4 + $0x598] sm:$0xff] %vm1297_vm4, %v2899_v38  ;;  %v2183_v3 = vsub.f32 %v1862_v21, %v2899_v38  ;;  %2801 = vst.msk [vmem:[%s5508_s4 + $0x288] sm:$0xff] %vm1297_vm4, %v2737_v32  ;;  %v1764_v18 = vsub.f32 %v1443_v27, %v2737_v32  ;;  %v2678_v60 = vsel %vm1127_vm2, 1.0, %v3313_v53  ;;  %vm1539_vm6 = vcmp.ge.f32.partialorder %v1475_v33, 1.0 }
 0x186   :  { %vm2279_vm5 = vcmp.ge.f32.partialorder %v2215_v46, 1.0  ;;  %1320 = vst.msk [vmem:[%s5508_s4 + $0xb0] sm:$0xff] %vm1297_vm4, %v2678_v60  ;;  %v1384_v45 = vsub.f32 %v490_v14, %v2678_v60  ;;  %v710_v61 = vmax.f32 %v618_v2, 0.0  ;;  %v2769_v56 = vsel %vm1539_vm6, 1.0, %v3313_v53 }
 0x187   :  { %v2995_v0 = vsel %vm2279_vm5, 1.0, %v3313_v53  ;;  %v2247_v1 = vadd.f32 %v4184_v23, %v2183_v3  ;;  %v1828_v54 = vadd.f32 %v4184_v23, %v1764_v18  ;;  %999 = vst.msk [vmem:[%s5509_s3 + $0x58] sm:$0xf] %vm976_vm3, %v3126_v43  ;;  %v1796_v17 = vsub.f32 %v1475_v33, %v2769_v56 }
 0x188   :  { %3059 = vst.msk [vmem:[%s5508_s4 + $0x698] sm:$0xff] %vm1297_vm4, %v2995_v0  ;;  %2833 = vst.msk [vmem:[%s5508_s4 + $0x388] sm:$0xff] %vm1297_vm4, %v2769_v56  ;;  %v1448_v35 = vadd.f32 %v4184_v23, %v1384_v45  ;;  %v3158_v16 = vpack.c.bf16 %v710_v61, %v710_v61  ;;  %vm1159_vm7 = vcmp.ge.f32.partialorder %v618_v2, 1.0  ;;  %v482_v20 = vadd.f32 %v4184_v23, %v3825_v49 }
 0x189   :  { %vm2311_vm8 = vcmp.ge.f32.partialorder %v2247_v1, 1.0  ;;  %vm1892_vm9 = vcmp.ge.f32.partialorder %v1828_v54, 1.0  ;;  %v2710_v5 = vsel %vm1159_vm7, 1.0, %v3313_v53  ;;  %v1860_v25 = vadd.f32 %v4184_v23, %v1796_v17 }
 0x18a   :  { %v3027_v24 = vsel %vm2311_vm8, 1.0, %v3313_v53  ;;  %v2865_v55 = vsel %vm1892_vm9, 1.0, %v3313_v53  ;;  %vm1512_vm10 = vcmp.ge.f32.partialorder %v1448_v35, 1.0  ;;  %1031 = vst.msk [vmem:[%s5509_s3 + $0xd8] sm:$0xf] %vm976_vm3, %v3158_v16  ;;  %v1416_v51 = vsub.f32 %v618_v2, %v2710_v5 }
 0x18b   :  { %1352 = vst.msk [vmem:[%s5508_s4 + $0x1b0] sm:$0xff] %vm1297_vm4, %v2710_v5  ;;  %3091 = vst.msk [vmem:[%s5508_s4 + $0x798] sm:$0xff] %vm1297_vm4, %v3027_v24  ;;  %v2149_v49 = vsub.f32 %v1828_v54, %v2865_v55  ;;  %v2742_v15 = vsel %vm1512_vm10, 1.0, %v3313_v53  ;;  %v676_v47 = vmax.f32 %v482_v20, 0.0  ;;  %vm1924_vm11 = vcmp.ge.f32.partialorder %v1860_v25, 1.0 }
 0x18c   :  { %2929 = vst.msk [vmem:[%s5508_s4 + $0x488] sm:$0xff] %vm1297_vm4, %v2865_v55  ;;  %2806 = vst.msk [vmem:[%s5508_s4 + $0x2b0] sm:$0xff] %vm1297_vm4, %v2742_v15  ;;  %v1769_v30 = vsub.f32 %v1448_v35, %v2742_v15  ;;  %vm1125_vm12 = vcmp.ge.f32.partialorder %v482_v20, 1.0  ;;  %v610_v11 = vadd.f32 %v4184_v23, %v3845_v7  ;;  %v2897_v12 = vsel %vm1924_vm11, 1.0, %v3313_v53 }
 0x18d   :  { %v2213_v34 = vadd.f32 %v4184_v23, %v2149_v49  ;;  %v1480_v40 = vadd.f32 %v4184_v23, %v1416_v51  ;;  %v3124_v10 = vpack.c.bf16 %v676_v47, %v676_v47  ;;  %2961 = vst.msk [vmem:[%s5508_s4 + $0x588] sm:$0xff] %vm1297_vm4, %v2897_v12  ;;  %v2181_v14 = vsub.f32 %v1860_v25, %v2897_v12  ;;  %v4905_v47 = vld [vmem:[%s5507_s2] ss:$0 sm:$0xff] }
 0x18e   :  { %v1833_v58 = vadd.f32 %v4184_v23, %v1769_v30  ;;  %v2676_v21 = vsel %vm1125_vm12, 1.0, %v3313_v53  ;;  %v708_v27 = vmax.f32 %v610_v11, 0.0  ;;  %vm1157_vm15 = vcmp.ge.f32.partialorder %v610_v11, 1.0 }
 0x18f   :  { %vm2277_vm13 = vcmp.ge.f32.partialorder %v2213_v34, 1.0  ;;  %vm1544_vm14 = vcmp.ge.f32.partialorder %v1480_v40, 1.0  ;;  %997 = vst.msk [vmem:[%s5509_s3 + $0x50] sm:$0xf] %vm976_vm3, %v3124_v10  ;;  %v1382_v7 = vsub.f32 %v482_v20, %v2676_v21  ;;  %v2245_v13 = vadd.f32 %v4184_v23, %v2181_v14 }
 0x190   :  { %1318 = vst.msk [vmem:[%s5508_s4 + $0xa0] sm:$0xff] %vm1297_vm4, %v2676_v21  ;;  %v2993_v6 = vsel %vm2277_vm13, 1.0, %v3313_v53  ;;  %vm1897_vm0 = vcmp.ge.f32.partialorder %v1833_v58, 1.0  ;;  %v2774_v52 = vsel %vm1544_vm14, 1.0, %v3313_v53  ;;  %v3156_v38 = vpack.c.bf16 %v708_v27, %v708_v27 }
 0x191   :  { %3057 = vst.msk [vmem:[%s5508_s4 + $0x688] sm:$0xff] %vm1297_vm4, %v2993_v6  ;;  %v2870_v28 = vsel %vm1897_vm0, 1.0, %v3313_v53  ;;  %2838 = vst.msk [vmem:[%s5508_s4 + $0x3b0] sm:$0xff] %vm1297_vm4, %v2774_v52  ;;  %v1801_v2 = vsub.f32 %v1480_v40, %v2774_v52  ;;  %v1446_v46 = vadd.f32 %v4184_v23, %v1382_v7  ;;  %vm2309_vm1 = vcmp.ge.f32.partialorder %v2245_v13, 1.0 }
 0x192   :  { %2934 = vst.msk [vmem:[%s5508_s4 + $0x4b0] sm:$0xff] %vm1297_vm4, %v2870_v28  ;;  %v2154_v32 = vsub.f32 %v1833_v58, %v2870_v28  ;;  %v2708_v33 = vsel %vm1157_vm15, 1.0, %v3313_v53  ;;  %v493_v3 = vadd.f32 %v4184_v23, %v3883_v39  ;;  %v3025_v18 = vsel %vm2309_vm1, 1.0, %v3313_v53 }
 0x193   :  { %v1865_v43 = vadd.f32 %v4184_v23, %v1801_v2  ;;  %vm1510_vm2 = vcmp.ge.f32.partialorder %v1446_v46, 1.0  ;;  %1029 = vst.msk [vmem:[%s5509_s3 + $0xd0] sm:$0xf] %vm976_vm3, %v3156_v38  ;;  %v1414_v60 = vsub.f32 %v610_v11, %v2708_v33  ;;  %v621_v25 = vadd.f32 %v4184_v23, %v3902_v48 }
 0x194   :  { %1350 = vst.msk [vmem:[%s5508_s4 + $0x1a0] sm:$0xff] %vm1297_vm4, %v2708_v33  ;;  %3089 = vst.msk [vmem:[%s5508_s4 + $0x788] sm:$0xff] %vm1297_vm4, %v3025_v18  ;;  %v2218_v39 = vadd.f32 %v4184_v23, %v2154_v32  ;;  %v2740_v45 = vsel %vm1510_vm2, 1.0, %v3313_v53  ;;  %v679_v61 = vmax.f32 %v493_v3, 0.0  ;;  %vm1128_vm5 = vcmp.ge.f32.partialorder %v493_v3, 1.0 }
 0x195   :  { %vm1929_vm6 = vcmp.ge.f32.partialorder %v1865_v43, 1.0  ;;  %2804 = vst.msk [vmem:[%s5508_s4 + $0x2a0] sm:$0xff] %vm1297_vm4, %v2740_v45  ;;  %v1767_v0 = vsub.f32 %v1446_v46, %v2740_v45  ;;  %v1478_v1 = vadd.f32 %v4184_v23, %v1414_v60  ;;  %v2679_v54 = vsel %vm1128_vm5, 1.0, %v3313_v53 }
 0x196   :  { %vm2282_vm7 = vcmp.ge.f32.partialorder %v2218_v39, 1.0  ;;  %v2902_v56 = vsel %vm1929_vm6, 1.0, %v3313_v53  ;;  %v3127_v17 = vpack.c.bf16 %v679_v61, %v679_v61  ;;  %1321 = vst.msk [vmem:[%s5508_s4 + $0xb8] sm:$0xff] %vm1297_vm4, %v2679_v54  ;;  %v1385_v35 = vsub.f32 %v493_v3, %v2679_v54 }
 0x197   :  { %v2998_v16 = vsel %vm2282_vm7, 1.0, %v3313_v53  ;;  %2966 = vst.msk [vmem:[%s5508_s4 + $0x5b0] sm:$0xff] %vm1297_vm4, %v2902_v56  ;;  %v2186_v5 = vsub.f32 %v1865_v43, %v2902_v56  ;;  %v1831_v20 = vadd.f32 %v4184_v23, %v1767_v0  ;;  %vm1542_vm8 = vcmp.ge.f32.partialorder %v1478_v1, 1.0 }
 0x198   :  { %3062 = vst.msk [vmem:[%s5508_s4 + $0x6b0] sm:$0xff] %vm1297_vm4, %v2998_v16  ;;  %v2772_v24 = vsel %vm1542_vm8, 1.0, %v3313_v53  ;;  %v1449_v55 = vadd.f32 %v4184_v23, %v1385_v35  ;;  %v485_v49 = vadd.f32 %v4184_v23, %v3959_v19  ;;  %v4909_v48 = vadd.f32 %v4905_v47, %v3973_v37 }
 0x199   :  { %1000 = vst.msk [vmem:[%s5509_s3 + $0x5c] sm:$0xf] %vm976_vm3, %v3127_v17  ;;  %v2250_v15 = vadd.f32 %v4184_v23, %v2186_v5  ;;  %vm1895_vm9 = vcmp.ge.f32.partialorder %v1831_v20, 1.0  ;;  %v1799_v51 = vsub.f32 %v1478_v1, %v2772_v24  ;;  %v711_v23 = vmax.f32 %v621_v25, 0.0 }
 0x19a   :  { %2836 = vst.msk [vmem:[%s5508_s4 + $0x3a0] sm:$0xff] %vm1297_vm4, %v2772_v24  ;;  %v2868_v19 = vsel %vm1895_vm9, 1.0, %v3313_v53  ;;  %vm1513_vm10 = vcmp.ge.f32.partialorder %v1449_v55, 1.0  ;;  %vm1160_vm11 = vcmp.ge.f32.partialorder %v621_v25, 1.0  ;;  %v677_v21 = vmax.f32 %v485_v49, 0.0 }
 0x19b   :  { %vm2314_vm12 = vcmp.ge.f32.partialorder %v2250_v15, 1.0  ;;  %2932 = vst.msk [vmem:[%s5508_s4 + $0x4a0] sm:$0xff] %vm1297_vm4, %v2868_v19  ;;  %v2152_v30 = vsub.f32 %v1831_v20, %v2868_v19  ;;  %v1863_v11 = vadd.f32 %v4905_v47, %v1799_v51  ;;  %v2743_v34 = vsel %vm1513_vm10, 1.0, %v3313_v53 }
 0x19c   :  { %v3030_v12 = vsel %vm2314_vm12, 1.0, %v3313_v53  ;;  %2807 = vst.msk [vmem:[%s5508_s4 + $0x2b8] sm:$0xff] %vm1297_vm4, %v2743_v34  ;;  %v1770_v37 = vsub.f32 %v1449_v55, %v2743_v34  ;;  %v3159_v40 = vpack.c.bf16 %v711_v23, %v711_v23  ;;  %v2711_v10 = vsel %vm1160_vm11, 1.0, %v3313_v53 }
 0x19d   :  { %3094 = vst.msk [vmem:[%s5508_s4 + $0x7b0] sm:$0xff] %vm1297_vm4, %v3030_v12  ;;  %v2216_v14 = vadd.f32 %v4905_v47, %v2152_v30  ;;  %vm1927_vm13 = vcmp.ge.f32.partialorder %v1863_v11, 1.0  ;;  %1353 = vst.msk [vmem:[%s5508_s4 + $0x1b8] sm:$0xff] %vm1297_vm4, %v2711_v10  ;;  %v1417_v58 = vsub.f32 %v621_v25, %v2711_v10  ;;  %vm1126_vm14 = vcmp.ge.f32.partialorder %v485_v49, 1.0 }
 0x19e   :  { %v2900_v27 = vsel %vm1927_vm13, 1.0, %v3313_v53  ;;  %v1834_v7 = vadd.f32 %v4905_v47, %v1770_v37  ;;  %1032 = vst.msk [vmem:[%s5509_s3 + $0xdc] sm:$0xf] %vm976_vm3, %v3159_v40  ;;  %v709_v6 = vmax.f32 %v4909_v48, 0.0  ;;  %v3125_v28 = vpack.c.bf16 %v677_v21, %v677_v21 }
 0x19f   :  { %vm2280_vm15 = vcmp.ge.f32.partialorder %v2216_v14, 1.0  ;;  %2964 = vst.msk [vmem:[%s5508_s4 + $0x5a0] sm:$0xff] %vm1297_vm4, %v2900_v27  ;;  %v2184_v13 = vsub.f32 %v1863_v11, %v2900_v27  ;;  %v1481_v52 = vadd.f32 %v4905_v47, %v1417_v58  ;;  %v2677_v46 = vsel %vm1126_vm14, 1.0, %v3313_v53 }
 0x1a0   :  { %v2996_v2 = vsel %vm2280_vm15, 1.0, %v3313_v53  ;;  %vm1898_vm0 = vcmp.ge.f32.partialorder %v1834_v7, 1.0  ;;  %v3157_v38 = vpack.c.bf16 %v709_v6, %v709_v6  ;;  %998 = vst.msk [vmem:[%s5509_s3 + $0x54] sm:$0xf] %vm976_vm3, %v3125_v28  ;;  %v1383_v3 = vsub.f32 %v485_v49, %v2677_v46 }
 0x1a1   :  { %3060 = vst.msk [vmem:[%s5508_s4 + $0x6a0] sm:$0xff] %vm1297_vm4, %v2996_v2  ;;  %v2248_v32 = vadd.f32 %v4905_v47, %v2184_v13  ;;  %v2871_v33 = vsel %vm1898_vm0, 1.0, %v3313_v53  ;;  %vm1545_vm1 = vcmp.ge.f32.partialorder %v1481_v52, 1.0  ;;  %1319 = vst.msk [vmem:[%s5508_s4 + $0xa8] sm:$0xff] %vm1297_vm4, %v2677_v46  ;;  %vm1158_vm2 = vcmp.ge.f32.partialorder %v4909_v48, 1.0 }
 0x1a2   :  { %2935 = vst.msk [vmem:[%s5508_s4 + $0x4b8] sm:$0xff] %vm1297_vm4, %v2871_v33  ;;  %v2155_v18 = vsub.f32 %v1834_v7, %v2871_v33  ;;  %v2775_v43 = vsel %vm1545_vm1, 1.0, %v3313_v53  ;;  %v506_v60 = vadd.f32 %v4905_v47, %v4033_v36  ;;  %v1447_v45 = vadd.f32 %v4905_v47, %v1383_v3 }
 0x1a3   :  { %1030 = vst.msk [vmem:[%s5509_s3 + $0xd4] sm:$0xf] %vm976_vm3, %v3157_v38  ;;  %vm2312_vm5 = vcmp.ge.f32.partialorder %v2248_v32, 1.0  ;;  %v1802_v39 = vsub.f32 %v1481_v52, %v2775_v43  ;;  %v2709_v61 = vsel %vm1158_vm2, 1.0, %v3313_v53  ;;  %v634_v17 = vadd.f32 %v4905_v47, %v4035_v41 }
 0x1a4   :  { %2839 = vst.msk [vmem:[%s5508_s4 + $0x3b8] sm:$0xff] %vm1297_vm4, %v2775_v43  ;;  %v3028_v0 = vsel %vm2312_vm5, 1.0, %v3313_v53  ;;  %v2219_v1 = vadd.f32 %v4905_v47, %v2155_v18  ;;  %1351 = vst.msk [vmem:[%s5508_s4 + $0x1a8] sm:$0xff] %vm1297_vm4, %v2709_v61  ;;  %v1415_v36 = vsub.f32 %v4909_v48, %v2709_v61  ;;  %v682_v54 = vmax.f32 %v506_v60, 0.0 }
 0x1a5   :  { %3092 = vst.msk [vmem:[%s5508_s4 + $0x7a0] sm:$0xff] %vm1297_vm4, %v3028_v0  ;;  %v1866_v56 = vadd.f32 %v4905_v47, %v1802_v39  ;;  %vm1511_vm6 = vcmp.ge.f32.partialorder %v1447_v45, 1.0  ;;  %vm1131_vm7 = vcmp.ge.f32.partialorder %v506_v60, 1.0  ;;  %v714_v49 = vmax.f32 %v634_v17, 0.0 }
 0x1a6   :  { %vm2283_vm8 = vcmp.ge.f32.partialorder %v2219_v1, 1.0  ;;  %v2741_v35 = vsel %vm1511_vm6, 1.0, %v3313_v53  ;;  %v1479_v16 = vadd.f32 %v4905_v47, %v1415_v36  ;;  %v3130_v5 = vpack.c.bf16 %v682_v54, %v682_v54 }
 0x1a7   :  { %v2999_v20 = vsel %vm2283_vm8, 1.0, %v3313_v53  ;;  %vm1930_vm9 = vcmp.ge.f32.partialorder %v1866_v56, 1.0  ;;  %2805 = vst.msk [vmem:[%s5508_s4 + $0x2a8] sm:$0xff] %vm1297_vm4, %v2741_v35  ;;  %v1768_v24 = vsub.f32 %v1447_v45, %v2741_v35  ;;  %v2682_v55 = vsel %vm1131_vm7, 1.0, %v3313_v53 }
 0x1a8   :  { %3063 = vst.msk [vmem:[%s5508_s4 + $0x6b8] sm:$0xff] %vm1297_vm4, %v2999_v20  ;;  %v2903_v41 = vsel %vm1930_vm9, 1.0, %v3313_v53  ;;  %vm1543_vm10 = vcmp.ge.f32.partialorder %v1479_v16, 1.0  ;;  %1324 = vst.msk [vmem:[%s5508_s4 + $0xd0] sm:$0xff] %vm1297_vm4, %v2682_v55  ;;  %v1388_v25 = vsub.f32 %v506_v60, %v2682_v55  ;;  %vm1163_vm11 = vcmp.ge.f32.partialorder %v634_v17, 1.0 }
 0x1a9   :  { %1003 = vst.msk [vmem:[%s5509_s3 + $0x68] sm:$0xf] %vm976_vm3, %v3130_v5  ;;  %v2187_v15 = vsub.f32 %v1866_v56, %v2903_v41  ;;  %v1832_v51 = vadd.f32 %v4905_v47, %v1768_v24  ;;  %v2773_v48 = vsel %vm1543_vm10, 1.0, %v3313_v53  ;;  %v3162_v30 = vpack.c.bf16 %v714_v49, %v714_v49 }
 0x1aa   :  { %2967 = vst.msk [vmem:[%s5508_s4 + $0x5b8] sm:$0xff] %vm1297_vm4, %v2903_v41  ;;  %2837 = vst.msk [vmem:[%s5508_s4 + $0x3a8] sm:$0xff] %vm1297_vm4, %v2773_v48  ;;  %v1800_v19 = vsub.f32 %v1479_v16, %v2773_v48  ;;  %v1452_v23 = vadd.f32 %v4905_v47, %v1388_v25  ;;  %v2714_v11 = vsel %vm1163_vm11, 1.0, %v3313_v53  ;;  %v498_v37 = vadd.f32 %v4905_v47, %v4061_v22 }
 0x1ab   :  { %v2251_v34 = vadd.f32 %v4905_v47, %v2187_v15  ;;  %vm1896_vm12 = vcmp.ge.f32.partialorder %v1832_v51, 1.0  ;;  %1356 = vst.msk [vmem:[%s5508_s4 + $0x1d0] sm:$0xff] %vm1297_vm4, %v2714_v11  ;;  %v1420_v12 = vsub.f32 %v634_v17, %v2714_v11  ;;  %v626_v14 = vadd.f32 %v4905_v47, %v4107_v8 }
 0x1ac   :  { %v2869_v40 = vsel %vm1896_vm12, 1.0, %v3313_v53  ;;  %v1864_v10 = vadd.f32 %v4905_v47, %v1800_v19  ;;  %vm1516_vm13 = vcmp.ge.f32.partialorder %v1452_v23, 1.0  ;;  %1035 = vst.msk [vmem:[%s5509_s3 + $0xe8] sm:$0xf] %vm976_vm3, %v3162_v30  ;;  %v680_v7 = vmax.f32 %v498_v37, 0.0 }
 0x1ad   :  { %vm2315_vm14 = vcmp.ge.f32.partialorder %v2251_v34, 1.0  ;;  %2933 = vst.msk [vmem:[%s5508_s4 + $0x4a8] sm:$0xff] %vm1297_vm4, %v2869_v40  ;;  %v2153_v22 = vsub.f32 %v1832_v51, %v2869_v40  ;;  %v2746_v58 = vsel %vm1516_vm13, 1.0, %v3313_v53  ;;  %v1484_v21 = vadd.f32 %v4905_v47, %v1420_v12 }
 0x1ae   :  { %v3031_v27 = vsel %vm2315_vm14, 1.0, %v3313_v53  ;;  %vm1928_vm15 = vcmp.ge.f32.partialorder %v1864_v10, 1.0  ;;  %2810 = vst.msk [vmem:[%s5508_s4 + $0x2d0] sm:$0xff] %vm1297_vm4, %v2746_v58  ;;  %v1773_v8 = vsub.f32 %v1452_v23, %v2746_v58  ;;  %vm1129_vm1 = vcmp.ge.f32.partialorder %v498_v37, 1.0 }
 0x1af   :  { %3095 = vst.msk [vmem:[%s5508_s4 + $0x7b8] sm:$0xff] %vm1297_vm4, %v3031_v27  ;;  %v2217_v6 = vadd.f32 %v4905_v47, %v2153_v22  ;;  %v2901_v13 = vsel %vm1928_vm15, 1.0, %v3313_v53  ;;  %vm1548_vm0 = vcmp.ge.f32.partialorder %v1484_v21, 1.0  ;;  %v3128_v46 = vpack.c.bf16 %v680_v7, %v680_v7 }
 0x1b0   :  { %2965 = vst.msk [vmem:[%s5508_s4 + $0x5a8] sm:$0xff] %vm1297_vm4, %v2901_v13  ;;  %v2185_v52 = vsub.f32 %v1864_v10, %v2901_v13  ;;  %v1837_v28 = vadd.f32 %v4905_v47, %v1773_v8  ;;  %v2778_v2 = vsel %vm1548_vm0, 1.0, %v3313_v53  ;;  %v2680_v32 = vsel %vm1129_vm1, 1.0, %v3313_v53 }
 0x1b1   :  { %vm2281_vm2 = vcmp.ge.f32.partialorder %v2217_v6, 1.0  ;;  %2842 = vst.msk [vmem:[%s5508_s4 + $0x3d0] sm:$0xff] %vm1297_vm4, %v2778_v2  ;;  %v1805_v38 = vsub.f32 %v1484_v21, %v2778_v2  ;;  %v712_v33 = vmax.f32 %v626_v14, 0.0  ;;  %1322 = vst.msk [vmem:[%s5508_s4 + $0xc0] sm:$0xff] %vm1297_vm4, %v2680_v32  ;;  %v1386_v43 = vsub.f32 %v498_v37, %v2680_v32 }
 0x1b2   :  { %v2997_v3 = vsel %vm2281_vm2, 1.0, %v3313_v53  ;;  %v2249_v18 = vadd.f32 %v4905_v47, %v2185_v52  ;;  %vm1901_vm5 = vcmp.ge.f32.partialorder %v1837_v28, 1.0  ;;  %1001 = vst.msk [vmem:[%s5509_s3 + $0x60] sm:$0xf] %vm976_vm3, %v3128_v46  ;;  %vm1161_vm6 = vcmp.ge.f32.partialorder %v626_v14, 1.0 }
 0x1b3   :  { %3061 = vst.msk [vmem:[%s5508_s4 + $0x6a8] sm:$0xff] %vm1297_vm4, %v2997_v3  ;;  %v2874_v60 = vsel %vm1901_vm5, 1.0, %v3313_v53  ;;  %v1869_v39 = vadd.f32 %v4905_v47, %v1805_v38  ;;  %v3160_v45 = vpack.c.bf16 %v712_v33, %v712_v33  ;;  %v1450_v0 = vadd.f32 %v4905_v47, %v1386_v43 }
 0x1b4   :  { %vm2313_vm7 = vcmp.ge.f32.partialorder %v2249_v18, 1.0  ;;  %2938 = vst.msk [vmem:[%s5508_s4 + $0x4d0] sm:$0xff] %vm1297_vm4, %v2874_v60  ;;  %v2158_v61 = vsub.f32 %v1837_v28, %v2874_v60  ;;  %v2712_v1 = vsel %vm1161_vm6, 1.0, %v3313_v53  ;;  %v509_v56 = vadd.f32 %v4905_v47, %v4133_v62 }
 0x1b5   :  { %v3029_v36 = vsel %vm2313_vm7, 1.0, %v3313_v53  ;;  %vm1933_vm8 = vcmp.ge.f32.partialorder %v1869_v39, 1.0  ;;  %1033 = vst.msk [vmem:[%s5509_s3 + $0xe0] sm:$0xf] %vm976_vm3, %v3160_v45  ;;  %v1418_v54 = vsub.f32 %v626_v14, %v2712_v1  ;;  %vm1514_vm9 = vcmp.ge.f32.partialorder %v1450_v0, 1.0 }
 0x1b6   :  { %1354 = vst.msk [vmem:[%s5508_s4 + $0x1c0] sm:$0xff] %vm1297_vm4, %v2712_v1  ;;  %3093 = vst.msk [vmem:[%s5508_s4 + $0x7a8] sm:$0xff] %vm1297_vm4, %v3029_v36  ;;  %v2222_v17 = vadd.f32 %v4905_v47, %v2158_v61  ;;  %v2906_v35 = vsel %vm1933_vm8, 1.0, %v3313_v53  ;;  %v637_v16 = vadd.f32 %v4905_v47, %v4165_v31  ;;  %v2744_v62 = vsel %vm1514_vm9, 1.0, %v3313_v53 }
 0x1b7   :  { %2970 = vst.msk [vmem:[%s5508_s4 + $0x5d0] sm:$0xff] %vm1297_vm4, %v2906_v35  ;;  %v2190_v5 = vsub.f32 %v1869_v39, %v2906_v35  ;;  %v1482_v20 = vadd.f32 %v4905_v47, %v1418_v54  ;;  %v683_v24 = vmax.f32 %v509_v56, 0.0  ;;  %2808 = vst.msk [vmem:[%s5508_s4 + $0x2c0] sm:$0xff] %vm1297_vm4, %v2744_v62  ;;  %v1771_v55 = vsub.f32 %v1450_v0, %v2744_v62 }
 0x1b8   :  { %vm2286_vm10 = vcmp.ge.f32.partialorder %v2222_v17, 1.0  ;;  %vm1132_vm11 = vcmp.ge.f32.partialorder %v509_v56, 1.0  ;;  %v715_v31 = vmax.f32 %v637_v16, 0.0  ;;  %vm1164_vm14 = vcmp.ge.f32.partialorder %v637_v16, 1.0 }
 0x1b9   :  { %v3002_v41 = vsel %vm2286_vm10, 1.0, %v3313_v53  ;;  %v2254_v25 = vadd.f32 %v4905_v47, %v2190_v5  ;;  %vm1546_vm12 = vcmp.ge.f32.partialorder %v1482_v20, 1.0  ;;  %v3131_v49 = vpack.c.bf16 %v683_v24, %v683_v24 }
 0x1ba   :  { %3066 = vst.msk [vmem:[%s5508_s4 + $0x6d0] sm:$0xff] %vm1297_vm4, %v3002_v41  ;;  %v1835_v15 = vadd.f32 %v4905_v47, %v1771_v55  ;;  %v2776_v51 = vsel %vm1546_vm12, 1.0, %v3313_v53  ;;  %v2683_v48 = vsel %vm1132_vm11, 1.0, %v3313_v53  ;;  %v3163_v19 = vpack.c.bf16 %v715_v31, %v715_v31 }
 0x1bb   :  { %vm2318_vm13 = vcmp.ge.f32.partialorder %v2254_v25, 1.0  ;;  %2840 = vst.msk [vmem:[%s5508_s4 + $0x3c0] sm:$0xff] %vm1297_vm4, %v2776_v51  ;;  %v1803_v23 = vsub.f32 %v1482_v20, %v2776_v51  ;;  %1325 = vst.msk [vmem:[%s5508_s4 + $0xd8] sm:$0xff] %vm1297_vm4, %v2683_v48  ;;  %v1389_v30 = vsub.f32 %v509_v56, %v2683_v48  ;;  %v2715_v34 = vsel %vm1164_vm14, 1.0, %v3313_v53 }
 0x1bc   :  { %1004 = vst.msk [vmem:[%s5509_s3 + $0x6c] sm:$0xf] %vm976_vm3, %v3131_v49  ;;  %v3034_v11 = vsel %vm2318_vm13, 1.0, %v3313_v53  ;;  %vm1899_vm15 = vcmp.ge.f32.partialorder %v1835_v15, 1.0  ;;  %1036 = vst.msk [vmem:[%s5509_s3 + $0xec] sm:$0xf] %vm976_vm3, %v3163_v19  ;;  %v501_v12 = vadd.f32 %v4905_v47, %v4199_v44  ;;  %v1421_v14 = vsub.f32 %v637_v16, %v2715_v34 }
 0x1bd   :  { %3098 = vst.msk [vmem:[%s5508_s4 + $0x7d0] sm:$0xff] %vm1297_vm4, %v3034_v11  ;;  %v2872_v37 = vsel %vm1899_vm15, 1.0, %v3313_v53  ;;  %v1867_v40 = vadd.f32 %v4905_v47, %v1803_v23  ;;  %v1453_v10 = vadd.f32 %v4905_v47, %v1389_v30  ;;  %1357 = vst.msk [vmem:[%s5508_s4 + $0x1d8] sm:$0xff] %vm1297_vm4, %v2715_v34  ;;  %v629_v58 = vadd.f32 %v4905_v47, %v4225_v4 }
 0x1be   :  { %2936 = vst.msk [vmem:[%s5508_s4 + $0x4c0] sm:$0xff] %vm1297_vm4, %v2872_v37  ;;  %v2156_v44 = vsub.f32 %v1835_v15, %v2872_v37  ;;  %v681_v22 = vmax.f32 %v501_v12, 0.0  ;;  %vm1130_vm0 = vcmp.ge.f32.partialorder %v501_v12, 1.0  ;;  %v1485_v21 = vadd.f32 %v4905_v47, %v1421_v14 }
 0x1bf   :  { %vm1931_vm1 = vcmp.ge.f32.partialorder %v1867_v40, 1.0  ;;  %vm1517_vm2 = vcmp.ge.f32.partialorder %v1453_v10, 1.0  ;;  %v2681_v27 = vsel %vm1130_vm0, 1.0, %v3313_v53  ;;  %v713_v46 = vmax.f32 %v629_v58, 0.0 }
 0x1c0   :  { %v2220_v8 = vadd.f32 %v4905_v47, %v2156_v44  ;;  %v2904_v7 = vsel %vm1931_vm1, 1.0, %v3313_v53  ;;  %v2747_v6 = vsel %vm1517_vm2, 1.0, %v3313_v53  ;;  %v3129_v13 = vpack.c.bf16 %v681_v22, %v681_v22  ;;  %1323 = vst.msk [vmem:[%s5508_s4 + $0xc8] sm:$0xff] %vm1297_vm4, %v2681_v27 }
 0x1c1   :  { %2968 = vst.msk [vmem:[%s5508_s4 + $0x5c0] sm:$0xff] %vm1297_vm4, %v2904_v7  ;;  %v2188_v4 = vsub.f32 %v1867_v40, %v2904_v7  ;;  %2811 = vst.msk [vmem:[%s5508_s4 + $0x2d8] sm:$0xff] %vm1297_vm4, %v2747_v6  ;;  %v1774_v52 = vsub.f32 %v1453_v10, %v2747_v6  ;;  %vm1549_vm5 = vcmp.ge.f32.partialorder %v1485_v21, 1.0  ;;  %v1387_v28 = vsub.f32 %v501_v12, %v2681_v27 }
 0x1c2   :  { %vm2284_vm6 = vcmp.ge.f32.partialorder %v2220_v8, 1.0  ;;  %v2779_v2 = vsel %vm1549_vm5, 1.0, %v3313_v53  ;;  %1002 = vst.msk [vmem:[%s5509_s3 + $0x64] sm:$0xf] %vm976_vm3, %v3129_v13  ;;  %vm1162_vm7 = vcmp.ge.f32.partialorder %v629_v58, 1.0  ;;  %v3161_v43 = vpack.c.bf16 %v713_v46, %v713_v46 }
 0x1c3   :  { %v3000_v38 = vsel %vm2284_vm6, 1.0, %v3313_v53  ;;  %v2252_v32 = vadd.f32 %v4905_v47, %v2188_v4  ;;  %v1838_v33 = vadd.f32 %v4905_v47, %v1774_v52  ;;  %2843 = vst.msk [vmem:[%s5508_s4 + $0x3d8] sm:$0xff] %vm1297_vm4, %v2779_v2  ;;  %v1806_v3 = vsub.f32 %v1485_v21, %v2779_v2 }
 0x1c4   :  { %3064 = vst.msk [vmem:[%s5508_s4 + $0x6c0] sm:$0xff] %vm1297_vm4, %v3000_v38  ;;  %v1451_v18 = vadd.f32 %v4905_v47, %v1387_v28  ;;  %v2713_v60 = vsel %vm1162_vm7, 1.0, %v3313_v53  ;;  %v522_v39 = vadd.f32 %v4905_v47, %v4285_v57  ;;  %v650_v41 = vadd.f32 %v4905_v47, %v4287_v63 }
 0x1c5   :  { %vm2316_vm8 = vcmp.ge.f32.partialorder %v2252_v32, 1.0  ;;  %vm1902_vm9 = vcmp.ge.f32.partialorder %v1838_v33, 1.0  ;;  %v1870_v45 = vadd.f32 %v4905_v47, %v1806_v3  ;;  %1355 = vst.msk [vmem:[%s5508_s4 + $0x1c8] sm:$0xff] %vm1297_vm4, %v2713_v60  ;;  %v1419_v61 = vsub.f32 %v629_v58, %v2713_v60 }
 0x1c6   :  { %v3032_v0 = vsel %vm2316_vm8, 1.0, %v3313_v53  ;;  %v2875_v1 = vsel %vm1902_vm9, 1.0, %v3313_v53  ;;  %vm1515_vm10 = vcmp.ge.f32.partialorder %v1451_v18, 1.0  ;;  %1034 = vst.msk [vmem:[%s5509_s3 + $0xe4] sm:$0xf] %vm976_vm3, %v3161_v43  ;;  %v686_v57 = vmax.f32 %v522_v39, 0.0 }
 0x1c7   :  { %3096 = vst.msk [vmem:[%s5508_s4 + $0x7c0] sm:$0xff] %vm1297_vm4, %v3032_v0  ;;  %2939 = vst.msk [vmem:[%s5508_s4 + $0x4d8] sm:$0xff] %vm1297_vm4, %v2875_v1  ;;  %v2159_v36 = vsub.f32 %v1838_v33, %v2875_v1  ;;  %vm1934_vm11 = vcmp.ge.f32.partialorder %v1870_v45, 1.0  ;;  %v2745_v54 = vsel %vm1515_vm10, 1.0, %v3313_v53  ;;  %v1483_v56 = vadd.f32 %v4905_v47, %v1419_v61 }
 0x1c8   :  { %v2907_v17 = vsel %vm1934_vm11, 1.0, %v3313_v53  ;;  %2809 = vst.msk [vmem:[%s5508_s4 + $0x2c8] sm:$0xff] %vm1297_vm4, %v2745_v54  ;;  %v1772_v35 = vsub.f32 %v1451_v18, %v2745_v54  ;;  %v3134_v16 = vpack.c.bf16 %v686_v57, %v686_v57  ;;  %vm1135_vm12 = vcmp.ge.f32.partialorder %v522_v39, 1.0 }
 0x1c9   :  { %v2223_v5 = vadd.f32 %v4905_v47, %v2159_v36  ;;  %2971 = vst.msk [vmem:[%s5508_s4 + $0x5d8] sm:$0xff] %vm1297_vm4, %v2907_v17  ;;  %v2191_v62 = vsub.f32 %v1870_v45, %v2907_v17  ;;  %vm1547_vm13 = vcmp.ge.f32.partialorder %v1483_v56, 1.0  ;;  %v2686_v20 = vsel %vm1135_vm12, 1.0, %v3313_v53 }
 0x1ca   :  { %v1836_v24 = vadd.f32 %v4905_v47, %v1772_v35  ;;  %v2777_v55 = vsel %vm1547_vm13, 1.0, %v3313_v53  ;;  %1007 = vst.msk [vmem:[%s5509_s3 + $0x78] sm:$0xf] %vm976_vm3, %v3134_v16  ;;  %v1392_v31 = vsub.f32 %v522_v39, %v2686_v20  ;;  %v514_v15 = vadd.f32 %v4905_v47, %v4338_v50 }
 0x1cb   :  { %1328 = vst.msk [vmem:[%s5508_s4 + $0xf0] sm:$0xff] %vm1297_vm4, %v2686_v20  ;;  %vm2287_vm14 = vcmp.ge.f32.partialorder %v2223_v5, 1.0  ;;  %v2255_v25 = vadd.f32 %v4905_v47, %v2191_v62  ;;  %2841 = vst.msk [vmem:[%s5508_s4 + $0x3c8] sm:$0xff] %vm1297_vm4, %v2777_v55  ;;  %v1804_v49 = vsub.f32 %v1483_v56, %v2777_v55  ;;  %v718_v19 = vmax.f32 %v650_v41, 0.0 }
 0x1cc   :  { %v3003_v51 = vsel %vm2287_vm14, 1.0, %v3313_v53  ;;  %vm1900_vm15 = vcmp.ge.f32.partialorder %v1836_v24, 1.0  ;;  %v1456_v48 = vadd.f32 %v4905_v47, %v1392_v31  ;;  %vm1167_vm1 = vcmp.ge.f32.partialorder %v650_v41, 1.0 }
 0x1cd   :  { %3067 = vst.msk [vmem:[%s5508_s4 + $0x6d8] sm:$0xff] %vm1297_vm4, %v3003_v51  ;;  %vm2319_vm0 = vcmp.ge.f32.partialorder %v2255_v25, 1.0  ;;  %v2873_v63 = vsel %vm1900_vm15, 1.0, %v3313_v53  ;;  %v1868_v23 = vadd.f32 %v4905_v47, %v1804_v49  ;;  %v3166_v11 = vpack.c.bf16 %v718_v19, %v718_v19 }
 0x1ce   :  { %v3035_v30 = vsel %vm2319_vm0, 1.0, %v3313_v53  ;;  %2937 = vst.msk [vmem:[%s5508_s4 + $0x4c8] sm:$0xff] %vm1297_vm4, %v2873_v63  ;;  %v2157_v50 = vsub.f32 %v1836_v24, %v2873_v63  ;;  %vm1520_vm2 = vcmp.ge.f32.partialorder %v1456_v48, 1.0  ;;  %v2718_v12 = vsel %vm1167_vm1, 1.0, %v3313_v53 }
 0x1cf   :  { %3099 = vst.msk [vmem:[%s5508_s4 + $0x7d8] sm:$0xff] %vm1297_vm4, %v3035_v30  ;;  %vm1932_vm5 = vcmp.ge.f32.partialorder %v1868_v23, 1.0  ;;  %v2750_v34 = vsel %vm1520_vm2, 1.0, %v3313_v53  ;;  %v684_v37 = vmax.f32 %v514_v15, 0.0  ;;  %1360 = vst.msk [vmem:[%s5508_s4 + $0x1f0] sm:$0xff] %vm1297_vm4, %v2718_v12  ;;  %v1424_v44 = vsub.f32 %v650_v41, %v2718_v12 }
 0x1d0   :  { %v2221_v40 = vadd.f32 %v4905_v47, %v2157_v50  ;;  %v2905_v10 = vsel %vm1932_vm5, 1.0, %v3313_v53  ;;  %2814 = vst.msk [vmem:[%s5508_s4 + $0x2f0] sm:$0xff] %vm1297_vm4, %v2750_v34  ;;  %v1777_v14 = vsub.f32 %v1456_v48, %v2750_v34  ;;  %vm1133_vm6 = vcmp.ge.f32.partialorder %v514_v15, 1.0 }
 0x1d1   :  { %1039 = vst.msk [vmem:[%s5509_s3 + $0xf8] sm:$0xf] %vm976_vm3, %v3166_v11  ;;  %v2189_v22 = vsub.f32 %v1868_v23, %v2905_v10  ;;  %v3132_v58 = vpack.c.bf16 %v684_v37, %v684_v37  ;;  %v642_v21 = vadd.f32 %v4905_v47, %v4357_v59  ;;  %v1488_v8 = vadd.f32 %v4905_v47, %v1424_v44 }
 0x1d2   :  { %2969 = vst.msk [vmem:[%s5508_s4 + $0x5c8] sm:$0xff] %vm1297_vm4, %v2905_v10  ;;  %vm2285_vm7 = vcmp.ge.f32.partialorder %v2221_v40, 1.0  ;;  %v1841_v27 = vadd.f32 %v4905_v47, %v1777_v14  ;;  %v2684_v7 = vsel %vm1133_vm6, 1.0, %v3313_v53  ;;  %v525_v52 = vadd.f32 %v4905_v47, %v4404_v26 }
 0x1d3   :  { %v3001_v6 = vsel %vm2285_vm7, 1.0, %v3313_v53  ;;  %v2253_v13 = vadd.f32 %v4905_v47, %v2189_v22  ;;  %1005 = vst.msk [vmem:[%s5509_s3 + $0x70] sm:$0xf] %vm976_vm3, %v3132_v58  ;;  %v1390_v59 = vsub.f32 %v514_v15, %v2684_v7  ;;  %v716_v4 = vmax.f32 %v642_v21, 0.0 }
 0x1d4   :  { %1326 = vst.msk [vmem:[%s5508_s4 + $0xe0] sm:$0xff] %vm1297_vm4, %v2684_v7  ;;  %3065 = vst.msk [vmem:[%s5508_s4 + $0x6c8] sm:$0xff] %vm1297_vm4, %v3001_v6  ;;  %vm1905_vm8 = vcmp.ge.f32.partialorder %v1841_v27, 1.0  ;;  %vm1552_vm9 = vcmp.ge.f32.partialorder %v1488_v8, 1.0  ;;  %vm1165_vm10 = vcmp.ge.f32.partialorder %v642_v21, 1.0  ;;  %v687_v18 = vmax.f32 %v525_v52, 0.0 }
 0x1d5   :  { %vm2317_vm11 = vcmp.ge.f32.partialorder %v2253_v13, 1.0  ;;  %v2878_v28 = vsel %vm1905_vm8, 1.0, %v3313_v53  ;;  %v2782_v2 = vsel %vm1552_vm9, 1.0, %v3313_v53  ;;  %v1454_v46 = vadd.f32 %v4905_v47, %v1390_v59 }
 0x1d6   :  { %v3033_v38 = vsel %vm2317_vm11, 1.0, %v3313_v53  ;;  %2942 = vst.msk [vmem:[%s5508_s4 + $0x4f0] sm:$0xff] %vm1297_vm4, %v2878_v28  ;;  %v2162_v32 = vsub.f32 %v1841_v27, %v2878_v28  ;;  %2846 = vst.msk [vmem:[%s5508_s4 + $0x3f0] sm:$0xff] %vm1297_vm4, %v2782_v2  ;;  %v1809_v26 = vsub.f32 %v1488_v8, %v2782_v2  ;;  %v3164_v33 = vpack.c.bf16 %v716_v4, %v716_v4 }
 0x1d7   :  { %3097 = vst.msk [vmem:[%s5508_s4 + $0x7c8] sm:$0xff] %vm1297_vm4, %v3033_v38  ;;  %vm1518_vm12 = vcmp.ge.f32.partialorder %v1454_v46, 1.0  ;;  %v2716_v3 = vsel %vm1165_vm10, 1.0, %v3313_v53  ;;  %vm1136_vm13 = vcmp.ge.f32.partialorder %v525_v52, 1.0  ;;  %v3135_v0 = vpack.c.bf16 %v687_v18, %v687_v18 }
 0x1d8   :  { %v2226_v43 = vadd.f32 %v4905_v47, %v2162_v32  ;;  %v1873_v60 = vadd.f32 %v4905_v47, %v1809_v26  ;;  %v2748_v39 = vsel %vm1518_vm12, 1.0, %v3313_v53  ;;  %1037 = vst.msk [vmem:[%s5509_s3 + $0xf0] sm:$0xf] %vm976_vm3, %v3164_v33  ;;  %v1422_v45 = vsub.f32 %v642_v21, %v2716_v3 }
 0x1d9   :  { %1358 = vst.msk [vmem:[%s5508_s4 + $0x1e0] sm:$0xff] %vm1297_vm4, %v2716_v3  ;;  %2812 = vst.msk [vmem:[%s5508_s4 + $0x2e0] sm:$0xff] %vm1297_vm4, %v2748_v39  ;;  %v1775_v61 = vsub.f32 %v1454_v46, %v2748_v39  ;;  %v2687_v1 = vsel %vm1136_vm13, 1.0, %v3313_v53  ;;  %v653_v57 = vadd.f32 %v4905_v47, %v4415_v42  ;;  %v517_v51 = vadd.f32 %v4905_v47, %v4458_v29 }
 0x1da   :  { %vm2290_vm14 = vcmp.ge.f32.partialorder %v2226_v43, 1.0  ;;  %vm1937_vm15 = vcmp.ge.f32.partialorder %v1873_v60, 1.0  ;;  %v1486_v36 = vadd.f32 %v4905_v47, %v1422_v45  ;;  %1329 = vst.msk [vmem:[%s5508_s4 + $0xf8] sm:$0xff] %vm1297_vm4, %v2687_v1  ;;  %v1393_v54 = vsub.f32 %v525_v52, %v2687_v1 }
 0x1db   :  { %v3006_v56 = vsel %vm2290_vm14, 1.0, %v3313_v53  ;;  %v2910_v17 = vsel %vm1937_vm15, 1.0, %v3313_v53  ;;  %v1839_v35 = vadd.f32 %v4905_v47, %v1775_v61  ;;  %1008 = vst.msk [vmem:[%s5509_s3 + $0x7c] sm:$0xf] %vm976_vm3, %v3135_v0  ;;  %v719_v42 = vmax.f32 %v653_v57, 0.0 }
 0x1dc   :  { %3070 = vst.msk [vmem:[%s5508_s4 + $0x6f0] sm:$0xff] %vm1297_vm4, %v3006_v56  ;;  %2974 = vst.msk [vmem:[%s5508_s4 + $0x5f0] sm:$0xff] %vm1297_vm4, %v2910_v17  ;;  %v2194_v16 = vsub.f32 %v1873_v60, %v2910_v17  ;;  %vm1550_vm0 = vcmp.ge.f32.partialorder %v1486_v36, 1.0  ;;  %v1457_v5 = vadd.f32 %v4905_v47, %v1393_v54  ;;  %vm1168_vm1 = vcmp.ge.f32.partialorder %v653_v57, 1.0 }
 0x1dd   :  { %vm1903_vm2 = vcmp.ge.f32.partialorder %v1839_v35, 1.0  ;;  %v2780_v62 = vsel %vm1550_vm0, 1.0, %v3313_v53  ;;  %v3167_v20 = vpack.c.bf16 %v719_v42, %v719_v42  ;;  %v2719_v24 = vsel %vm1168_vm1, 1.0, %v3313_v53 }
 0x1de   :  { %v2258_v55 = vadd.f32 %v4905_v47, %v2194_v16  ;;  %v2876_v31 = vsel %vm1903_vm2, 1.0, %v3313_v53  ;;  %2844 = vst.msk [vmem:[%s5508_s4 + $0x3e0] sm:$0xff] %vm1297_vm4, %v2780_v62  ;;  %v1807_v41 = vsub.f32 %v1486_v36, %v2780_v62  ;;  %vm1521_vm5 = vcmp.ge.f32.partialorder %v1457_v5, 1.0  ;;  %1361 = vst.msk [vmem:[%s5508_s4 + $0x1f8] sm:$0xff] %vm1297_vm4, %v2719_v24 }
 0x1df   :  { %2940 = vst.msk [vmem:[%s5508_s4 + $0x4e0] sm:$0xff] %vm1297_vm4, %v2876_v31  ;;  %v2160_v25 = vsub.f32 %v1839_v35, %v2876_v31  ;;  %v2751_v49 = vsel %vm1521_vm5, 1.0, %v3313_v53  ;;  %v1425_v15 = vsub.f32 %v653_v57, %v2719_v24  ;;  %v645_v63 = vadd.f32 %v4905_v47, %v4515_v9 }
 0x1e0   :  { %1040 = vst.msk [vmem:[%s5509_s3 + $0xfc] sm:$0xf] %vm976_vm3, %v3167_v20  ;;  %vm2322_vm6 = vcmp.ge.f32.partialorder %v2258_v55, 1.0  ;;  %v1871_v48 = vadd.f32 %v4905_v47, %v1807_v41  ;;  %v1778_v19 = vsub.f32 %v1457_v5, %v2751_v49  ;;  %v685_v11 = vmax.f32 %v517_v51, 0.0 }
 0x1e1   :  { %2815 = vst.msk [vmem:[%s5508_s4 + $0x2f8] sm:$0xff] %vm1297_vm4, %v2751_v49  ;;  %v3038_v23 = vsel %vm2322_vm6, 1.0, %v3313_v53  ;;  %v2224_v30 = vadd.f32 %v4905_v47, %v2160_v25  ;;  %v1489_v50 = vadd.f32 %v4905_v47, %v1425_v15  ;;  %vm1134_vm8 = vcmp.ge.f32.partialorder %v517_v51, 1.0 }
 0x1e2   :  { %3102 = vst.msk [vmem:[%s5508_s4 + $0x7f0] sm:$0xff] %vm1297_vm4, %v3038_v23  ;;  %vm1935_vm7 = vcmp.ge.f32.partialorder %v1871_v48, 1.0  ;;  %v1842_v29 = vadd.f32 %v4905_v47, %v1778_v19  ;;  %v717_v34 = vmax.f32 %v645_v63, 0.0  ;;  %v3133_v12 = vpack.c.bf16 %v685_v11, %v685_v11 }
 0x1e3   :  { %vm2288_vm9 = vcmp.ge.f32.partialorder %v2224_v30, 1.0  ;;  %v2908_v9 = vsel %vm1935_vm7, 1.0, %v3313_v53  ;;  %vm1553_vm10 = vcmp.ge.f32.partialorder %v1489_v50, 1.0  ;;  %v2685_v22 = vsel %vm1134_vm8, 1.0, %v3313_v53 }
 0x1e4   :  { %v3004_v37 = vsel %vm2288_vm9, 1.0, %v3313_v53  ;;  %2972 = vst.msk [vmem:[%s5508_s4 + $0x5e0] sm:$0xff] %vm1297_vm4, %v2908_v9  ;;  %v2192_v40 = vsub.f32 %v1871_v48, %v2908_v9  ;;  %vm1906_vm11 = vcmp.ge.f32.partialorder %v1842_v29, 1.0  ;;  %v2783_v10 = vsel %vm1553_vm10, 1.0, %v3313_v53  ;;  %1327 = vst.msk [vmem:[%s5508_s4 + $0xe8] sm:$0xff] %vm1297_vm4, %v2685_v22 }
 0x1e5   :  { %3068 = vst.msk [vmem:[%s5508_s4 + $0x6e0] sm:$0xff] %vm1297_vm4, %v3004_v37  ;;  %v2879_v14 = vsel %vm1906_vm11, 1.0, %v3313_v53  ;;  %2847 = vst.msk [vmem:[%s5508_s4 + $0x3f8] sm:$0xff] %vm1297_vm4, %v2783_v10  ;;  %v1810_v44 = vsub.f32 %v1489_v50, %v2783_v10  ;;  %v3165_v58 = vpack.c.bf16 %v717_v34, %v717_v34  ;;  %v1391_v8 = vsub.f32 %v517_v51, %v2685_v22 }
 0x1e6   :  { %1006 = vst.msk [vmem:[%s5509_s3 + $0x74] sm:$0xf] %vm976_vm3, %v3133_v12  ;;  %v2256_v21 = vadd.f32 %v4905_v47, %v2192_v40  ;;  %v2163_v27 = vsub.f32 %v1842_v29, %v2879_v14  ;;  %vm1166_vm12 = vcmp.ge.f32.partialorder %v645_v63, 1.0 }
 0x1e7   :  { %2943 = vst.msk [vmem:[%s5508_s4 + $0x4f8] sm:$0xff] %vm1297_vm4, %v2879_v14  ;;  %v1874_v7 = vadd.f32 %v4905_v47, %v1810_v44  ;;  %v2717_v6 = vsel %vm1166_vm12, 1.0, %v3313_v53  ;;  %v1455_v59 = vadd.f32 %v4905_v47, %v1391_v8 }
 0x1e8   :  { %1038 = vst.msk [vmem:[%s5509_s3 + $0xf4] sm:$0xf] %vm976_vm3, %v3165_v58  ;;  %vm2320_vm13 = vcmp.ge.f32.partialorder %v2256_v21, 1.0  ;;  %v2227_v13 = vadd.f32 %v4905_v47, %v2163_v27  ;;  %v1423_v4 = vsub.f32 %v645_v63, %v2717_v6 }
 0x1e9   :  { %1359 = vst.msk [vmem:[%s5508_s4 + $0x1e8] sm:$0xff] %vm1297_vm4, %v2717_v6  ;;  %v3036_v52 = vsel %vm2320_vm13, 1.0, %v3313_v53  ;;  %vm1938_vm14 = vcmp.ge.f32.partialorder %v1874_v7, 1.0  ;;  %vm1519_vm15 = vcmp.ge.f32.partialorder %v1455_v59, 1.0 }
 0x1ea   :  { %3100 = vst.msk [vmem:[%s5508_s4 + $0x7e0] sm:$0xff] %vm1297_vm4, %v3036_v52  ;;  %vm2291_vm3 = vcmp.ge.f32.partialorder %v2227_v13, 1.0  ;;  %v2911_v28 = vsel %vm1938_vm14, 1.0, %v3313_v53  ;;  %v1487_v2 = vadd.f32 %v4905_v47, %v1423_v4  ;;  %v2749_v32 = vsel %vm1519_vm15, 1.0, %v3313_v53 }
 0x1eb   :  { %v3007_v46 = vsel %vm2291_vm3, 1.0, %v3313_v53  ;;  %2975 = vst.msk [vmem:[%s5508_s4 + $0x5f8] sm:$0xff] %vm1297_vm4, %v2911_v28  ;;  %v2195_v38 = vsub.f32 %v1874_v7, %v2911_v28  ;;  %2813 = vst.msk [vmem:[%s5508_s4 + $0x2e8] sm:$0xff] %vm1297_vm4, %v2749_v32  ;;  %v1776_v26 = vsub.f32 %v1455_v59, %v2749_v32 }
 0x1ec   :  { %3071 = vst.msk [vmem:[%s5508_s4 + $0x6f8] sm:$0xff] %vm1297_vm4, %v3007_v46  ;;  %vm1551_vm0 = vcmp.ge.f32.partialorder %v1487_v2, 1.0 }
 0x1ed   :  { %v2259_v33 = vadd.f32 %v4905_v47, %v2195_v38  ;;  %v2781_v3 = vsel %vm1551_vm0, 1.0, %v3313_v53  ;;  %v1840_v18 = vadd.f32 %v4905_v47, %v1776_v26 }
 0x1ee   :  { %2845 = vst.msk [vmem:[%s5508_s4 + $0x3e8] sm:$0xff] %vm1297_vm4, %v2781_v3  ;;  %v1808_v43 = vsub.f32 %v1487_v2, %v2781_v3 }
 0x1ef   :  { %vm2323_vm1 = vcmp.ge.f32.partialorder %v2259_v33, 1.0  ;;  %vm1904_vm2 = vcmp.ge.f32.partialorder %v1840_v18, 1.0 }
 0x1f0   :  { %v3039_v60 = vsel %vm2323_vm1, 1.0, %v3313_v53  ;;  %v1872_v39 = vadd.f32 %v4905_v47, %v1808_v43  ;;  %v2877_v45 = vsel %vm1904_vm2, 1.0, %v3313_v53 }
 0x1f1   :  { %3103 = vst.msk [vmem:[%s5508_s4 + $0x7f8] sm:$0xff] %vm1297_vm4, %v3039_v60  ;;  %2941 = vst.msk [vmem:[%s5508_s4 + $0x4e8] sm:$0xff] %vm1297_vm4, %v2877_v45  ;;  %v2161_v61 = vsub.f32 %v1840_v18, %v2877_v45 }
 0x1f2   :  { %vm1936_vm5 = vcmp.ge.f32.partialorder %v1872_v39, 1.0 }
 0x1f3   :  { %v2909_v0 = vsel %vm1936_vm5, 1.0, %v3313_v53  ;;  %v2225_v1 = vadd.f32 %v4905_v47, %v2161_v61 }
 0x1f4   :  { %2973 = vst.msk [vmem:[%s5508_s4 + $0x5e8] sm:$0xff] %vm1297_vm4, %v2909_v0  ;;  %v2193_v57 = vsub.f32 %v1872_v39, %v2909_v0 }
 0x1f5   :  { %vm2289_vm6 = vcmp.ge.f32.partialorder %v2225_v1, 1.0 }
 0x1f6   :  { %v2257_v36 = vadd.f32 %v4905_v47, %v2193_v57  ;;  %v3005_v54 = vsel %vm2289_vm6, 1.0, %v3313_v53 }
 0x1f7   :  { %3069 = vst.msk [vmem:[%s5508_s4 + $0x6e8] sm:$0xff] %vm1297_vm4, %v3005_v54 }
 0x1f8   :  { %vm2321_vm7 = vcmp.ge.f32.partialorder %v2257_v36, 1.0 }
 0x1f9   :  { %v3037_v56 = vsel %vm2321_vm7, 1.0, %v3313_v53 }
 0x1fa   :  { %3101 = vst.msk [vmem:[%s5508_s4 + $0x7e8] sm:$0xff] %vm1297_vm4, %v3037_v56 }

// kernel: salexnet_forward.8
= control target key start
LH: loop header
LB: loop body
LE: loop exit
PB: predicated region body
PF: predicated region fallthrough
CT: control target
= control target key end

     0   :  { %vm204_vm0 = vcmask 261120   ;;  %vm329_vm1 = vcmask 257024   ;;  %s550_s1 = inlined_call_operand.vmem [shape: bf16[288,32], index: 1, kind: input, shape index: {}]   ;;  %s551_s0 = inlined_call_operand.vmem [shape: bf16[32,288], index: 0, kind: input, shape index: {}]   ;;  %s552_s2 = inlined_call_operand.vmem [shape: f32[1,32], index: 2, kind: input, shape index: {}]   ;;  %s553_s3 = inlined_call_operand.vmem [shape: bf16[32,32], index: 3, kind: output, shape index: {}]  }
   0x1   :  { %v413_v0 = vld [vmem:[%s550_s1 + $0x40] sm:$0xff]   ;;  %v415_v2 = vld [vmem:[%s550_s1 + $0x48] sm:$0xff]   ;;  %v417_v4 = vld [vmem:[%s550_s1 + $0x50] sm:$0xff]  }
   0x2   :  { %v414_v1 = vld [vmem:[%s550_s1] sm:$0xff]   ;;  %373 = vmatprep.subr.bf16.mxu0 %v413_v0  ;;  %v416_v3 = vld [vmem:[%s550_s1 + $0x8] sm:$0xff]   ;;  %v418_v5 = vld [vmem:[%s550_s1 + $0x10] sm:$0xff]  }
   0x3   :  { %374 = vmatpush3.bf16.msra.mxu0 %v414_v1  ;;  %v419_v6 = vld [vmem:[%s550_s1 + $0x58] sm:$0xff]   ;;  %v421_v8 = vld [vmem:[%s550_s1 + $0x60] sm:$0xff]   ;;  %v423_v11 = vld [vmem:[%s550_s1 + $0x68] sm:$0xff]  }
   0x4   :  { %375 = vmatprep.subr.bf16.mxu0 %v415_v2  ;;  %v420_v7 = vld [vmem:[%s550_s1 + $0x18] sm:$0xff]   ;;  %v422_v9 = vld [vmem:[%s550_s1 + $0x20] sm:$0xff]   ;;  %v424_v12 = vld [vmem:[%s550_s1 + $0x28] sm:$0xff]  }
   0x5   :  { %v428_v10 = vld [vmem:[%s550_s1 + $0x80] sm:$0xff]   ;;  %v425_v13 = vld [vmem:[%s550_s1 + $0x70] sm:$0xff]   ;;  %v433_v15 = vld [vmem:[%s550_s1 + $0x88] sm:$0xff]  }
   0x6   :  { %405 = vmatprep.subr.bf16.mxu1 %v428_v10  ;;  %v432_v14 = vld [vmem:[%s551_s0 + $0x4] ss:$12 sps:$4 sm:$0xff]   ;;  %v434_v16 = vld [vmem:[%s551_s0 + $0x8] ss:$12 sps:$4 sm:$0xff]   ;;  %v435_v17 = vld [vmem:[%s551_s0 + $0x20] ss:$12 sps:$4 sm:$0xff]  }
   0x7   :  { %376 = vmatpush3.bf16.msra.mxu0 %v416_v3  ;;  %406 = vmatpush3.bf16.msra.mxu1 %v428_v10  ;;  %v426_v18 = vld [vmem:[%s550_s1 + $0x30] sm:$0xff]   ;;  %v427_v19 = vld [vmem:[%s550_s1 + $0x78] sm:$0xff]   ;;  %v430_v21 = vld [vmem:[%s551_s0] ss:$12 sps:$4 sm:$0xff]  }
   0x8   :  { %377 = vmatprep.subr.bf16.mxu0 %v417_v4  ;;  %243 = vmatprep.mubr.bf16.mxu0 %v432_v14  ;;  %v429_v20 = vld [vmem:[%s550_s1 + $0x38] sm:$0xff]   ;;  %v338_v30 = vld [vmem:[%s552_s2] ss:$0 sm:$0xff] }
   0x9   :  { %407 = vmatprep.subr.bf16.mxu1 %v433_v15  ;;  %409 = vmatprep.mubr.msk.bf16.mxu1 %vm204_vm0, %v434_v16  ;;  %v436_v22 = vld [vmem:[%s551_s0 + $0x1c] ss:$12 sps:$4 sm:$0xff]   ;;  %v438_v23 = vld [vmem:[%s551_s0 + $0x18] ss:$12 sps:$4 sm:$0xff]  }
   0xb   :  { %378 = vmatpush3.bf16.msra.mxu0 %v418_v5  ;;  %408 = vmatpush3.bf16.msra.mxu1 %v433_v15 }
   0xc   :  { %379 = vmatprep.subr.bf16.mxu0 %v419_v6 }
   0xe   :  { %410 = vmatmul.mubr.msk.bf16.vlgmr.msra.gmra.mrb[0].mxu1 %vm204_vm0, %v435_v17 }
   0xf   :  { %380 = vmatpush3.bf16.msra.mxu0 %v420_v7 }
  0x10   :  { %381 = vmatprep.subr.bf16.mxu0 %v421_v8 }
  0x13   :  { %382 = vmatpush3.bf16.msra.mxu0 %v422_v9 }
  0x14   :  { %383 = vmatprep.subr.bf16.mxu0 %v423_v11 }
  0x17   :  { %384 = vmatpush3.bf16.msra.mxu0 %v424_v12 }
  0x18   :  { %385 = vmatprep.subr.bf16.mxu0 %v425_v13 }
  0x1b   :  { %386 = vmatpush3.bf16.msra.mxu0 %v426_v18 }
  0x1c   :  { %387 = vmatprep.subr.bf16.mxu0 %v427_v19 }
  0x1f   :  { %388 = vmatpush3.bf16.msra.mxu0 %v429_v20 }
  0x22   :  { %244 = vmatmul.mubr.bf16.vlgmr.msra.gmra.mrb[0].mxu0 %v430_v21 }
  0x23   :  { %251 = vmatprep.mubr.bf16.mxu0 %v436_v22 }
  0x2a   :  { %252 = vmatmul.mubr.bf16.gmra.mrb[4].mxu0 %v438_v23 }
  0xe1   :  { %v411_v24 = vpop.f32.mrb[0].mxu1 }
  0xe2   :  { %v294_v25 = vpop.f32.mrb[1].mxu1 }
  0xe3   :  { %v412_v26 = vpop.f32.mrb[2].mxu1 }
  0xe4   :  { %v297_v27 = vpop.f32.mrb[3].mxu1 }
  0xf5   :  { %v389_v28 = vpop.f32.mrb[0].mxu0 }
  0xf6   :  { %v390_v29 = vpop.f32.mrb[1].mxu0 }
  0xf7   :  { %v391_v31 = vadd.f32 %v390_v29, %v389_v28  ;;  %v392_v32 = vpop.f32.mrb[2].mxu0 }
  0xf8   :  { %v393_v33 = vpop.f32.mrb[3].mxu0 }
  0xf9   :  { %v394_v34 = vadd.f32 %v393_v33, %v392_v32  ;;  %v246_v35 = vadd.f32 %v391_v31, %v338_v30 }
  0xfb   :  { %v295_v36 = vadd.f32 %v294_v25, %v246_v35  ;;  %v249_v37 = vadd.f32 %v394_v34, %v338_v30 }
  0xfd   :  { %v309_v38 = vmax.f32 %v295_v36, 0.0  ;;  %v298_v39 = vadd.f32 %v297_v27, %v249_v37  ;;  %v395_v40 = vpop.f32.mrb[4].mxu0 }
  0xfe   :  { %v396_v41 = vpop.f32.mrb[5].mxu0 }
  0xff   :  { %v369_v42 = vpack.c.bf16 %v309_v38, %v309_v38  ;;  %v310_v43 = vmax.f32 %v298_v39, 0.0  ;;  %v397_v44 = vadd.f32 %v396_v41, %v395_v40  ;;  %v398_v45 = vpop.f32.mrb[6].mxu0 }
 0x100   :  { %v399_v46 = vpop.f32.mrb[7].mxu0 }
 0x101   :  { %330 = vst.msk [vmem:[%s553_s3] sm:$0xf] %vm329_vm1, %v369_v42  ;;  %v370_v47 = vpack.c.bf16 %v310_v43, %v310_v43  ;;  %v254_v48 = vadd.f32 %v397_v44, %v338_v30  ;;  %v400_v49 = vadd.f32 %v399_v46, %v398_v45 }
 0x103   :  { %331 = vst.msk [vmem:[%s553_s3 + $0x4] sm:$0xf] %vm329_vm1, %v370_v47  ;;  %v303_v50 = vadd.f32 %v411_v24, %v254_v48  ;;  %v257_v51 = vadd.f32 %v400_v49, %v338_v30 }
 0x105   :  { %v311_v52 = vmax.f32 %v303_v50, 0.0  ;;  %v306_v53 = vadd.f32 %v412_v26, %v257_v51 }
 0x107   :  { %v371_v54 = vpack.c.bf16 %v311_v52, %v311_v52  ;;  %v312_v55 = vmax.f32 %v306_v53, 0.0 }
 0x109   :  { %332 = vst.msk [vmem:[%s553_s3 + $0x8] sm:$0xf] %vm329_vm1, %v371_v54  ;;  %v372_v56 = vpack.c.bf16 %v312_v55, %v312_v55 }
 0x10b   :  { %333 = vst.msk [vmem:[%s553_s3 + $0xc] sm:$0xf] %vm329_vm1, %v372_v56 }

// kernel: salexnet_forward.10
= control target key start
LH: loop header
LB: loop body
LE: loop exit
PB: predicated region body
PF: predicated region fallthrough
CT: control target
= control target key end

     0   :  { %vm204_vm0 = vcmask 261120   ;;  %vm329_vm1 = vcmask 125952   ;;  %s550_s1 = inlined_call_operand.vmem [shape: bf16[288,16], index: 1, kind: input, shape index: {}]   ;;  %s551_s0 = inlined_call_operand.vmem [shape: bf16[32,288], index: 0, kind: input, shape index: {}]   ;;  %s552_s2 = inlined_call_operand.vmem [shape: f32[1,16], index: 2, kind: input, shape index: {}]   ;;  %s553_s3 = inlined_call_operand.vmem [shape: bf16[32,16], index: 3, kind: output, shape index: {}]  }
   0x1   :  { %v413_v0 = vld [vmem:[%s550_s1 + $0x40] sm:$0xff]   ;;  %v415_v2 = vld [vmem:[%s550_s1 + $0x48] sm:$0xff]   ;;  %v417_v4 = vld [vmem:[%s550_s1 + $0x50] sm:$0xff]  }
   0x2   :  { %v414_v1 = vld [vmem:[%s550_s1] sm:$0xff]   ;;  %373 = vmatprep.subr.bf16.mxu0 %v413_v0  ;;  %v416_v3 = vld [vmem:[%s550_s1 + $0x8] sm:$0xff]   ;;  %v418_v5 = vld [vmem:[%s550_s1 + $0x10] sm:$0xff]  }
   0x3   :  { %374 = vmatpush3.bf16.msra.mxu0 %v414_v1  ;;  %v419_v6 = vld [vmem:[%s550_s1 + $0x58] sm:$0xff]   ;;  %v421_v8 = vld [vmem:[%s550_s1 + $0x60] sm:$0xff]   ;;  %v423_v11 = vld [vmem:[%s550_s1 + $0x68] sm:$0xff]  }
   0x4   :  { %375 = vmatprep.subr.bf16.mxu0 %v415_v2  ;;  %v420_v7 = vld [vmem:[%s550_s1 + $0x18] sm:$0xff]   ;;  %v422_v9 = vld [vmem:[%s550_s1 + $0x20] sm:$0xff]   ;;  %v424_v12 = vld [vmem:[%s550_s1 + $0x28] sm:$0xff]  }
   0x5   :  { %v428_v10 = vld [vmem:[%s550_s1 + $0x80] sm:$0xff]   ;;  %v425_v13 = vld [vmem:[%s550_s1 + $0x70] sm:$0xff]   ;;  %v433_v15 = vld [vmem:[%s550_s1 + $0x88] sm:$0xff]  }
   0x6   :  { %405 = vmatprep.subr.bf16.mxu1 %v428_v10  ;;  %v432_v14 = vld [vmem:[%s551_s0 + $0x4] ss:$12 sps:$4 sm:$0xff]   ;;  %v434_v16 = vld [vmem:[%s551_s0 + $0x8] ss:$12 sps:$4 sm:$0xff]   ;;  %v435_v17 = vld [vmem:[%s551_s0 + $0x20] ss:$12 sps:$4 sm:$0xff]  }
   0x7   :  { %376 = vmatpush3.bf16.msra.mxu0 %v416_v3  ;;  %406 = vmatpush3.bf16.msra.mxu1 %v428_v10  ;;  %v426_v18 = vld [vmem:[%s550_s1 + $0x30] sm:$0xff]   ;;  %v427_v19 = vld [vmem:[%s550_s1 + $0x78] sm:$0xff]   ;;  %v430_v21 = vld [vmem:[%s551_s0] ss:$12 sps:$4 sm:$0xff]  }
   0x8   :  { %377 = vmatprep.subr.bf16.mxu0 %v417_v4  ;;  %243 = vmatprep.mubr.bf16.mxu0 %v432_v14  ;;  %v429_v20 = vld [vmem:[%s550_s1 + $0x38] sm:$0xff]   ;;  %v338_v30 = vld [vmem:[%s552_s2] ss:$0 sm:$0xff] }
   0x9   :  { %407 = vmatprep.subr.bf16.mxu1 %v433_v15  ;;  %409 = vmatprep.mubr.msk.bf16.mxu1 %vm204_vm0, %v434_v16  ;;  %v436_v22 = vld [vmem:[%s551_s0 + $0x1c] ss:$12 sps:$4 sm:$0xff]   ;;  %v438_v23 = vld [vmem:[%s551_s0 + $0x18] ss:$12 sps:$4 sm:$0xff]  }
   0xb   :  { %378 = vmatpush3.bf16.msra.mxu0 %v418_v5  ;;  %408 = vmatpush3.bf16.msra.mxu1 %v433_v15 }
   0xc   :  { %379 = vmatprep.subr.bf16.mxu0 %v419_v6 }
   0xe   :  { %410 = vmatmul.mubr.msk.bf16.vlgmr.msra.gmra.mrb[0].mxu1 %vm204_vm0, %v435_v17 }
   0xf   :  { %380 = vmatpush3.bf16.msra.mxu0 %v420_v7 }
  0x10   :  { %381 = vmatprep.subr.bf16.mxu0 %v421_v8 }
  0x13   :  { %382 = vmatpush3.bf16.msra.mxu0 %v422_v9 }
  0x14   :  { %383 = vmatprep.subr.bf16.mxu0 %v423_v11 }
  0x17   :  { %384 = vmatpush3.bf16.msra.mxu0 %v424_v12 }
  0x18   :  { %385 = vmatprep.subr.bf16.mxu0 %v425_v13 }
  0x1b   :  { %386 = vmatpush3.bf16.msra.mxu0 %v426_v18 }
  0x1c   :  { %387 = vmatprep.subr.bf16.mxu0 %v427_v19 }
  0x1f   :  { %388 = vmatpush3.bf16.msra.mxu0 %v429_v20 }
  0x22   :  { %244 = vmatmul.mubr.bf16.vlgmr.msra.gmra.mrb[0].mxu0 %v430_v21 }
  0x23   :  { %251 = vmatprep.mubr.bf16.mxu0 %v436_v22 }
  0x2a   :  { %252 = vmatmul.mubr.bf16.gmra.mrb[4].mxu0 %v438_v23 }
  0xe1   :  { %v411_v24 = vpop.f32.mrb[0].mxu1 }
  0xe2   :  { %v294_v25 = vpop.f32.mrb[1].mxu1 }
  0xe3   :  { %v412_v26 = vpop.f32.mrb[2].mxu1 }
  0xe4   :  { %v297_v27 = vpop.f32.mrb[3].mxu1 }
  0xf5   :  { %v389_v28 = vpop.f32.mrb[0].mxu0 }
  0xf6   :  { %v390_v29 = vpop.f32.mrb[1].mxu0 }
  0xf7   :  { %v391_v31 = vadd.f32 %v390_v29, %v389_v28  ;;  %v392_v32 = vpop.f32.mrb[2].mxu0 }
  0xf8   :  { %v393_v33 = vpop.f32.mrb[3].mxu0 }
  0xf9   :  { %v394_v34 = vadd.f32 %v393_v33, %v392_v32  ;;  %v246_v35 = vadd.f32 %v391_v31, %v338_v30 }
  0xfb   :  { %v295_v36 = vadd.f32 %v294_v25, %v246_v35  ;;  %v249_v37 = vadd.f32 %v394_v34, %v338_v30 }
  0xfd   :  { %v309_v38 = vmax.f32 %v295_v36, 0.0  ;;  %v298_v39 = vadd.f32 %v297_v27, %v249_v37  ;;  %v395_v40 = vpop.f32.mrb[4].mxu0 }
  0xfe   :  { %v396_v41 = vpop.f32.mrb[5].mxu0 }
  0xff   :  { %v369_v42 = vpack.c.bf16 %v309_v38, %v309_v38  ;;  %v310_v43 = vmax.f32 %v298_v39, 0.0  ;;  %v397_v44 = vadd.f32 %v396_v41, %v395_v40  ;;  %v398_v45 = vpop.f32.mrb[6].mxu0 }
 0x100   :  { %v399_v46 = vpop.f32.mrb[7].mxu0 }
 0x101   :  { %330 = vst.msk [vmem:[%s553_s3] sm:$0xf] %vm329_vm1, %v369_v42  ;;  %v370_v47 = vpack.c.bf16 %v310_v43, %v310_v43  ;;  %v254_v48 = vadd.f32 %v397_v44, %v338_v30  ;;  %v400_v49 = vadd.f32 %v399_v46, %v398_v45 }
 0x103   :  { %331 = vst.msk [vmem:[%s553_s3 + $0x4] sm:$0xf] %vm329_vm1, %v370_v47  ;;  %v303_v50 = vadd.f32 %v411_v24, %v254_v48  ;;  %v257_v51 = vadd.f32 %v400_v49, %v338_v30 }
 0x105   :  { %v311_v52 = vmax.f32 %v303_v50, 0.0  ;;  %v306_v53 = vadd.f32 %v412_v26, %v257_v51 }
 0x107   :  { %v371_v54 = vpack.c.bf16 %v311_v52, %v311_v52  ;;  %v312_v55 = vmax.f32 %v306_v53, 0.0 }
 0x109   :  { %332 = vst.msk [vmem:[%s553_s3 + $0x8] sm:$0xf] %vm329_vm1, %v371_v54  ;;  %v372_v56 = vpack.c.bf16 %v312_v55, %v312_v55 }
 0x10b   :  { %333 = vst.msk [vmem:[%s553_s3 + $0xc] sm:$0xf] %vm329_vm1, %v372_v56 }

// kernel: salexnet_forward.11
= control target key start
LH: loop header
LB: loop body
LE: loop exit
PB: predicated region body
PF: predicated region fallthrough
CT: control target
= control target key end

     0   :  { %v451_v2 = vmov 0.0   ;;  %v74_v10 = vlaneseq  ;;  %v452_v15 = vmov 1966171168   ;;  %s569_s0 = inlined_call_operand.vmem [shape: bf16[2,256], index: 0, kind: input, shape index: {}]   ;;  %s570_s1 = inlined_call_operand.vmem [shape: bf16[256,64], index: 1, kind: input, shape index: {}]   ;;  %s571_s2 = inlined_call_operand.vmem [shape: f32[1,64], index: 2, kind: input, shape index: {}]   ;;  %s572_s3 = inlined_call_operand.vmem [shape: bf16[64,10], index: 3, kind: input, shape index: {}]   ;;  %s573_s4 = inlined_call_operand.vmem [shape: f32[1,10], index: 4, kind: input, shape index: {}]   ;;  %s574_s5 = inlined_call_operand.hbm [shape: f32[2,10], index: 5, kind: output, shape index: {}]  }
   0x1   :  { %v403_v0 = vld [vmem:[%s570_s1 + $0x40] sm:$0xff]   ;;  %387 = vmatprep.subr.bf16.mxu1 %v451_v2  ;;  %v405_v3 = vld [vmem:[%s570_s1 + $0x48] sm:$0xff]   ;;  %v407_v5 = vld [vmem:[%s570_s1 + $0x50] sm:$0xff]   ;;  %v72_v16 = vunpack.c.l.s4 %v452_v15 }
   0x2   :  { %v404_v1 = vld [vmem:[%s570_s1] sm:$0xff]   ;;  %360 = vmatprep.subr.bf16.mxu0 %v403_v0  ;;  %v406_v4 = vld [vmem:[%s570_s1 + $0x8] sm:$0xff]   ;;  %v408_v6 = vld [vmem:[%s570_s1 + $0x10] sm:$0xff]   ;;  %v75_v17 = vshrl.u32 %v74_v10, 7 }
   0x3   :  { %361 = vmatpush3.bf16.msra.mxu0 %v404_v1  ;;  %v409_v7 = vld [vmem:[%s570_s1 + $0x58] sm:$0xff]   ;;  %v411_v9 = vld [vmem:[%s570_s1 + $0x60] sm:$0xff]   ;;  %v413_v12 = vld [vmem:[%s570_s1 + $0x68] sm:$0xff]   ;;  %v73_v21 = vunpack.c.0.s8 %v72_v16 }
   0x4   :  { %362 = vmatprep.subr.bf16.mxu0 %v405_v3  ;;  %v410_v8 = vld [vmem:[%s570_s1 + $0x18] sm:$0xff]   ;;  %v412_v11 = vld [vmem:[%s570_s1 + $0x20] sm:$0xff]   ;;  %v414_v14 = vld [vmem:[%s570_s1 + $0x28] sm:$0xff]  }
   0x5   :  { %v337_v13 = vld.sshfl [vmem:[%s569_s0] sm:$0x11 pattern:$0x75316420]  ;;  %v420_v19 = vld [vmem:[%s572_s3 + $0x8] sm:$0xff]   ;;  %v415_v22 = vld [vmem:[%s570_s1 + $0x70] sm:$0xff]  }
   0x6   :  { %v419_v18 = vld [vmem:[%s572_s3] sm:$0xff]   ;;  %v70_v20 = vcombine.high %v337_v13, %v337_v13 }
   0x7   :  { %363 = vmatpush3.bf16.msra.mxu0 %v406_v4  ;;  %388 = vmatpush3.bf16.msra.mxu1 %v419_v18 }
   0x8   :  { %364 = vmatprep.subr.bf16.mxu0 %v407_v5  ;;  %389 = vmatprep.subr.bf16.mxu1 %v451_v2 }
   0xb   :  { %365 = vmatpush3.bf16.msra.mxu0 %v408_v6 }
   0xc   :  { %366 = vmatprep.subr.bf16.mxu0 %v409_v7 }
   0xf   :  { %367 = vmatpush3.bf16.msra.mxu0 %v410_v8 }
  0x10   :  { %368 = vmatprep.subr.bf16.mxu0 %v411_v9 }
  0x13   :  { %369 = vmatpush3.bf16.msra.mxu0 %v412_v11 }
  0x14   :  { %370 = vmatprep.subr.bf16.mxu0 %v413_v12 }
  0x15   :  { %10 = vsyncpa [#allocation3], 0  ;;  %v76_v23 = vsub.s32 %v73_v21, %v75_v17  ;;  %v416_v24 = vld [vmem:[%s570_s1 + $0x30] sm:$0xff]   ;;  %390 = vmatpush3.bf16.msra.mxu1 %v420_v19  ;;  %v417_v26 = vld [vmem:[%s570_s1 + $0x78] sm:$0xff]   ;;  %vm453_vm0 = vmmov 0   ;;  %vm264_vm1 = vcmask 523264  }
  0x16   :  { %391 = vmatprep.subr.bf16.mxu1 %v451_v2  ;;  %v418_v27 = vld [vmem:[%s570_s1 + $0x38] sm:$0xff]   ;;  %v421_v29 = vld [vmem:[%s572_s3 + $0x10] sm:$0xff]   ;;  %395 = vmatprep.mubr.msk.bf16.mxu1 %vm453_vm0, %v451_v2  ;;  %v336_v32 = vld [vmem:[%s571_s2] ss:$0 sm:$0xff]  ;;  %vm308_vm2 = vcmask 74752   ;;  %s454_s2 = smov [#allocation2]  }
  0x17   :  { %371 = vmatpush3.bf16.msra.mxu0 %v414_v14  ;;  %v84_v25 = vrot.slane %v70_v20, %v76_v23  ;;  %v77_v28 = vrot.slane %v337_v13, %v76_v23  ;;  %v422_v30 = vld [vmem:[%s572_s3 + $0x18] sm:$0xff]   ;;  %v354_v40 = vld [vmem:[%s573_s4] ss:$0 sm:$0xff]  ;;  %s328_s3 = sshll.u32 %s454_s2, 4  ;;  %s329_s3 = int_to_ptr.vmem [resolvable:$true] %s328_s3 }
  0x18   :  { %372 = vmatprep.subr.bf16.mxu0 %v415_v22  ;;  %s427_s4 = scalar_lea.vmem %s329_s3, 32  ;;  %p432_p1 = scmp.lt.s32.totalorder %s329_s3, %s329_s3 }
  0x19   :  { %215 = vmatprep.mubr.bf16.mxu0 %v84_v25  ;;  %392 = vmatpush3.bf16.msra.mxu1 %v421_v29  ;;  %p428_p0 = scmp.ne.s32.totalorder %s329_s3, %s427_s4  ;;  %p433_p2 = scmp.lt.s32.totalorder %s427_s4, %s427_s4 }
  0x1a   :  { %393 = vmatprep.subr.bf16.mxu1 %v451_v2 }
  0x1b   :  { %373 = vmatpush3.bf16.msra.mxu0 %v416_v24  ;;  %p434_p3 = por %p433_p2, %p432_p1 }
  0x1c   :  { %374 = vmatprep.subr.bf16.mxu0 %v417_v26 }
  0x1d   :  { %394 = vmatpush3.bf16.msra.mxu1 %v422_v30  ;;  %p435_p4 = pnand %p434_p3, %p428_p0 }
  0x1f   :  { %375 = vmatpush3.bf16.msra.mxu0 %v418_v27 }
  0x22   :  { %216 = vmatmul.mubr.bf16.vlgmr.msra.gmra.mrb[0].mxu0 %v77_v28 }
  0xf5   :  { %v376_v31 = vpop.f32.mrb[0].mxu0 }
  0xf6   :  { %v377_v33 = vpop.f32.mrb[1].mxu0 }
  0xf7   :  { %v378_v34 = vadd.f32 %v377_v33, %v376_v31  ;;  %v379_v35 = vpop.f32.mrb[2].mxu0 }
  0xf8   :  { %v380_v36 = vpop.f32.mrb[3].mxu0 }
  0xf9   :  { %v218_v37 = vadd.f32 %v378_v34, %v336_v32 }
  0xfb   :  { %v223_v38 = vmax.f32 %v218_v37, 0.0 }
  0xfd   :  { %v224_v39 = vpack.c.bf16 %v223_v38, %v223_v38 }
  0xff   :  { %396 = vmatmul.mubr.msk.bf16.vlgmr.msra.gmra.mrb[0].mxu1 %vm264_vm1, %v224_v39 }
 0x1d2   :  { %v302_v41 = vpop.f32.mrb[0].mxu1 }
 0x1d3   :  { %v303_v42 = vadd.f32 %v354_v40, %v302_v41  ;;  %v397_v43 = vpop.f32.mrb[1].mxu1 }
 0x1d4   :  { %v305_v44 = vpop.f32.mrb[2].mxu1 }
 0x1d5   :  { %v398_v45 = vpop.f32.mrb[3].mxu1  ;;  %v309_v46 = vsel %vm308_vm2, %v303_v42, -inf }
 0x1d6   :  { %310 = vmax.xlane.f32.xlu0 %v309_v46 }
 0x263   :  { %v311_v47 = vpop.xlane.xlu0 %310 }
 0x264   :  { %v312_v48 = vsub.f32 %v303_v42, %v311_v47 }
 0x266   :  { %v313_v49 = vmul.f32 1.442695, %v312_v48 }
 0x268   :  { %423 = vpow2.f32 %v313_v49 }
 0x272   :  { %v424_v50 = vpop.eup %423 }
 0x273   :  { %v315_v51 = vsel %vm308_vm2, %v424_v50, 0.0 }
 0x274   :  { %316 = vadd.xlane.f32.xlu0 %v315_v51 }
 0x301   :  { %v317_v52 = vpop.xlane.xlu0 %316 }
 0x302   :  { %425 = vlog2.f32 %v317_v52 }
 0x30c   :  { %v426_v53 = vpop.eup %425 }
 0x30d   :  { %v319_v54 = vmul.f32 0.6931472, %v426_v53 }
 0x30f   :  { %v320_v55 = vsub.f32 %v312_v48, %v319_v54 }
 0x311   :  { %321 = vst.msk [vmem:[#allocation2] sm:$0x3] %vm308_vm2, %v320_v55 }
 0x312   :  { %438 = shalt.err (!%p435_p4)
}
 0x313   :  { %s439_s14 = scalar_lea.hbm %s574_s5, 32 }
 0x314   :  { %p440_p5 = scmp.ne.s32.totalorder %s574_s5, %s439_s14  ;;  %p443_p6 = scmp.lt.u32.totalorder %s439_s14, %s574_s5 }
 0x316   :  { %p445_p7 = pnand %p443_p6, %p440_p5 }
 0x318   :  { %448 = shalt.err (!%p445_p7)
}
 0x319   :  { %331 = dma.vmem_to_hbm [thread:$0]  %s329_s3, 32, %s574_s5, [#allocation3]  }
 0x31a   :  { %449 = dma.done.wait [#allocation3], 32  }
 0x31b   :  { %450 = vsyncadd [#allocation3], 4294967264 }
 0x31c   :  { %335 = vsyncpa [#allocation3], 1 }

</bundles_post_ra>
